<compile_context>
chip_gen: v6e
topology: v6e:2x2x1
jax: 0.10.0
libtpu: 0.0.40
codegen_flags: <defaults>
</compile_context>

<pallas_src>
import functools

import jax
import jax.numpy as jnp
from jax.experimental import pallas as pl
from jax.experimental.pallas import tpu as pltpu


def _freq_bias_kernel(c0_ref, w_ref, t_ref):
    # c0_ref : [B, N_pad]       f32   zero-padded first-object distribution
    # w_ref  : [N_pad, NP_pad]  bf16  lane-dense baseline table, row i = W[i, :, :]
    # t_ref  : [B, NP_pad]      f32   T[b, j*P+p] = sum_i c0[b, i] * W[i, j, p]
    c0 = c0_ref[...]                                       # [B, N_pad] f32 (tiny)
    c0_hi = c0.astype(jnp.bfloat16)                        # compensated split:
    c0_lo = (c0 - c0_hi.astype(jnp.float32)).astype(jnp.bfloat16)  # hi+lo ~= c0 (2^-18)
    w = w_ref[...]                                         # bf16, fed straight to MXU
    t = jnp.dot(c0_hi, w, preferred_element_type=jnp.float32)
    t = t + jnp.dot(c0_lo, w, preferred_element_type=jnp.float32)
    t_ref[...] = t                                         # single lane-dense store


def pack_frequency_bias_weight(obj_baseline_weight, num_objs):
    """One-time (module-init style) packing of the [N*N, P] baseline weight.

    Returns a lane-dense, zero-padded [N_pad, NP_pad] bf16 matrix where row i holds
    W[i, j, p] flattened as j*P + p (exactly weight.reshape(N, N*P); no transpose).
    Rows padded 151 -> 160 (mult. of 16), lanes padded 7701 -> 7808 (mult. of 128).
    """
    nn_, num_preds = obj_baseline_weight.shape
    assert nn_ == num_objs * num_objs
    np_flat = num_objs * num_preds
    n_pad = ((num_objs + 15) // 16) * 16
    np_pad = ((np_flat + 127) // 128) * 128
    w2 = obj_baseline_weight.reshape(num_objs, np_flat).astype(jnp.bfloat16)
    return jnp.pad(w2, ((0, n_pad - num_objs), (0, np_pad - np_flat)))


@functools.partial(jax.jit, static_argnums=(3, 4))
def frequency_bias_forward(obj_cands0, obj_cands1, packed_weight, num_objs, num_preds):
    """obj_cands0/1: [B, N] float; packed_weight: [N_pad, NP_pad] bf16 (pre-packed)."""
    batch, n = obj_cands0.shape
    assert n == num_objs
    n_pad, np_pad = packed_weight.shape
    np_flat = num_objs * num_preds

    # Zero-pad c0 along the (prime, 151) object axis; padded W rows are zero too,
    # so the extra terms contribute nothing.
    c0 = jnp.pad(obj_cands0.astype(jnp.float32), ((0, 0), (0, n_pad - n)))

    t = pl.pallas_call(
        _freq_bias_kernel,
        out_shape=jax.ShapeDtypeStruct((batch, np_pad), jnp.float32),
        grid=(1,),
        in_specs=[
            pl.BlockSpec((batch, n_pad), lambda i: (0, 0)),    # c0, resident
            pl.BlockSpec((n_pad, np_pad), lambda i: (0, 0)),   # full W, one DMA
        ],
        out_specs=pl.BlockSpec((batch, np_pad), lambda i: (0, 0)),
        compiler_params=pltpu.CompilerParams(dimension_semantics=("arbitrary",)),
    )(c0, packed_weight)

    # Tiny epilogue (~123 KB): out[b, p] = sum_j c1[b, j] * T[b, j, p].
    # Plain JAX: the 51-wide predicate groups are interleaved along lanes, so an
    # in-kernel grouped reduction would need an expensive relayout for no gain.
    t = t[:, :np_flat].reshape(batch, num_objs, num_preds)
    return jnp.einsum("bj,bjp->bp", obj_cands1.astype(jnp.float32), t,
                      precision=jax.lax.Precision.HIGHEST)


if __name__ == "__main__":
    NUM_OBJS = 151    # VG object classes (incl. background), per forward() docstring
    NUM_PREDS = 51    # VG predicate classes (incl. "no relation")
    B = 4
    EPS = 1e-3

    key = jax.random.PRNGKey(0)
    k1, k2, k3, k4 = jax.random.split(key, 4)

    # TODO(synk): FrequencyBias.__init__ builds fg/bg counts from the VG dataset
    # (get_counts); no dataset access here, so deterministic synthetic counts are
    # used, then transformed exactly as in __init__.
    fg = jax.random.uniform(k1, (NUM_OBJS, NUM_OBJS, NUM_PREDS),
                            minval=0.0, maxval=100.0)
    bg = jax.random.uniform(k2, (NUM_OBJS, NUM_OBJS),
                            minval=0.0, maxval=100.0) + 1.0
    fg = fg.at[:, :, 0].set(bg)                                   # fg[:, :, 0] = bg
    pred_dist = jnp.log(fg / jnp.sum(fg, axis=2, keepdims=True) + EPS)
    obj_baseline_weight = pred_dist.reshape(-1, NUM_PREDS).astype(jnp.float32)

    # Probability distributions over object candidates, as the forward expects.
    obj_cands0 = jax.nn.softmax(jax.random.normal(k3, (B, NUM_OBJS)), axis=-1)
    obj_cands1 = jax.nn.softmax(jax.random.normal(k4, (B, NUM_OBJS)), axis=-1)

    packed_w = pack_frequency_bias_weight(obj_baseline_weight, NUM_OBJS)
    out = frequency_bias_forward(obj_cands0, obj_cands1, packed_w,
                                 NUM_OBJS, NUM_PREDS)
    out = jax.block_until_ready(out)

    # Pure-JAX reference of the PyTorch forward, using the same bf16-quantized
    # baseline table the kernel reads (bf16 storage of the log-frequency bias is a
    # deliberate optimization; the check isolates the kernel's contraction math —
    # the compensated hi/lo split keeps c0 at effectively f32 precision).
    np_flat = NUM_OBJS * NUM_PREDS
    w_ref = packed_w[:NUM_OBJS, :np_flat].astype(jnp.float32).reshape(
        NUM_OBJS * NUM_OBJS, NUM_PREDS)
    joint = obj_cands0[:, :, None] * obj_cands1[:, None, :]
    ref = jnp.einsum("bk,kp->bp", joint.reshape(B, -1), w_ref,
                     precision=jax.lax.Precision.HIGHEST)

    assert out.shape == (B, NUM_PREDS)
    max_err = float(jnp.max(jnp.abs(out - ref)))
    assert jnp.allclose(out, ref, atol=5e-4, rtol=5e-4), max_err
    print("KERNEL_OK")
</pallas_src>

<mosaic_0001>
module attributes {stable_mosaic.version = 11 : i64} {
  func.func @_freq_bias_kernel(%arg0: i32, %arg1: memref<4x160xf32, #tpu.memory_space<vmem>>, %arg2: memref<160x7808xbf16, #tpu.memory_space<vmem>>, %arg3: memref<4x7808xf32, #tpu.memory_space<vmem>>) attributes {dimension_semantics = [#tpu.dimension_semantics<arbitrary>], iteration_bounds = array<i64: 1>, scalar_prefetch = 0 : i64, scratch_operands = 0 : i64, tpu.core_type = #tpu.core_type<tc>, window_params = [{pipeline_mode = #tpu.pipeline_mode<synchronous>, transform_indices = @transform_0, window_bounds = array<i64: 4, 160>}, {pipeline_mode = #tpu.pipeline_mode<synchronous>, transform_indices = @transform_1, window_bounds = array<i64: 160, 7808>}, {pipeline_mode = #tpu.pipeline_mode<synchronous>, transform_indices = @transform_2, window_bounds = array<i64: 4, 7808>}]} {
    %c0 = arith.constant 0 : index
    %c0_0 = arith.constant 0 : index
    %0 = vector.load %arg1[%c0, %c0_0] : memref<4x160xf32, #tpu.memory_space<vmem>>, vector<4x160xf32>
    %1 = arith.truncf %0 : vector<4x160xf32> to vector<4x160xbf16>
    %2 = arith.extf %1 : vector<4x160xbf16> to vector<4x160xf32>
    %3 = arith.subf %0, %2 : vector<4x160xf32>
    %4 = arith.truncf %3 : vector<4x160xf32> to vector<4x160xbf16>
    %c0_1 = arith.constant 0 : index
    %c0_2 = arith.constant 0 : index
    %5 = vector.load %arg2[%c0_1, %c0_2] : memref<160x7808xbf16, #tpu.memory_space<vmem>>, vector<160x7808xbf16>
    %cst = arith.constant dense<0.000000e+00> : vector<4x7808xf32>
    %6 = tpu.matmul %1, %5, %cst {dimension_numbers = #tpu.dot_dimension_numbers<[1], [0], [0], [1], [0, 0, 1, 1], [], []>} : vector<4x160xbf16>, vector<160x7808xbf16>, vector<4x7808xf32> -> vector<4x7808xf32>
    %cst_3 = arith.constant dense<0.000000e+00> : vector<4x7808xf32>
    %7 = tpu.matmul %4, %5, %cst_3 {dimension_numbers = #tpu.dot_dimension_numbers<[1], [0], [0], [1], [0, 0, 1, 1], [], []>} : vector<4x160xbf16>, vector<160x7808xbf16>, vector<4x7808xf32> -> vector<4x7808xf32>
    %8 = arith.addf %6, %7 : vector<4x7808xf32>
    %c0_4 = arith.constant 0 : index
    %c0_5 = arith.constant 0 : index
    %9 = vector.load %arg3[%c0_4, %c0_5] : memref<4x7808xf32, #tpu.memory_space<vmem>>, vector<4x7808xf32>
    tpu.vector_store %arg3[%c0_4, %c0_5], %8 {strides = array<i32>} : memref<4x7808xf32, #tpu.memory_space<vmem>>, vector<4x7808xf32>,
    return
  }
  func.func @transform_0(%arg0: i32) -> (i32, i32) {
    %c0_i32 = arith.constant 0 : i32
    %c0_i32_0 = arith.constant 0 : i32
    %c0_i32_1 = arith.constant 0 : i32
    return %c0_i32, %c0_i32_0 : i32, i32
  }
  func.func @transform_1(%arg0: i32) -> (i32, i32) {
    %c0_i32 = arith.constant 0 : i32
    %c0_i32_0 = arith.constant 0 : i32
    %c0_i32_1 = arith.constant 0 : i32
    return %c0_i32, %c0_i32_0 : i32, i32
  }
  func.func @transform_2(%arg0: i32) -> (i32, i32) {
    %c0_i32 = arith.constant 0 : i32
    %c0_i32_0 = arith.constant 0 : i32
    %c0_i32_1 = arith.constant 0 : i32
    return %c0_i32, %c0_i32_0 : i32, i32
  }
}

</mosaic_0001>

<bundles_post_ra>
// kernel: frequency_bias_forward.1
= control target key start
LH: loop header
LB: loop body
LE: loop exit
PB: predicated region body
PF: predicated region fallthrough
CT: control target
= control target key end

     0   :  { %7 = vsyncpa [#allocation3], 0  ;;  %s8646_s9 = smov [#allocation2]   ;;  %s9163_s0 = inlined_call_operand.vmem [shape: f32[4,160], index: 0, kind: input, shape index: {}]   ;;  %s9164_s1 = inlined_call_operand.hbm [shape: bf16[160,7808], index: 1, kind: input, shape index: {}]   ;;  %s9165_s2 = inlined_call_operand.vmem [shape: f32[4,7808], index: 2, kind: output, shape index: {}]  }
   0x1   :  { %s15_s10 = sshll.u32 %s8646_s9, 4  ;;  %s16_s10 = int_to_ptr.vmem [resolvable:$true] %s15_s10 }
   0x2   :  { %s8632_s11 = scalar_lea.vmem %s16_s10, 78080  ;;  %p8637_p1 = scmp.lt.s32.totalorder %s16_s10, %s16_s10 }
   0x3   :  { %p8633_p0 = scmp.ne.s32.totalorder %s16_s10, %s8632_s11  ;;  %p8638_p2 = scmp.lt.s32.totalorder %s8632_s11, %s8632_s11 }
   0x5   :  { %p8639_p3 = por %p8638_p2, %p8637_p1 }
   0x7   :  { %p8640_p4 = pnand %p8639_p3, %p8633_p0 }
   0x9   :  { %8643 = shalt.err (!%p8640_p4)
}
   0xa   :  { %s8647_s12 = smov 3904   ;;  %s8648_s13 = smov 244  }
   0xb   :  { %21 = dma.hbm_to_vmem [thread:$0]  %s9164_s1, 78080, %s16_s10, [#allocation3], %s8647_s12, %s8647_s12, %s8648_s13  }
   0xc   :  { %8644 = dma.done.wait [#allocation3], 78080  }
   0xd   :  { %8645 = vsyncadd [#allocation3], 4294889216  ;;  %v7103_v0 = vld [vmem:[#allocation2 + $0xd5c] ss:$244 sps:$4 sm:$0xff]   ;;  %v7105_v1 = vld [vmem:[#allocation2 + $0xd64] ss:$244 sps:$4 sm:$0xff]  }
   0xe   :  { %3728 = vmatprep.subr.bf16.mxu0 %v7103_v0  ;;  %v7107_v2 = vld [vmem:[#allocation2 + $0xd58] ss:$244 sps:$4 sm:$0xff]   ;;  %v7108_v3 = vld [vmem:[#allocation2 + $0xd60] ss:$244 sps:$4 sm:$0xff]   ;;  %3769 = vmatprep.subr.bf16.mxu1 %v7105_v1  ;;  %v7111_v5 = vld [vmem:[#allocation2 + $0xb7c] ss:$244 sps:$4 sm:$0xff]  }
   0xf   :  { %v7109_v4 = vld [vmem:[#allocation2 + $0xb74] ss:$244 sps:$4 sm:$0xff]   ;;  %3729 = vmatpush1.bf16.msra.mxu0 %v7107_v2  ;;  %3770 = vmatpush1.bf16.msra.mxu1 %v7108_v3  ;;  %v7113_v6 = vld [vmem:[#allocation2 + $0xb70] ss:$244 sps:$4 sm:$0xff]   ;;  %v7114_v7 = vld [vmem:[#allocation2 + $0xb78] ss:$244 sps:$4 sm:$0xff]  }
  0x10   :  { %3730 = vmatprep.subr.bf16.mxu0 %v7109_v4  ;;  %3771 = vmatprep.subr.bf16.mxu1 %v7111_v5  ;;  %v7115_v8 = vld [vmem:[#allocation2 + $0x98c] ss:$244 sps:$4 sm:$0xff]   ;;  %v7117_v9 = vld [vmem:[#allocation2 + $0x994] ss:$244 sps:$4 sm:$0xff]   ;;  %v7120_v11 = vld [vmem:[#allocation2 + $0x990] ss:$244 sps:$4 sm:$0xff]  }
  0x11   :  { %v7119_v10 = vld [vmem:[#allocation2 + $0x988] ss:$244 sps:$4 sm:$0xff]   ;;  %v7121_v12 = vld [vmem:[#allocation2 + $0x7a4] ss:$244 sps:$4 sm:$0xff]   ;;  %v7123_v13 = vld [vmem:[#allocation2 + $0x7ac] ss:$244 sps:$4 sm:$0xff]  }
  0x12   :  { %v7125_v14 = vld [vmem:[#allocation2 + $0x7a0] ss:$244 sps:$4 sm:$0xff]   ;;  %v7126_v15 = vld [vmem:[#allocation2 + $0x7a8] ss:$244 sps:$4 sm:$0xff]   ;;  %v7129_v17 = vld [vmem:[#allocation2 + $0x5c4] ss:$244 sps:$4 sm:$0xff]  }
  0x13   :  { %3731 = vmatpush1.bf16.msra.mxu0 %v7113_v6  ;;  %3772 = vmatpush1.bf16.msra.mxu1 %v7114_v7  ;;  %v7127_v16 = vld [vmem:[#allocation2 + $0x5bc] ss:$244 sps:$4 sm:$0xff]   ;;  %v7131_v18 = vld [vmem:[#allocation2 + $0x5b8] ss:$244 sps:$4 sm:$0xff]   ;;  %v7132_v19 = vld [vmem:[#allocation2 + $0x5c0] ss:$244 sps:$4 sm:$0xff]  }
  0x14   :  { %3732 = vmatprep.subr.bf16.mxu0 %v7115_v8  ;;  %3773 = vmatprep.subr.bf16.mxu1 %v7117_v9  ;;  %v7133_v20 = vld [vmem:[#allocation2 + $0x3d4] ss:$244 sps:$4 sm:$0xff]   ;;  %v7135_v21 = vld [vmem:[#allocation2 + $0x3dc] ss:$244 sps:$4 sm:$0xff]   ;;  %v7138_v23 = vld [vmem:[#allocation2 + $0x3d8] ss:$244 sps:$4 sm:$0xff]  }
  0x15   :  { %v7137_v22 = vld [vmem:[#allocation2 + $0x3d0] ss:$244 sps:$4 sm:$0xff]   ;;  %v7139_v24 = vld [vmem:[#allocation2 + $0x1ec] ss:$244 sps:$4 sm:$0xff]   ;;  %v7141_v25 = vld [vmem:[#allocation2 + $0x1f4] ss:$244 sps:$4 sm:$0xff]  }
  0x16   :  { %v7143_v26 = vld [vmem:[#allocation2 + $0x1e8] ss:$244 sps:$4 sm:$0xff]   ;;  %v7144_v27 = vld [vmem:[#allocation2 + $0x1f0] ss:$244 sps:$4 sm:$0xff]   ;;  %v7147_v29 = vld [vmem:[#allocation2 + $0xc] ss:$244 sps:$4 sm:$0xff]  }
  0x17   :  { %3733 = vmatpush1.bf16.msra.mxu0 %v7119_v10  ;;  %3774 = vmatpush1.bf16.msra.mxu1 %v7120_v11  ;;  %v7145_v28 = vld [vmem:[#allocation2 + $0x4] ss:$244 sps:$4 sm:$0xff]   ;;  %v7149_v31 = vld [vmem:[#allocation2] ss:$244 sps:$4 sm:$0xff]   ;;  %v7150_v34 = vld [vmem:[#allocation2 + $0x8] ss:$244 sps:$4 sm:$0xff]  }
  0x18   :  { %3734 = vmatprep.subr.bf16.mxu0 %v7121_v12  ;;  %3775 = vmatprep.subr.bf16.mxu1 %v7123_v13  ;;  %v26_v30 = vld [vmem:[%s9163_s0] sm:$0xff]  ;;  %v7153_v36 = vld [vmem:[#allocation2 + $0x1134] ss:$244 sps:$4 sm:$0xff]   ;;  %vm3724_vm0 = vcmask 261120   ;;  %v7178_v59 = vld [vmem:[#allocation2 + $0x99c] ss:$244 sps:$4 sm:$0xff]  }
  0x19   :  { %v28_v32 = vcombine.high %v26_v30, %v26_v30  ;;  %v8671_v33 = vpack.c.bf16 %v26_v30, %v26_v30  ;;  %v7151_v35 = vld [vmem:[#allocation2 + $0x112c] ss:$244 sps:$4 sm:$0xff]   ;;  %v7155_v39 = vld [vmem:[#allocation2 + $0x1128] ss:$244 sps:$4 sm:$0xff]   ;;  %v7156_v41 = vld [vmem:[#allocation2 + $0x1130] ss:$244 sps:$4 sm:$0xff]  }
  0x1a   :  { %v7157_v42 = vld [vmem:[#allocation2 + $0xf44] ss:$244 sps:$4 sm:$0xff]   ;;  %v7159_v43 = vld [vmem:[#allocation2 + $0xf4c] ss:$244 sps:$4 sm:$0xff]   ;;  %v7162_v47 = vld [vmem:[#allocation2 + $0xf48] ss:$244 sps:$4 sm:$0xff]  }
  0x1b   :  { %3735 = vmatpush1.bf16.msra.mxu0 %v7125_v14  ;;  %3776 = vmatpush1.bf16.msra.mxu1 %v7126_v15  ;;  %v8673_v37 = vpack.c.bf16 %v28_v32, %v28_v32  ;;  %v32_v38 = vunpack.c.l.bf16 %v8671_v33  ;;  %v7161_v45 = vld [vmem:[#allocation2 + $0xf40] ss:$244 sps:$4 sm:$0xff]   ;;  %v7164_v53 = vld [vmem:[#allocation2 + $0xd68] ss:$244 sps:$4 sm:$0xff]   ;;  %v7167_v54 = vld [vmem:[#allocation2 + $0xd70] ss:$244 sps:$4 sm:$0xff]  }
  0x1c   :  { %3736 = vmatprep.subr.bf16.mxu0 %v7127_v16  ;;  %3777 = vmatprep.subr.bf16.mxu1 %v7129_v17  ;;  %v7166_v49 = vld [vmem:[#allocation2 + $0xd6c] ss:$244 sps:$4 sm:$0xff]   ;;  %v7169_v50 = vld [vmem:[#allocation2 + $0xd74] ss:$244 sps:$4 sm:$0xff]   ;;  %v7172_v55 = vld [vmem:[#allocation2 + $0xb84] ss:$244 sps:$4 sm:$0xff]  }
  0x1d   :  { %v33_v40 = vunpack.c.l.bf16 %v8673_v37  ;;  %v7175_v56 = vld [vmem:[#allocation2 + $0xb8c] ss:$244 sps:$4 sm:$0xff]   ;;  %v7173_v58 = vld [vmem:[#allocation2 + $0xb88] ss:$244 sps:$4 sm:$0xff]   ;;  %v7181_v60 = vld [vmem:[#allocation2 + $0x9a4] ss:$244 sps:$4 sm:$0xff]  }
  0x1e   :  { %v7170_v57 = vld [vmem:[#allocation2 + $0xb80] ss:$244 sps:$4 sm:$0xff]   ;;  %v7176_v61 = vld [vmem:[#allocation2 + $0x998] ss:$244 sps:$4 sm:$0xff]   ;;  %v7187_v0 = vld [vmem:[#allocation2 + $0x7bc] ss:$244 sps:$4 sm:$0xff]  }
  0x1f   :  { %3737 = vmatpush1.bf16.msra.mxu0 %v7131_v18  ;;  %3778 = vmatpush1.bf16.msra.mxu1 %v7132_v19  ;;  %v36_v44 = vcombine.low %v32_v38, %v33_v40  ;;  %v7179_v62 = vld [vmem:[#allocation2 + $0x9a0] ss:$244 sps:$4 sm:$0xff]   ;;  %v7182_v1 = vld [vmem:[#allocation2 + $0x7b0] ss:$244 sps:$4 sm:$0xff]   ;;  %v7185_v2 = vld [vmem:[#allocation2 + $0x7b8] ss:$244 sps:$4 sm:$0xff]  }
  0x20   :  { %3738 = vmatprep.subr.bf16.mxu0 %v7133_v20  ;;  %3779 = vmatprep.subr.bf16.mxu1 %v7135_v21  ;;  %v7184_v63 = vld [vmem:[#allocation2 + $0x7b4] ss:$244 sps:$4 sm:$0xff]   ;;  %v7190_v3 = vld [vmem:[#allocation2 + $0x5cc] ss:$244 sps:$4 sm:$0xff]   ;;  %v7191_v6 = vld [vmem:[#allocation2 + $0x5d0] ss:$244 sps:$4 sm:$0xff]  }
  0x21   :  { %v38_v46 = vsub.f32 %v26_v30, %v36_v44  ;;  %v7193_v4 = vld [vmem:[#allocation2 + $0x5d4] ss:$244 sps:$4 sm:$0xff]   ;;  %v7196_v7 = vld [vmem:[#allocation2 + $0x3e4] ss:$244 sps:$4 sm:$0xff]   ;;  %v7199_v8 = vld [vmem:[#allocation2 + $0x3ec] ss:$244 sps:$4 sm:$0xff]  }
  0x22   :  { %v7188_v5 = vld [vmem:[#allocation2 + $0x5c8] ss:$244 sps:$4 sm:$0xff]   ;;  %v7194_v9 = vld [vmem:[#allocation2 + $0x3e0] ss:$244 sps:$4 sm:$0xff]   ;;  %v7205_v12 = vld [vmem:[#allocation2 + $0x204] ss:$244 sps:$4 sm:$0xff]  }
  0x23   :  { %3739 = vmatpush1.bf16.msra.mxu0 %v7137_v22  ;;  %3780 = vmatpush1.bf16.msra.mxu1 %v7138_v23  ;;  %v40_v48 = vcombine.high %v38_v46, %v38_v46  ;;  %v8679_v52 = vpack.c.bf16 %v38_v46, %v38_v46  ;;  %v7197_v10 = vld [vmem:[#allocation2 + $0x3e8] ss:$244 sps:$4 sm:$0xff]   ;;  %v7200_v13 = vld [vmem:[#allocation2 + $0x1f8] ss:$244 sps:$4 sm:$0xff]   ;;  %v7203_v14 = vld [vmem:[#allocation2 + $0x200] ss:$244 sps:$4 sm:$0xff]  }
  0x24   :  { %3740 = vmatprep.subr.bf16.mxu0 %v7139_v24  ;;  %3781 = vmatprep.subr.bf16.mxu1 %v7141_v25  ;;  %v7202_v11 = vld [vmem:[#allocation2 + $0x1fc] ss:$244 sps:$4 sm:$0xff]   ;;  %v7208_v15 = vld [vmem:[#allocation2 + $0x14] ss:$244 sps:$4 sm:$0xff]   ;;  %v7209_v18 = vld [vmem:[#allocation2 + $0x18] ss:$244 sps:$4 sm:$0xff]  }
  0x25   :  { %v8677_v51 = vpack.c.bf16 %v40_v48, %v40_v48  ;;  %v7211_v16 = vld [vmem:[#allocation2 + $0x1c] ss:$244 sps:$4 sm:$0xff]   ;;  %v7217_v20 = vld [vmem:[#allocation2 + $0x1144] ss:$244 sps:$4 sm:$0xff]   ;;  %v7215_v22 = vld [vmem:[#allocation2 + $0x1140] ss:$244 sps:$4 sm:$0xff]  }
  0x26   :  { %v7206_v17 = vld [vmem:[#allocation2 + $0x10] ss:$244 sps:$4 sm:$0xff]   ;;  %v7212_v21 = vld [vmem:[#allocation2 + $0x1138] ss:$244 sps:$4 sm:$0xff]   ;;  %v7220_v23 = vld [vmem:[#allocation2 + $0xf54] ss:$244 sps:$4 sm:$0xff]  }
  0x27   :  { %3741 = vmatpush1.bf16.msra.mxu0 %v7143_v26  ;;  %3782 = vmatpush1.bf16.msra.mxu1 %v7144_v27  ;;  %v7214_v19 = vld [vmem:[#allocation2 + $0x113c] ss:$244 sps:$4 sm:$0xff]   ;;  %v7221_v26 = vld [vmem:[#allocation2 + $0xf58] ss:$244 sps:$4 sm:$0xff]   ;;  %v7227_v30 = vld [vmem:[#allocation2 + $0xd80] ss:$244 sps:$4 sm:$0xff]  }
  0x28   :  { %3742 = vmatprep.subr.bf16.mxu0 %v7145_v28  ;;  %3783 = vmatprep.subr.bf16.mxu1 %v7147_v29  ;;  %v7223_v24 = vld [vmem:[#allocation2 + $0xf5c] ss:$244 sps:$4 sm:$0xff]   ;;  %v7229_v28 = vld [vmem:[#allocation2 + $0xd84] ss:$244 sps:$4 sm:$0xff]   ;;  %v7241_v38 = vld [vmem:[#allocation2 + $0x9b4] ss:$244 sps:$4 sm:$0xff]  }
  0x29   :  { %7037 = vmatprep.mubr.msk.bf16.mxu0 %vm3724_vm0, %v8677_v51  ;;  %7038 = vmatprep.mubr.msk.bf16.mxu1 %vm3724_vm0, %v8677_v51  ;;  %v7218_v25 = vld [vmem:[#allocation2 + $0xf50] ss:$244 sps:$4 sm:$0xff]   ;;  %v7224_v29 = vld [vmem:[#allocation2 + $0xd78] ss:$244 sps:$4 sm:$0xff]   ;;  %v7245_v44 = vld [vmem:[#allocation2 + $0x7c8] ss:$244 sps:$4 sm:$0xff]  }
  0x2a   :  { %v7226_v27 = vld [vmem:[#allocation2 + $0xd7c] ss:$244 sps:$4 sm:$0xff]   ;;  %v7253_v46 = vld [vmem:[#allocation2 + $0x5e4] ss:$244 sps:$4 sm:$0xff]   ;;  %v7251_v48 = vld [vmem:[#allocation2 + $0x5e0] ss:$244 sps:$4 sm:$0xff]  }
  0x2b   :  { %3743 = vmatpush1.bf16.msra.mxu0 %v7149_v31  ;;  %3784 = vmatpush1.bf16.msra.mxu1 %v7150_v34  ;;  %v7232_v31 = vld [vmem:[#allocation2 + $0xb94] ss:$244 sps:$4 sm:$0xff]   ;;  %v7235_v32 = vld [vmem:[#allocation2 + $0xb9c] ss:$244 sps:$4 sm:$0xff]  }
  0x2c   :  { %3756 = vmatprep.subr.bf16.mxu0 %v7151_v35  ;;  %3797 = vmatprep.subr.bf16.mxu1 %v7153_v36  ;;  %v7230_v34 = vld [vmem:[#allocation2 + $0xb90] ss:$244 sps:$4 sm:$0xff]   ;;  %v7233_v35 = vld [vmem:[#allocation2 + $0xb98] ss:$244 sps:$4 sm:$0xff]  }
  0x2d   :  { %v7238_v36 = vld [vmem:[#allocation2 + $0x9ac] ss:$244 sps:$4 sm:$0xff]   ;;  %v7239_v40 = vld [vmem:[#allocation2 + $0x9b0] ss:$244 sps:$4 sm:$0xff]  }
  0x2f   :  { %3757 = vmatpush2.bf16.msra.mxu0 %v7155_v39  ;;  %3798 = vmatpush2.bf16.msra.mxu1 %v7156_v41  ;;  %v7236_v39 = vld [vmem:[#allocation2 + $0x9a8] ss:$244 sps:$4 sm:$0xff]   ;;  %v7244_v41 = vld [vmem:[#allocation2 + $0x7c4] ss:$244 sps:$4 sm:$0xff]  }
  0x30   :  { %3758 = vmatprep.subr.bf16.mxu0 %v7157_v42  ;;  %3799 = vmatprep.subr.bf16.mxu1 %v7159_v43  ;;  %v7247_v42 = vld [vmem:[#allocation2 + $0x7cc] ss:$244 sps:$4 sm:$0xff]  }
  0x31   :  { %v7242_v43 = vld [vmem:[#allocation2 + $0x7c0] ss:$244 sps:$4 sm:$0xff]  }
  0x33   :  { %3759 = vmatpush2.bf16.msra.mxu0 %v7161_v45  ;;  %3800 = vmatpush2.bf16.msra.mxu1 %v7162_v47  ;;  %v7250_v45 = vld [vmem:[#allocation2 + $0x5dc] ss:$244 sps:$4 sm:$0xff]   ;;  %v7248_v47 = vld [vmem:[#allocation2 + $0x5d8] ss:$244 sps:$4 sm:$0xff]  }
  0x34   :  { %3810 = vmatprep.subr.bf16.mxu0 %v7166_v49  ;;  %3851 = vmatprep.subr.bf16.mxu1 %v7169_v50  ;;  %v7256_v49 = vld [vmem:[#allocation2 + $0x3f4] ss:$244 sps:$4 sm:$0xff]   ;;  %v7259_v50 = vld [vmem:[#allocation2 + $0x3fc] ss:$244 sps:$4 sm:$0xff]  }
  0x36   :  { %3761 = vmatmul.mubr.bf16.vlgmr.msra.gmra.mxu0 %v8679_v52  ;;  %3802 = vmatmul.mubr.bf16.vlgmr.msra.gmra.mxu1 %v8679_v52 }
  0x37   :  { %3811 = vmatpush1.bf16.msra.mxu0 %v7164_v53  ;;  %3852 = vmatpush1.bf16.msra.mxu1 %v7167_v54  ;;  %v7254_v53 = vld [vmem:[#allocation2 + $0x3f0] ss:$244 sps:$4 sm:$0xff]   ;;  %v7257_v54 = vld [vmem:[#allocation2 + $0x3f8] ss:$244 sps:$4 sm:$0xff]  }
  0x38   :  { %3812 = vmatprep.subr.bf16.mxu0 %v7172_v55  ;;  %3853 = vmatprep.subr.bf16.mxu1 %v7175_v56  ;;  %v7262_v55 = vld [vmem:[#allocation2 + $0x20c] ss:$244 sps:$4 sm:$0xff]   ;;  %v7265_v56 = vld [vmem:[#allocation2 + $0x214] ss:$244 sps:$4 sm:$0xff]  }
  0x39   :  { %7039 = vmatprep.mubr.msk.bf16.mxu0 %vm3724_vm0, %v8677_v51  ;;  %7040 = vmatprep.mubr.msk.bf16.mxu1 %vm3724_vm0, %v8677_v51 }
  0x3b   :  { %3813 = vmatpush1.bf16.msra.mxu0 %v7170_v57  ;;  %3854 = vmatpush1.bf16.msra.mxu1 %v7173_v58  ;;  %v7260_v57 = vld [vmem:[#allocation2 + $0x208] ss:$244 sps:$4 sm:$0xff]   ;;  %v7263_v58 = vld [vmem:[#allocation2 + $0x210] ss:$244 sps:$4 sm:$0xff]  }
  0x3c   :  { %3814 = vmatprep.subr.bf16.mxu0 %v7178_v59  ;;  %3855 = vmatprep.subr.bf16.mxu1 %v7181_v60  ;;  %v7268_v59 = vld [vmem:[#allocation2 + $0x24] ss:$244 sps:$4 sm:$0xff]   ;;  %v7271_v60 = vld [vmem:[#allocation2 + $0x2c] ss:$244 sps:$4 sm:$0xff]  }
  0x3f   :  { %3815 = vmatpush1.bf16.msra.mxu0 %v7176_v61  ;;  %3856 = vmatpush1.bf16.msra.mxu1 %v7179_v62  ;;  %v7266_v61 = vld [vmem:[#allocation2 + $0x20] ss:$244 sps:$4 sm:$0xff]   ;;  %v7269_v62 = vld [vmem:[#allocation2 + $0x28] ss:$244 sps:$4 sm:$0xff]  }
  0x40   :  { %3816 = vmatprep.subr.bf16.mxu0 %v7184_v63  ;;  %3857 = vmatprep.subr.bf16.mxu1 %v7187_v0  ;;  %v7274_v63 = vld [vmem:[#allocation2 + $0x114c] ss:$244 sps:$4 sm:$0xff]   ;;  %v7277_v0 = vld [vmem:[#allocation2 + $0x1154] ss:$244 sps:$4 sm:$0xff]  }
  0x43   :  { %3817 = vmatpush1.bf16.msra.mxu0 %v7182_v1  ;;  %3858 = vmatpush1.bf16.msra.mxu1 %v7185_v2  ;;  %v7272_v1 = vld [vmem:[#allocation2 + $0x1148] ss:$244 sps:$4 sm:$0xff]   ;;  %v7275_v2 = vld [vmem:[#allocation2 + $0x1150] ss:$244 sps:$4 sm:$0xff]  }
  0x44   :  { %3818 = vmatprep.subr.bf16.mxu0 %v7190_v3  ;;  %3859 = vmatprep.subr.bf16.mxu1 %v7193_v4  ;;  %v7280_v3 = vld [vmem:[#allocation2 + $0xf64] ss:$244 sps:$4 sm:$0xff]   ;;  %v7283_v4 = vld [vmem:[#allocation2 + $0xf6c] ss:$244 sps:$4 sm:$0xff]  }
  0x47   :  { %3819 = vmatpush1.bf16.msra.mxu0 %v7188_v5  ;;  %3860 = vmatpush1.bf16.msra.mxu1 %v7191_v6  ;;  %v7278_v5 = vld [vmem:[#allocation2 + $0xf60] ss:$244 sps:$4 sm:$0xff]   ;;  %v7281_v6 = vld [vmem:[#allocation2 + $0xf68] ss:$244 sps:$4 sm:$0xff]  }
  0x48   :  { %3820 = vmatprep.subr.bf16.mxu0 %v7196_v7  ;;  %3861 = vmatprep.subr.bf16.mxu1 %v7199_v8  ;;  %v7286_v7 = vld [vmem:[#allocation2 + $0xd8c] ss:$244 sps:$4 sm:$0xff]   ;;  %v7289_v8 = vld [vmem:[#allocation2 + $0xd94] ss:$244 sps:$4 sm:$0xff]  }
  0x4b   :  { %3821 = vmatpush1.bf16.msra.mxu0 %v7194_v9  ;;  %3862 = vmatpush1.bf16.msra.mxu1 %v7197_v10  ;;  %v7284_v9 = vld [vmem:[#allocation2 + $0xd88] ss:$244 sps:$4 sm:$0xff]   ;;  %v7287_v10 = vld [vmem:[#allocation2 + $0xd90] ss:$244 sps:$4 sm:$0xff]  }
  0x4c   :  { %3822 = vmatprep.subr.bf16.mxu0 %v7202_v11  ;;  %3863 = vmatprep.subr.bf16.mxu1 %v7205_v12  ;;  %v7292_v11 = vld [vmem:[#allocation2 + $0xba4] ss:$244 sps:$4 sm:$0xff]   ;;  %v7295_v12 = vld [vmem:[#allocation2 + $0xbac] ss:$244 sps:$4 sm:$0xff]  }
  0x4f   :  { %3823 = vmatpush1.bf16.msra.mxu0 %v7200_v13  ;;  %3864 = vmatpush1.bf16.msra.mxu1 %v7203_v14  ;;  %v7290_v13 = vld [vmem:[#allocation2 + $0xba0] ss:$244 sps:$4 sm:$0xff]   ;;  %v7293_v14 = vld [vmem:[#allocation2 + $0xba8] ss:$244 sps:$4 sm:$0xff]  }
  0x50   :  { %3824 = vmatprep.subr.bf16.mxu0 %v7208_v15  ;;  %3865 = vmatprep.subr.bf16.mxu1 %v7211_v16  ;;  %v7298_v15 = vld [vmem:[#allocation2 + $0x9bc] ss:$244 sps:$4 sm:$0xff]   ;;  %v7301_v16 = vld [vmem:[#allocation2 + $0x9c4] ss:$244 sps:$4 sm:$0xff]  }
  0x53   :  { %3825 = vmatpush1.bf16.msra.mxu0 %v7206_v17  ;;  %3866 = vmatpush1.bf16.msra.mxu1 %v7209_v18  ;;  %v7296_v17 = vld [vmem:[#allocation2 + $0x9b8] ss:$244 sps:$4 sm:$0xff]   ;;  %v7299_v18 = vld [vmem:[#allocation2 + $0x9c0] ss:$244 sps:$4 sm:$0xff]  }
  0x54   :  { %3838 = vmatprep.subr.bf16.mxu0 %v7214_v19  ;;  %3879 = vmatprep.subr.bf16.mxu1 %v7217_v20  ;;  %v7304_v19 = vld [vmem:[#allocation2 + $0x7d4] ss:$244 sps:$4 sm:$0xff]   ;;  %v7307_v20 = vld [vmem:[#allocation2 + $0x7dc] ss:$244 sps:$4 sm:$0xff]  }
  0x57   :  { %3839 = vmatpush2.bf16.msra.mxu0 %v7212_v21  ;;  %3880 = vmatpush2.bf16.msra.mxu1 %v7215_v22  ;;  %v7302_v21 = vld [vmem:[#allocation2 + $0x7d0] ss:$244 sps:$4 sm:$0xff]   ;;  %v7305_v22 = vld [vmem:[#allocation2 + $0x7d8] ss:$244 sps:$4 sm:$0xff]  }
  0x58   :  { %3840 = vmatprep.subr.bf16.mxu0 %v7220_v23  ;;  %3881 = vmatprep.subr.bf16.mxu1 %v7223_v24  ;;  %v7310_v23 = vld [vmem:[#allocation2 + $0x5ec] ss:$244 sps:$4 sm:$0xff]   ;;  %v7313_v24 = vld [vmem:[#allocation2 + $0x5f4] ss:$244 sps:$4 sm:$0xff]  }
  0x5b   :  { %3841 = vmatpush2.bf16.msra.mxu0 %v7218_v25  ;;  %3882 = vmatpush2.bf16.msra.mxu1 %v7221_v26  ;;  %v7308_v25 = vld [vmem:[#allocation2 + $0x5e8] ss:$244 sps:$4 sm:$0xff]   ;;  %v7311_v26 = vld [vmem:[#allocation2 + $0x5f0] ss:$244 sps:$4 sm:$0xff]  }
  0x5c   :  { %3892 = vmatprep.subr.bf16.mxu0 %v7226_v27  ;;  %3933 = vmatprep.subr.bf16.mxu1 %v7229_v28  ;;  %v7316_v27 = vld [vmem:[#allocation2 + $0x404] ss:$244 sps:$4 sm:$0xff]   ;;  %v7319_v28 = vld [vmem:[#allocation2 + $0x40c] ss:$244 sps:$4 sm:$0xff]  }
  0x5e   :  { %3843 = vmatmul.mubr.bf16.vlgmr.msra.gmra.mxu0 %v8679_v52  ;;  %3884 = vmatmul.mubr.bf16.vlgmr.msra.gmra.mxu1 %v8679_v52 }
  0x5f   :  { %3893 = vmatpush1.bf16.msra.mxu0 %v7224_v29  ;;  %3934 = vmatpush1.bf16.msra.mxu1 %v7227_v30  ;;  %v7314_v29 = vld [vmem:[#allocation2 + $0x400] ss:$244 sps:$4 sm:$0xff]   ;;  %v7317_v30 = vld [vmem:[#allocation2 + $0x408] ss:$244 sps:$4 sm:$0xff]  }
  0x60   :  { %3894 = vmatprep.subr.bf16.mxu0 %v7232_v31  ;;  %3935 = vmatprep.subr.bf16.mxu1 %v7235_v32  ;;  %v7322_v31 = vld [vmem:[#allocation2 + $0x21c] ss:$244 sps:$4 sm:$0xff]   ;;  %v7325_v32 = vld [vmem:[#allocation2 + $0x224] ss:$244 sps:$4 sm:$0xff]  }
  0x61   :  { %7041 = vmatprep.mubr.msk.bf16.mxu0 %vm3724_vm0, %v8677_v51  ;;  %7042 = vmatprep.mubr.msk.bf16.mxu1 %vm3724_vm0, %v8677_v51 }
  0x63   :  { %3895 = vmatpush1.bf16.msra.mxu0 %v7230_v34  ;;  %3936 = vmatpush1.bf16.msra.mxu1 %v7233_v35  ;;  %v7320_v34 = vld [vmem:[#allocation2 + $0x218] ss:$244 sps:$4 sm:$0xff]   ;;  %v7323_v35 = vld [vmem:[#allocation2 + $0x220] ss:$244 sps:$4 sm:$0xff]  }
  0x64   :  { %3896 = vmatprep.subr.bf16.mxu0 %v7238_v36  ;;  %3937 = vmatprep.subr.bf16.mxu1 %v7241_v38  ;;  %v7328_v36 = vld [vmem:[#allocation2 + $0x34] ss:$244 sps:$4 sm:$0xff]   ;;  %v7331_v38 = vld [vmem:[#allocation2 + $0x3c] ss:$244 sps:$4 sm:$0xff]  }
  0x67   :  { %3897 = vmatpush1.bf16.msra.mxu0 %v7236_v39  ;;  %3938 = vmatpush1.bf16.msra.mxu1 %v7239_v40  ;;  %v7326_v39 = vld [vmem:[#allocation2 + $0x30] ss:$244 sps:$4 sm:$0xff]   ;;  %v7329_v40 = vld [vmem:[#allocation2 + $0x38] ss:$244 sps:$4 sm:$0xff]  }
  0x68   :  { %3898 = vmatprep.subr.bf16.mxu0 %v7244_v41  ;;  %3939 = vmatprep.subr.bf16.mxu1 %v7247_v42  ;;  %v7334_v41 = vld [vmem:[#allocation2 + $0x115c] ss:$244 sps:$4 sm:$0xff]   ;;  %v7337_v42 = vld [vmem:[#allocation2 + $0x1164] ss:$244 sps:$4 sm:$0xff]  }
  0x6b   :  { %3899 = vmatpush1.bf16.msra.mxu0 %v7242_v43  ;;  %3940 = vmatpush1.bf16.msra.mxu1 %v7245_v44  ;;  %v7332_v43 = vld [vmem:[#allocation2 + $0x1158] ss:$244 sps:$4 sm:$0xff]   ;;  %v7335_v44 = vld [vmem:[#allocation2 + $0x1160] ss:$244 sps:$4 sm:$0xff]  }
  0x6c   :  { %3900 = vmatprep.subr.bf16.mxu0 %v7250_v45  ;;  %3941 = vmatprep.subr.bf16.mxu1 %v7253_v46  ;;  %v7340_v45 = vld [vmem:[#allocation2 + $0xf74] ss:$244 sps:$4 sm:$0xff]   ;;  %v7343_v46 = vld [vmem:[#allocation2 + $0xf7c] ss:$244 sps:$4 sm:$0xff]  }
  0x6f   :  { %3901 = vmatpush1.bf16.msra.mxu0 %v7248_v47  ;;  %3942 = vmatpush1.bf16.msra.mxu1 %v7251_v48  ;;  %v7338_v47 = vld [vmem:[#allocation2 + $0xf70] ss:$244 sps:$4 sm:$0xff]   ;;  %v7341_v48 = vld [vmem:[#allocation2 + $0xf78] ss:$244 sps:$4 sm:$0xff]  }
  0x70   :  { %3902 = vmatprep.subr.bf16.mxu0 %v7256_v49  ;;  %3943 = vmatprep.subr.bf16.mxu1 %v7259_v50  ;;  %v7346_v49 = vld [vmem:[#allocation2 + $0xd9c] ss:$244 sps:$4 sm:$0xff]   ;;  %v7349_v50 = vld [vmem:[#allocation2 + $0xda4] ss:$244 sps:$4 sm:$0xff]  }
  0x73   :  { %3903 = vmatpush1.bf16.msra.mxu0 %v7254_v53  ;;  %3944 = vmatpush1.bf16.msra.mxu1 %v7257_v54  ;;  %v7344_v53 = vld [vmem:[#allocation2 + $0xd98] ss:$244 sps:$4 sm:$0xff]   ;;  %v7347_v54 = vld [vmem:[#allocation2 + $0xda0] ss:$244 sps:$4 sm:$0xff]  }
  0x74   :  { %3904 = vmatprep.subr.bf16.mxu0 %v7262_v55  ;;  %3945 = vmatprep.subr.bf16.mxu1 %v7265_v56  ;;  %v7352_v55 = vld [vmem:[#allocation2 + $0xbb4] ss:$244 sps:$4 sm:$0xff]   ;;  %v7355_v56 = vld [vmem:[#allocation2 + $0xbbc] ss:$244 sps:$4 sm:$0xff]  }
  0x77   :  { %3905 = vmatpush1.bf16.msra.mxu0 %v7260_v57  ;;  %3946 = vmatpush1.bf16.msra.mxu1 %v7263_v58  ;;  %v7350_v57 = vld [vmem:[#allocation2 + $0xbb0] ss:$244 sps:$4 sm:$0xff]   ;;  %v7353_v58 = vld [vmem:[#allocation2 + $0xbb8] ss:$244 sps:$4 sm:$0xff]  }
  0x78   :  { %3906 = vmatprep.subr.bf16.mxu0 %v7268_v59  ;;  %3947 = vmatprep.subr.bf16.mxu1 %v7271_v60  ;;  %v7358_v59 = vld [vmem:[#allocation2 + $0x9cc] ss:$244 sps:$4 sm:$0xff]   ;;  %v7361_v60 = vld [vmem:[#allocation2 + $0x9d4] ss:$244 sps:$4 sm:$0xff]  }
  0x7b   :  { %3907 = vmatpush1.bf16.msra.mxu0 %v7266_v61  ;;  %3948 = vmatpush1.bf16.msra.mxu1 %v7269_v62  ;;  %v7356_v61 = vld [vmem:[#allocation2 + $0x9c8] ss:$244 sps:$4 sm:$0xff]   ;;  %v7359_v62 = vld [vmem:[#allocation2 + $0x9d0] ss:$244 sps:$4 sm:$0xff]  }
  0x7c   :  { %3920 = vmatprep.subr.bf16.mxu0 %v7274_v63  ;;  %3961 = vmatprep.subr.bf16.mxu1 %v7277_v0  ;;  %v7364_v63 = vld [vmem:[#allocation2 + $0x7e4] ss:$244 sps:$4 sm:$0xff]   ;;  %v7367_v0 = vld [vmem:[#allocation2 + $0x7ec] ss:$244 sps:$4 sm:$0xff]  }
  0x7f   :  { %3921 = vmatpush2.bf16.msra.mxu0 %v7272_v1  ;;  %3962 = vmatpush2.bf16.msra.mxu1 %v7275_v2  ;;  %v7362_v1 = vld [vmem:[#allocation2 + $0x7e0] ss:$244 sps:$4 sm:$0xff]   ;;  %v7365_v2 = vld [vmem:[#allocation2 + $0x7e8] ss:$244 sps:$4 sm:$0xff]  }
  0x80   :  { %3922 = vmatprep.subr.bf16.mxu0 %v7280_v3  ;;  %3963 = vmatprep.subr.bf16.mxu1 %v7283_v4  ;;  %v7370_v3 = vld [vmem:[#allocation2 + $0x5fc] ss:$244 sps:$4 sm:$0xff]   ;;  %v7373_v4 = vld [vmem:[#allocation2 + $0x604] ss:$244 sps:$4 sm:$0xff]  }
  0x83   :  { %3923 = vmatpush2.bf16.msra.mxu0 %v7278_v5  ;;  %3964 = vmatpush2.bf16.msra.mxu1 %v7281_v6  ;;  %v7368_v5 = vld [vmem:[#allocation2 + $0x5f8] ss:$244 sps:$4 sm:$0xff]   ;;  %v7371_v6 = vld [vmem:[#allocation2 + $0x600] ss:$244 sps:$4 sm:$0xff]  }
  0x84   :  { %3974 = vmatprep.subr.bf16.mxu0 %v7286_v7  ;;  %4015 = vmatprep.subr.bf16.mxu1 %v7289_v8  ;;  %v7376_v7 = vld [vmem:[#allocation2 + $0x414] ss:$244 sps:$4 sm:$0xff]   ;;  %v7379_v8 = vld [vmem:[#allocation2 + $0x41c] ss:$244 sps:$4 sm:$0xff]  }
  0x86   :  { %3925 = vmatmul.mubr.bf16.vlgmr.msra.gmra.mxu0 %v8679_v52  ;;  %3966 = vmatmul.mubr.bf16.vlgmr.msra.gmra.mxu1 %v8679_v52 }
  0x87   :  { %3975 = vmatpush1.bf16.msra.mxu0 %v7284_v9  ;;  %4016 = vmatpush1.bf16.msra.mxu1 %v7287_v10  ;;  %v7374_v9 = vld [vmem:[#allocation2 + $0x410] ss:$244 sps:$4 sm:$0xff]   ;;  %v7377_v10 = vld [vmem:[#allocation2 + $0x418] ss:$244 sps:$4 sm:$0xff]  }
  0x88   :  { %3976 = vmatprep.subr.bf16.mxu0 %v7292_v11  ;;  %4017 = vmatprep.subr.bf16.mxu1 %v7295_v12  ;;  %v7382_v11 = vld [vmem:[#allocation2 + $0x22c] ss:$244 sps:$4 sm:$0xff]   ;;  %v7385_v12 = vld [vmem:[#allocation2 + $0x234] ss:$244 sps:$4 sm:$0xff]  }
  0x89   :  { %7043 = vmatprep.mubr.msk.bf16.mxu0 %vm3724_vm0, %v8677_v51  ;;  %7044 = vmatprep.mubr.msk.bf16.mxu1 %vm3724_vm0, %v8677_v51 }
  0x8b   :  { %3977 = vmatpush1.bf16.msra.mxu0 %v7290_v13  ;;  %4018 = vmatpush1.bf16.msra.mxu1 %v7293_v14  ;;  %v7380_v13 = vld [vmem:[#allocation2 + $0x228] ss:$244 sps:$4 sm:$0xff]   ;;  %v7383_v14 = vld [vmem:[#allocation2 + $0x230] ss:$244 sps:$4 sm:$0xff]  }
  0x8c   :  { %3978 = vmatprep.subr.bf16.mxu0 %v7298_v15  ;;  %4019 = vmatprep.subr.bf16.mxu1 %v7301_v16  ;;  %v7388_v15 = vld [vmem:[#allocation2 + $0x44] ss:$244 sps:$4 sm:$0xff]   ;;  %v7391_v16 = vld [vmem:[#allocation2 + $0x4c] ss:$244 sps:$4 sm:$0xff]  }
  0x8f   :  { %3979 = vmatpush1.bf16.msra.mxu0 %v7296_v17  ;;  %4020 = vmatpush1.bf16.msra.mxu1 %v7299_v18  ;;  %v7386_v17 = vld [vmem:[#allocation2 + $0x40] ss:$244 sps:$4 sm:$0xff]   ;;  %v7389_v18 = vld [vmem:[#allocation2 + $0x48] ss:$244 sps:$4 sm:$0xff]  }
  0x90   :  { %3980 = vmatprep.subr.bf16.mxu0 %v7304_v19  ;;  %4021 = vmatprep.subr.bf16.mxu1 %v7307_v20  ;;  %v7394_v19 = vld [vmem:[#allocation2 + $0x116c] ss:$244 sps:$4 sm:$0xff]   ;;  %v7397_v20 = vld [vmem:[#allocation2 + $0x1174] ss:$244 sps:$4 sm:$0xff]  }
  0x93   :  { %3981 = vmatpush1.bf16.msra.mxu0 %v7302_v21  ;;  %4022 = vmatpush1.bf16.msra.mxu1 %v7305_v22  ;;  %v7392_v21 = vld [vmem:[#allocation2 + $0x1168] ss:$244 sps:$4 sm:$0xff]   ;;  %v7395_v22 = vld [vmem:[#allocation2 + $0x1170] ss:$244 sps:$4 sm:$0xff]  }
  0x94   :  { %3982 = vmatprep.subr.bf16.mxu0 %v7310_v23  ;;  %4023 = vmatprep.subr.bf16.mxu1 %v7313_v24  ;;  %v7400_v23 = vld [vmem:[#allocation2 + $0xf84] ss:$244 sps:$4 sm:$0xff]   ;;  %v7403_v24 = vld [vmem:[#allocation2 + $0xf8c] ss:$244 sps:$4 sm:$0xff]  }
  0x97   :  { %3983 = vmatpush1.bf16.msra.mxu0 %v7308_v25  ;;  %4024 = vmatpush1.bf16.msra.mxu1 %v7311_v26  ;;  %v7398_v25 = vld [vmem:[#allocation2 + $0xf80] ss:$244 sps:$4 sm:$0xff]   ;;  %v7401_v26 = vld [vmem:[#allocation2 + $0xf88] ss:$244 sps:$4 sm:$0xff]  }
  0x98   :  { %3984 = vmatprep.subr.bf16.mxu0 %v7316_v27  ;;  %4025 = vmatprep.subr.bf16.mxu1 %v7319_v28  ;;  %v7406_v27 = vld [vmem:[#allocation2 + $0xdac] ss:$244 sps:$4 sm:$0xff]   ;;  %v7409_v28 = vld [vmem:[#allocation2 + $0xdb4] ss:$244 sps:$4 sm:$0xff]  }
  0x9b   :  { %3985 = vmatpush1.bf16.msra.mxu0 %v7314_v29  ;;  %4026 = vmatpush1.bf16.msra.mxu1 %v7317_v30  ;;  %v7404_v29 = vld [vmem:[#allocation2 + $0xda8] ss:$244 sps:$4 sm:$0xff]   ;;  %v7407_v30 = vld [vmem:[#allocation2 + $0xdb0] ss:$244 sps:$4 sm:$0xff]  }
  0x9c   :  { %3986 = vmatprep.subr.bf16.mxu0 %v7322_v31  ;;  %4027 = vmatprep.subr.bf16.mxu1 %v7325_v32  ;;  %v7412_v31 = vld [vmem:[#allocation2 + $0xbc4] ss:$244 sps:$4 sm:$0xff]   ;;  %v7415_v32 = vld [vmem:[#allocation2 + $0xbcc] ss:$244 sps:$4 sm:$0xff]  }
  0x9f   :  { %3987 = vmatpush1.bf16.msra.mxu0 %v7320_v34  ;;  %4028 = vmatpush1.bf16.msra.mxu1 %v7323_v35  ;;  %v7410_v34 = vld [vmem:[#allocation2 + $0xbc0] ss:$244 sps:$4 sm:$0xff]   ;;  %v7413_v35 = vld [vmem:[#allocation2 + $0xbc8] ss:$244 sps:$4 sm:$0xff]  }
  0xa0   :  { %3988 = vmatprep.subr.bf16.mxu0 %v7328_v36  ;;  %4029 = vmatprep.subr.bf16.mxu1 %v7331_v38  ;;  %v7418_v36 = vld [vmem:[#allocation2 + $0x9dc] ss:$244 sps:$4 sm:$0xff]   ;;  %v7421_v38 = vld [vmem:[#allocation2 + $0x9e4] ss:$244 sps:$4 sm:$0xff]  }
  0xa3   :  { %3989 = vmatpush1.bf16.msra.mxu0 %v7326_v39  ;;  %4030 = vmatpush1.bf16.msra.mxu1 %v7329_v40  ;;  %v7416_v39 = vld [vmem:[#allocation2 + $0x9d8] ss:$244 sps:$4 sm:$0xff]   ;;  %v7419_v40 = vld [vmem:[#allocation2 + $0x9e0] ss:$244 sps:$4 sm:$0xff]  }
  0xa4   :  { %4002 = vmatprep.subr.bf16.mxu0 %v7334_v41  ;;  %4043 = vmatprep.subr.bf16.mxu1 %v7337_v42  ;;  %v7424_v41 = vld [vmem:[#allocation2 + $0x7f4] ss:$244 sps:$4 sm:$0xff]   ;;  %v7427_v42 = vld [vmem:[#allocation2 + $0x7fc] ss:$244 sps:$4 sm:$0xff]  }
  0xa7   :  { %4003 = vmatpush2.bf16.msra.mxu0 %v7332_v43  ;;  %4044 = vmatpush2.bf16.msra.mxu1 %v7335_v44  ;;  %v7422_v43 = vld [vmem:[#allocation2 + $0x7f0] ss:$244 sps:$4 sm:$0xff]   ;;  %v7425_v44 = vld [vmem:[#allocation2 + $0x7f8] ss:$244 sps:$4 sm:$0xff]  }
  0xa8   :  { %4004 = vmatprep.subr.bf16.mxu0 %v7340_v45  ;;  %4045 = vmatprep.subr.bf16.mxu1 %v7343_v46  ;;  %v7430_v45 = vld [vmem:[#allocation2 + $0x60c] ss:$244 sps:$4 sm:$0xff]   ;;  %v7433_v46 = vld [vmem:[#allocation2 + $0x614] ss:$244 sps:$4 sm:$0xff]  }
  0xab   :  { %4005 = vmatpush2.bf16.msra.mxu0 %v7338_v47  ;;  %4046 = vmatpush2.bf16.msra.mxu1 %v7341_v48  ;;  %v7428_v47 = vld [vmem:[#allocation2 + $0x608] ss:$244 sps:$4 sm:$0xff]   ;;  %v7431_v48 = vld [vmem:[#allocation2 + $0x610] ss:$244 sps:$4 sm:$0xff]  }
  0xac   :  { %4056 = vmatprep.subr.bf16.mxu0 %v7346_v49  ;;  %4097 = vmatprep.subr.bf16.mxu1 %v7349_v50  ;;  %v7436_v49 = vld [vmem:[#allocation2 + $0x424] ss:$244 sps:$4 sm:$0xff]   ;;  %v7439_v50 = vld [vmem:[#allocation2 + $0x42c] ss:$244 sps:$4 sm:$0xff]  }
  0xae   :  { %4007 = vmatmul.mubr.bf16.vlgmr.msra.gmra.mxu0 %v8679_v52  ;;  %4048 = vmatmul.mubr.bf16.vlgmr.msra.gmra.mxu1 %v8679_v52 }
  0xaf   :  { %4057 = vmatpush1.bf16.msra.mxu0 %v7344_v53  ;;  %4098 = vmatpush1.bf16.msra.mxu1 %v7347_v54  ;;  %v7434_v53 = vld [vmem:[#allocation2 + $0x420] ss:$244 sps:$4 sm:$0xff]   ;;  %v7437_v54 = vld [vmem:[#allocation2 + $0x428] ss:$244 sps:$4 sm:$0xff]  }
  0xb0   :  { %4058 = vmatprep.subr.bf16.mxu0 %v7352_v55  ;;  %4099 = vmatprep.subr.bf16.mxu1 %v7355_v56  ;;  %v7442_v55 = vld [vmem:[#allocation2 + $0x23c] ss:$244 sps:$4 sm:$0xff]   ;;  %v7445_v56 = vld [vmem:[#allocation2 + $0x244] ss:$244 sps:$4 sm:$0xff]  }
  0xb1   :  { %7045 = vmatprep.mubr.msk.bf16.mxu0 %vm3724_vm0, %v8677_v51  ;;  %7046 = vmatprep.mubr.msk.bf16.mxu1 %vm3724_vm0, %v8677_v51 }
  0xb3   :  { %4059 = vmatpush1.bf16.msra.mxu0 %v7350_v57  ;;  %4100 = vmatpush1.bf16.msra.mxu1 %v7353_v58  ;;  %v7440_v57 = vld [vmem:[#allocation2 + $0x238] ss:$244 sps:$4 sm:$0xff]   ;;  %v7443_v58 = vld [vmem:[#allocation2 + $0x240] ss:$244 sps:$4 sm:$0xff]  }
  0xb4   :  { %4060 = vmatprep.subr.bf16.mxu0 %v7358_v59  ;;  %4101 = vmatprep.subr.bf16.mxu1 %v7361_v60  ;;  %v7448_v59 = vld [vmem:[#allocation2 + $0x54] ss:$244 sps:$4 sm:$0xff]   ;;  %v7451_v60 = vld [vmem:[#allocation2 + $0x5c] ss:$244 sps:$4 sm:$0xff]  }
  0xb7   :  { %4061 = vmatpush1.bf16.msra.mxu0 %v7356_v61  ;;  %4102 = vmatpush1.bf16.msra.mxu1 %v7359_v62  ;;  %v7446_v61 = vld [vmem:[#allocation2 + $0x50] ss:$244 sps:$4 sm:$0xff]   ;;  %v7449_v62 = vld [vmem:[#allocation2 + $0x58] ss:$244 sps:$4 sm:$0xff]  }
  0xb8   :  { %4062 = vmatprep.subr.bf16.mxu0 %v7364_v63  ;;  %4103 = vmatprep.subr.bf16.mxu1 %v7367_v0  ;;  %v7454_v63 = vld [vmem:[#allocation2 + $0x117c] ss:$244 sps:$4 sm:$0xff]   ;;  %v7457_v0 = vld [vmem:[#allocation2 + $0x1184] ss:$244 sps:$4 sm:$0xff]  }
  0xbb   :  { %4063 = vmatpush1.bf16.msra.mxu0 %v7362_v1  ;;  %4104 = vmatpush1.bf16.msra.mxu1 %v7365_v2  ;;  %v7452_v1 = vld [vmem:[#allocation2 + $0x1178] ss:$244 sps:$4 sm:$0xff]   ;;  %v7455_v2 = vld [vmem:[#allocation2 + $0x1180] ss:$244 sps:$4 sm:$0xff]  }
  0xbc   :  { %4064 = vmatprep.subr.bf16.mxu0 %v7370_v3  ;;  %4105 = vmatprep.subr.bf16.mxu1 %v7373_v4  ;;  %v7460_v3 = vld [vmem:[#allocation2 + $0xf94] ss:$244 sps:$4 sm:$0xff]   ;;  %v7463_v4 = vld [vmem:[#allocation2 + $0xf9c] ss:$244 sps:$4 sm:$0xff]  }
  0xbf   :  { %4065 = vmatpush1.bf16.msra.mxu0 %v7368_v5  ;;  %4106 = vmatpush1.bf16.msra.mxu1 %v7371_v6 }
  0xc0   :  { %4066 = vmatprep.subr.bf16.mxu0 %v7376_v7  ;;  %4107 = vmatprep.subr.bf16.mxu1 %v7379_v8  ;;  %v7458_v7 = vld [vmem:[#allocation2 + $0xf90] ss:$244 sps:$4 sm:$0xff]   ;;  %v7461_v8 = vld [vmem:[#allocation2 + $0xf98] ss:$244 sps:$4 sm:$0xff]  }
  0xc3   :  { %4067 = vmatpush1.bf16.msra.mxu0 %v7374_v9  ;;  %4108 = vmatpush1.bf16.msra.mxu1 %v7377_v10 }
  0xc4   :  { %4068 = vmatprep.subr.bf16.mxu0 %v7382_v11  ;;  %4109 = vmatprep.subr.bf16.mxu1 %v7385_v12  ;;  %v7466_v11 = vld [vmem:[#allocation2 + $0xdbc] ss:$244 sps:$4 sm:$0xff]   ;;  %v7469_v12 = vld [vmem:[#allocation2 + $0xdc4] ss:$244 sps:$4 sm:$0xff]  }
  0xc7   :  { %4069 = vmatpush1.bf16.msra.mxu0 %v7380_v13  ;;  %4110 = vmatpush1.bf16.msra.mxu1 %v7383_v14 }
  0xc8   :  { %4070 = vmatprep.subr.bf16.mxu0 %v7388_v15  ;;  %4111 = vmatprep.subr.bf16.mxu1 %v7391_v16  ;;  %v7464_v15 = vld [vmem:[#allocation2 + $0xdb8] ss:$244 sps:$4 sm:$0xff]   ;;  %v7467_v16 = vld [vmem:[#allocation2 + $0xdc0] ss:$244 sps:$4 sm:$0xff]  }
  0xcb   :  { %4071 = vmatpush1.bf16.msra.mxu0 %v7386_v17  ;;  %4112 = vmatpush1.bf16.msra.mxu1 %v7389_v18 }
  0xcc   :  { %4084 = vmatprep.subr.bf16.mxu0 %v7394_v19  ;;  %4125 = vmatprep.subr.bf16.mxu1 %v7397_v20  ;;  %v7472_v19 = vld [vmem:[#allocation2 + $0xbd4] ss:$244 sps:$4 sm:$0xff]   ;;  %v7475_v20 = vld [vmem:[#allocation2 + $0xbdc] ss:$244 sps:$4 sm:$0xff]  }
  0xcf   :  { %4085 = vmatpush2.bf16.msra.mxu0 %v7392_v21  ;;  %4126 = vmatpush2.bf16.msra.mxu1 %v7395_v22  ;;  %v7470_v21 = vld [vmem:[#allocation2 + $0xbd0] ss:$244 sps:$4 sm:$0xff]   ;;  %v7473_v22 = vld [vmem:[#allocation2 + $0xbd8] ss:$244 sps:$4 sm:$0xff]  }
  0xd0   :  { %4086 = vmatprep.subr.bf16.mxu0 %v7400_v23  ;;  %4127 = vmatprep.subr.bf16.mxu1 %v7403_v24  ;;  %v7478_v23 = vld [vmem:[#allocation2 + $0x9ec] ss:$244 sps:$4 sm:$0xff]   ;;  %v7481_v24 = vld [vmem:[#allocation2 + $0x9f4] ss:$244 sps:$4 sm:$0xff]  }
  0xd3   :  { %4087 = vmatpush2.bf16.msra.mxu0 %v7398_v25  ;;  %4128 = vmatpush2.bf16.msra.mxu1 %v7401_v26  ;;  %v7476_v25 = vld [vmem:[#allocation2 + $0x9e8] ss:$244 sps:$4 sm:$0xff]   ;;  %v7479_v26 = vld [vmem:[#allocation2 + $0x9f0] ss:$244 sps:$4 sm:$0xff]  }
  0xd4   :  { %4138 = vmatprep.subr.bf16.mxu0 %v7406_v27  ;;  %4179 = vmatprep.subr.bf16.mxu1 %v7409_v28  ;;  %v7484_v27 = vld [vmem:[#allocation2 + $0x804] ss:$244 sps:$4 sm:$0xff]   ;;  %v7487_v28 = vld [vmem:[#allocation2 + $0x80c] ss:$244 sps:$4 sm:$0xff]  }
  0xd6   :  { %4089 = vmatmul.mubr.bf16.vlgmr.msra.gmra.mxu0 %v8679_v52  ;;  %4130 = vmatmul.mubr.bf16.vlgmr.msra.gmra.mxu1 %v8679_v52 }
  0xd7   :  { %4139 = vmatpush1.bf16.msra.mxu0 %v7404_v29  ;;  %4180 = vmatpush1.bf16.msra.mxu1 %v7407_v30  ;;  %v7482_v29 = vld [vmem:[#allocation2 + $0x800] ss:$244 sps:$4 sm:$0xff]   ;;  %v7485_v30 = vld [vmem:[#allocation2 + $0x808] ss:$244 sps:$4 sm:$0xff]  }
  0xd8   :  { %4140 = vmatprep.subr.bf16.mxu0 %v7412_v31  ;;  %4181 = vmatprep.subr.bf16.mxu1 %v7415_v32  ;;  %v7490_v31 = vld [vmem:[#allocation2 + $0x61c] ss:$244 sps:$4 sm:$0xff]   ;;  %v7493_v32 = vld [vmem:[#allocation2 + $0x624] ss:$244 sps:$4 sm:$0xff]  }
  0xd9   :  { %7047 = vmatprep.mubr.msk.bf16.mxu0 %vm3724_vm0, %v8677_v51  ;;  %7048 = vmatprep.mubr.msk.bf16.mxu1 %vm3724_vm0, %v8677_v51 }
  0xdb   :  { %4141 = vmatpush1.bf16.msra.mxu0 %v7410_v34  ;;  %4182 = vmatpush1.bf16.msra.mxu1 %v7413_v35  ;;  %v7488_v34 = vld [vmem:[#allocation2 + $0x618] ss:$244 sps:$4 sm:$0xff]   ;;  %v7491_v35 = vld [vmem:[#allocation2 + $0x620] ss:$244 sps:$4 sm:$0xff]  }
  0xdc   :  { %4142 = vmatprep.subr.bf16.mxu0 %v7418_v36  ;;  %4183 = vmatprep.subr.bf16.mxu1 %v7421_v38  ;;  %v7496_v36 = vld [vmem:[#allocation2 + $0x434] ss:$244 sps:$4 sm:$0xff]   ;;  %v7499_v38 = vld [vmem:[#allocation2 + $0x43c] ss:$244 sps:$4 sm:$0xff]  }
  0xdf   :  { %4143 = vmatpush1.bf16.msra.mxu0 %v7416_v39  ;;  %4184 = vmatpush1.bf16.msra.mxu1 %v7419_v40  ;;  %v7494_v39 = vld [vmem:[#allocation2 + $0x430] ss:$244 sps:$4 sm:$0xff]   ;;  %v7497_v40 = vld [vmem:[#allocation2 + $0x438] ss:$244 sps:$4 sm:$0xff]  }
  0xe0   :  { %4144 = vmatprep.subr.bf16.mxu0 %v7424_v41  ;;  %4185 = vmatprep.subr.bf16.mxu1 %v7427_v42  ;;  %v7502_v41 = vld [vmem:[#allocation2 + $0x24c] ss:$244 sps:$4 sm:$0xff]   ;;  %v7505_v42 = vld [vmem:[#allocation2 + $0x254] ss:$244 sps:$4 sm:$0xff]  }
  0xe3   :  { %4145 = vmatpush1.bf16.msra.mxu0 %v7422_v43  ;;  %4186 = vmatpush1.bf16.msra.mxu1 %v7425_v44  ;;  %v7500_v43 = vld [vmem:[#allocation2 + $0x248] ss:$244 sps:$4 sm:$0xff]   ;;  %v7503_v44 = vld [vmem:[#allocation2 + $0x250] ss:$244 sps:$4 sm:$0xff]  }
  0xe4   :  { %4146 = vmatprep.subr.bf16.mxu0 %v7430_v45  ;;  %4187 = vmatprep.subr.bf16.mxu1 %v7433_v46  ;;  %v7508_v45 = vld [vmem:[#allocation2 + $0x64] ss:$244 sps:$4 sm:$0xff]   ;;  %v7511_v46 = vld [vmem:[#allocation2 + $0x6c] ss:$244 sps:$4 sm:$0xff]  }
  0xe7   :  { %4147 = vmatpush1.bf16.msra.mxu0 %v7428_v47  ;;  %4188 = vmatpush1.bf16.msra.mxu1 %v7431_v48  ;;  %v7506_v47 = vld [vmem:[#allocation2 + $0x60] ss:$244 sps:$4 sm:$0xff]   ;;  %v7509_v48 = vld [vmem:[#allocation2 + $0x68] ss:$244 sps:$4 sm:$0xff]  }
  0xe8   :  { %4148 = vmatprep.subr.bf16.mxu0 %v7436_v49  ;;  %4189 = vmatprep.subr.bf16.mxu1 %v7439_v50  ;;  %v7514_v49 = vld [vmem:[#allocation2 + $0x118c] ss:$244 sps:$4 sm:$0xff]   ;;  %v7517_v50 = vld [vmem:[#allocation2 + $0x1194] ss:$244 sps:$4 sm:$0xff]  }
  0xeb   :  { %4149 = vmatpush1.bf16.msra.mxu0 %v7434_v53  ;;  %4190 = vmatpush1.bf16.msra.mxu1 %v7437_v54  ;;  %v7512_v53 = vld [vmem:[#allocation2 + $0x1188] ss:$244 sps:$4 sm:$0xff]   ;;  %v7515_v54 = vld [vmem:[#allocation2 + $0x1190] ss:$244 sps:$4 sm:$0xff]  }
  0xec   :  { %4150 = vmatprep.subr.bf16.mxu0 %v7442_v55  ;;  %4191 = vmatprep.subr.bf16.mxu1 %v7445_v56  ;;  %v7520_v55 = vld [vmem:[#allocation2 + $0xfa4] ss:$244 sps:$4 sm:$0xff]   ;;  %v7523_v56 = vld [vmem:[#allocation2 + $0xfac] ss:$244 sps:$4 sm:$0xff]  }
  0xef   :  { %4151 = vmatpush1.bf16.msra.mxu0 %v7440_v57  ;;  %4192 = vmatpush1.bf16.msra.mxu1 %v7443_v58 }
  0xf0   :  { %4152 = vmatprep.subr.bf16.mxu0 %v7448_v59  ;;  %4193 = vmatprep.subr.bf16.mxu1 %v7451_v60  ;;  %v7518_v59 = vld [vmem:[#allocation2 + $0xfa0] ss:$244 sps:$4 sm:$0xff]   ;;  %v7521_v60 = vld [vmem:[#allocation2 + $0xfa8] ss:$244 sps:$4 sm:$0xff]  }
  0xf3   :  { %4153 = vmatpush1.bf16.msra.mxu0 %v7446_v61  ;;  %4194 = vmatpush1.bf16.msra.mxu1 %v7449_v62 }
  0xf4   :  { %4166 = vmatprep.subr.bf16.mxu0 %v7454_v63  ;;  %4207 = vmatprep.subr.bf16.mxu1 %v7457_v0  ;;  %v7526_v63 = vld [vmem:[#allocation2 + $0xdcc] ss:$244 sps:$4 sm:$0xff]   ;;  %v7529_v0 = vld [vmem:[#allocation2 + $0xdd4] ss:$244 sps:$4 sm:$0xff]  }
  0xf6   :  { %v8715_v5 = vpop.f32.mrf.mxu0  ;;  %v8717_v6 = vpop.f32.mrf.mxu1 }
  0xf7   :  { %4167 = vmatpush2.bf16.msra.mxu0 %v7452_v1  ;;  %4208 = vmatpush2.bf16.msra.mxu1 %v7455_v2 }
  0xf8   :  { %v8719_v9 = vpop.f32.mrf.mxu0  ;;  %v8721_v10 = vpop.f32.mrf.mxu1  ;;  %4168 = vmatprep.subr.bf16.mxu0 %v7460_v3  ;;  %4209 = vmatprep.subr.bf16.mxu1 %v7463_v4  ;;  %v7524_v3 = vld [vmem:[#allocation2 + $0xdc8] ss:$244 sps:$4 sm:$0xff]   ;;  %v7527_v4 = vld [vmem:[#allocation2 + $0xdd0] ss:$244 sps:$4 sm:$0xff]  }
  0xfa   :  { %v3766_v13 = vpop.f32.mrf.mxu0  ;;  %v3807_v14 = vpop.f32.mrf.mxu1 }
  0xfb   :  { %4169 = vmatpush2.bf16.msra.mxu0 %v7458_v7  ;;  %4210 = vmatpush2.bf16.msra.mxu1 %v7461_v8  ;;  %v7530_v13 = vld [vmem:[#allocation2 + $0xbe0] ss:$244 sps:$4 sm:$0xff]   ;;  %v7533_v14 = vld [vmem:[#allocation2 + $0xbe8] ss:$244 sps:$4 sm:$0xff]  }
  0xfc   :  { %v3767_v17 = vpop.f32.mrf.mxu0  ;;  %v3808_v18 = vpop.f32.mrf.mxu1  ;;  %4220 = vmatprep.subr.bf16.mxu0 %v7466_v11  ;;  %4261 = vmatprep.subr.bf16.mxu1 %v7469_v12  ;;  %v7532_v11 = vld [vmem:[#allocation2 + $0xbe4] ss:$244 sps:$4 sm:$0xff]   ;;  %v7535_v12 = vld [vmem:[#allocation2 + $0xbec] ss:$244 sps:$4 sm:$0xff]  }
  0xfd   :  { %v7536_v17 = vld [vmem:[#allocation2 + $0x9f8] ss:$244 sps:$4 sm:$0xff]   ;;  %v7539_v18 = vld [vmem:[#allocation2 + $0xa00] ss:$244 sps:$4 sm:$0xff]  }
  0xfe   :  { %4171 = vmatmul.mubr.bf16.vlgmr.msra.gmra.mxu0 %v8679_v52  ;;  %4212 = vmatmul.mubr.bf16.vlgmr.msra.gmra.mxu1 %v8679_v52 }
  0xff   :  { %4221 = vmatpush1.bf16.msra.mxu0 %v7464_v15  ;;  %4262 = vmatpush1.bf16.msra.mxu1 %v7467_v16  ;;  %v7538_v15 = vld [vmem:[#allocation2 + $0x9fc] ss:$244 sps:$4 sm:$0xff]   ;;  %v7541_v16 = vld [vmem:[#allocation2 + $0xa04] ss:$244 sps:$4 sm:$0xff]  }
 0x100   :  { %4222 = vmatprep.subr.bf16.mxu0 %v7472_v19  ;;  %4263 = vmatprep.subr.bf16.mxu1 %v7475_v20  ;;  %v7544_v19 = vld [vmem:[#allocation2 + $0x814] ss:$244 sps:$4 sm:$0xff]   ;;  %v7547_v20 = vld [vmem:[#allocation2 + $0x81c] ss:$244 sps:$4 sm:$0xff]  }
 0x101   :  { %7049 = vmatprep.mubr.msk.bf16.mxu0 %vm3724_vm0, %v8677_v51  ;;  %7050 = vmatprep.mubr.msk.bf16.mxu1 %vm3724_vm0, %v8677_v51 }
 0x103   :  { %4223 = vmatpush1.bf16.msra.mxu0 %v7470_v21  ;;  %4264 = vmatpush1.bf16.msra.mxu1 %v7473_v22  ;;  %v7542_v21 = vld [vmem:[#allocation2 + $0x810] ss:$244 sps:$4 sm:$0xff]   ;;  %v7545_v22 = vld [vmem:[#allocation2 + $0x818] ss:$244 sps:$4 sm:$0xff]  }
 0x104   :  { %4224 = vmatprep.subr.bf16.mxu0 %v7478_v23  ;;  %4265 = vmatprep.subr.bf16.mxu1 %v7481_v24  ;;  %v7550_v23 = vld [vmem:[#allocation2 + $0x62c] ss:$244 sps:$4 sm:$0xff]   ;;  %v7553_v24 = vld [vmem:[#allocation2 + $0x634] ss:$244 sps:$4 sm:$0xff]  }
 0x107   :  { %4225 = vmatpush1.bf16.msra.mxu0 %v7476_v25  ;;  %4266 = vmatpush1.bf16.msra.mxu1 %v7479_v26  ;;  %v7548_v25 = vld [vmem:[#allocation2 + $0x628] ss:$244 sps:$4 sm:$0xff]   ;;  %v7551_v26 = vld [vmem:[#allocation2 + $0x630] ss:$244 sps:$4 sm:$0xff]  }
 0x108   :  { %4226 = vmatprep.subr.bf16.mxu0 %v7484_v27  ;;  %4267 = vmatprep.subr.bf16.mxu1 %v7487_v28  ;;  %v7556_v27 = vld [vmem:[#allocation2 + $0x444] ss:$244 sps:$4 sm:$0xff]   ;;  %v7559_v28 = vld [vmem:[#allocation2 + $0x44c] ss:$244 sps:$4 sm:$0xff]  }
 0x10b   :  { %4227 = vmatpush1.bf16.msra.mxu0 %v7482_v29  ;;  %4268 = vmatpush1.bf16.msra.mxu1 %v7485_v30  ;;  %v7554_v29 = vld [vmem:[#allocation2 + $0x440] ss:$244 sps:$4 sm:$0xff]   ;;  %v7557_v30 = vld [vmem:[#allocation2 + $0x448] ss:$244 sps:$4 sm:$0xff]  }
 0x10c   :  { %4228 = vmatprep.subr.bf16.mxu0 %v7490_v31  ;;  %4269 = vmatprep.subr.bf16.mxu1 %v7493_v32  ;;  %v7562_v31 = vld [vmem:[#allocation2 + $0x25c] ss:$244 sps:$4 sm:$0xff]   ;;  %v7565_v32 = vld [vmem:[#allocation2 + $0x264] ss:$244 sps:$4 sm:$0xff]  }
 0x10f   :  { %4229 = vmatpush1.bf16.msra.mxu0 %v7488_v34  ;;  %4270 = vmatpush1.bf16.msra.mxu1 %v7491_v35  ;;  %v7560_v34 = vld [vmem:[#allocation2 + $0x258] ss:$244 sps:$4 sm:$0xff]   ;;  %v7563_v35 = vld [vmem:[#allocation2 + $0x260] ss:$244 sps:$4 sm:$0xff]  }
 0x110   :  { %4230 = vmatprep.subr.bf16.mxu0 %v7496_v36  ;;  %4271 = vmatprep.subr.bf16.mxu1 %v7499_v38  ;;  %v7568_v36 = vld [vmem:[#allocation2 + $0x74] ss:$244 sps:$4 sm:$0xff]   ;;  %v7571_v38 = vld [vmem:[#allocation2 + $0x7c] ss:$244 sps:$4 sm:$0xff]  }
 0x113   :  { %4231 = vmatpush1.bf16.msra.mxu0 %v7494_v39  ;;  %4272 = vmatpush1.bf16.msra.mxu1 %v7497_v40  ;;  %v7566_v39 = vld [vmem:[#allocation2 + $0x70] ss:$244 sps:$4 sm:$0xff]   ;;  %v7569_v40 = vld [vmem:[#allocation2 + $0x78] ss:$244 sps:$4 sm:$0xff]  }
 0x114   :  { %4232 = vmatprep.subr.bf16.mxu0 %v7502_v41  ;;  %4273 = vmatprep.subr.bf16.mxu1 %v7505_v42  ;;  %v7574_v41 = vld [vmem:[#allocation2 + $0x119c] ss:$244 sps:$4 sm:$0xff]   ;;  %v7577_v42 = vld [vmem:[#allocation2 + $0x11a4] ss:$244 sps:$4 sm:$0xff]  }
 0x117   :  { %4233 = vmatpush1.bf16.msra.mxu0 %v7500_v43  ;;  %4274 = vmatpush1.bf16.msra.mxu1 %v7503_v44  ;;  %v7572_v43 = vld [vmem:[#allocation2 + $0x1198] ss:$244 sps:$4 sm:$0xff]   ;;  %v7575_v44 = vld [vmem:[#allocation2 + $0x11a0] ss:$244 sps:$4 sm:$0xff]  }
 0x118   :  { %4234 = vmatprep.subr.bf16.mxu0 %v7508_v45  ;;  %4275 = vmatprep.subr.bf16.mxu1 %v7511_v46  ;;  %v7580_v45 = vld [vmem:[#allocation2 + $0xfb4] ss:$244 sps:$4 sm:$0xff]   ;;  %v7583_v46 = vld [vmem:[#allocation2 + $0xfbc] ss:$244 sps:$4 sm:$0xff]  }
 0x11b   :  { %4235 = vmatpush1.bf16.msra.mxu0 %v7506_v47  ;;  %4276 = vmatpush1.bf16.msra.mxu1 %v7509_v48 }
 0x11c   :  { %4248 = vmatprep.subr.bf16.mxu0 %v7514_v49  ;;  %4289 = vmatprep.subr.bf16.mxu1 %v7517_v50  ;;  %v7578_v49 = vld [vmem:[#allocation2 + $0xfb0] ss:$244 sps:$4 sm:$0xff]   ;;  %v7581_v50 = vld [vmem:[#allocation2 + $0xfb8] ss:$244 sps:$4 sm:$0xff]  }
 0x11e   :  { %v8729_v57 = vpop.f32.mrf.mxu0  ;;  %v8731_v58 = vpop.f32.mrf.mxu1 }
 0x11f   :  { %4249 = vmatpush2.bf16.msra.mxu0 %v7512_v53  ;;  %4290 = vmatpush2.bf16.msra.mxu1 %v7515_v54 }
 0x120   :  { %v8733_v61 = vpop.f32.mrf.mxu0  ;;  %v8735_v62 = vpop.f32.mrf.mxu1  ;;  %4250 = vmatprep.subr.bf16.mxu0 %v7520_v55  ;;  %4291 = vmatprep.subr.bf16.mxu1 %v7523_v56  ;;  %v7586_v55 = vld [vmem:[#allocation2 + $0xddc] ss:$244 sps:$4 sm:$0xff]   ;;  %v7589_v56 = vld [vmem:[#allocation2 + $0xde4] ss:$244 sps:$4 sm:$0xff]  }
 0x122   :  { %v3848_v1 = vpop.f32.mrf.mxu0  ;;  %v3889_v2 = vpop.f32.mrf.mxu1 }
 0x123   :  { %4251 = vmatpush2.bf16.msra.mxu0 %v7518_v59  ;;  %4292 = vmatpush2.bf16.msra.mxu1 %v7521_v60 }
 0x124   :  { %v3849_v7 = vpop.f32.mrf.mxu0  ;;  %v3890_v8 = vpop.f32.mrf.mxu1  ;;  %4302 = vmatprep.subr.bf16.mxu0 %v7526_v63  ;;  %4343 = vmatprep.subr.bf16.mxu1 %v7529_v0  ;;  %v7584_v63 = vld [vmem:[#allocation2 + $0xdd8] ss:$244 sps:$4 sm:$0xff]   ;;  %v7587_v0 = vld [vmem:[#allocation2 + $0xde0] ss:$244 sps:$4 sm:$0xff]  }
 0x125   :  { %v7590_v7 = vld [vmem:[#allocation2 + $0xbf0] ss:$244 sps:$4 sm:$0xff]   ;;  %v7593_v8 = vld [vmem:[#allocation2 + $0xbf8] ss:$244 sps:$4 sm:$0xff]  }
 0x126   :  { %4253 = vmatmul.mubr.bf16.vlgmr.msra.gmra.mxu0 %v8679_v52  ;;  %4294 = vmatmul.mubr.bf16.vlgmr.msra.gmra.mxu1 %v8679_v52 }
 0x127   :  { %4303 = vmatpush1.bf16.msra.mxu0 %v7524_v3  ;;  %4344 = vmatpush1.bf16.msra.mxu1 %v7527_v4  ;;  %v7592_v3 = vld [vmem:[#allocation2 + $0xbf4] ss:$244 sps:$4 sm:$0xff]   ;;  %v7595_v4 = vld [vmem:[#allocation2 + $0xbfc] ss:$244 sps:$4 sm:$0xff]  }
 0x128   :  { %4304 = vmatprep.subr.bf16.mxu0 %v7532_v11  ;;  %4345 = vmatprep.subr.bf16.mxu1 %v7535_v12  ;;  %v7598_v11 = vld [vmem:[#allocation2 + $0xa0c] ss:$244 sps:$4 sm:$0xff]   ;;  %v7601_v12 = vld [vmem:[#allocation2 + $0xa14] ss:$244 sps:$4 sm:$0xff]  }
 0x129   :  { %7051 = vmatprep.mubr.msk.bf16.mxu0 %vm3724_vm0, %v8677_v51  ;;  %7052 = vmatprep.mubr.msk.bf16.mxu1 %vm3724_vm0, %v8677_v51 }
 0x12b   :  { %4305 = vmatpush1.bf16.msra.mxu0 %v7530_v13  ;;  %4346 = vmatpush1.bf16.msra.mxu1 %v7533_v14  ;;  %v7596_v13 = vld [vmem:[#allocation2 + $0xa08] ss:$244 sps:$4 sm:$0xff]   ;;  %v7599_v14 = vld [vmem:[#allocation2 + $0xa10] ss:$244 sps:$4 sm:$0xff]  }
 0x12c   :  { %4306 = vmatprep.subr.bf16.mxu0 %v7538_v15  ;;  %4347 = vmatprep.subr.bf16.mxu1 %v7541_v16  ;;  %v7604_v15 = vld [vmem:[#allocation2 + $0x824] ss:$244 sps:$4 sm:$0xff]   ;;  %v7607_v16 = vld [vmem:[#allocation2 + $0x82c] ss:$244 sps:$4 sm:$0xff]  }
 0x12f   :  { %4307 = vmatpush1.bf16.msra.mxu0 %v7536_v17  ;;  %4348 = vmatpush1.bf16.msra.mxu1 %v7539_v18  ;;  %v7602_v17 = vld [vmem:[#allocation2 + $0x820] ss:$244 sps:$4 sm:$0xff]   ;;  %v7605_v18 = vld [vmem:[#allocation2 + $0x828] ss:$244 sps:$4 sm:$0xff]  }
 0x130   :  { %4308 = vmatprep.subr.bf16.mxu0 %v7544_v19  ;;  %4349 = vmatprep.subr.bf16.mxu1 %v7547_v20  ;;  %v7610_v19 = vld [vmem:[#allocation2 + $0x63c] ss:$244 sps:$4 sm:$0xff]   ;;  %v7613_v20 = vld [vmem:[#allocation2 + $0x644] ss:$244 sps:$4 sm:$0xff]  }
 0x133   :  { %4309 = vmatpush1.bf16.msra.mxu0 %v7542_v21  ;;  %4350 = vmatpush1.bf16.msra.mxu1 %v7545_v22  ;;  %v7608_v21 = vld [vmem:[#allocation2 + $0x638] ss:$244 sps:$4 sm:$0xff]   ;;  %v7611_v22 = vld [vmem:[#allocation2 + $0x640] ss:$244 sps:$4 sm:$0xff]  }
 0x134   :  { %4310 = vmatprep.subr.bf16.mxu0 %v7550_v23  ;;  %4351 = vmatprep.subr.bf16.mxu1 %v7553_v24  ;;  %v7616_v23 = vld [vmem:[#allocation2 + $0x454] ss:$244 sps:$4 sm:$0xff]   ;;  %v7619_v24 = vld [vmem:[#allocation2 + $0x45c] ss:$244 sps:$4 sm:$0xff]  }
 0x137   :  { %4311 = vmatpush1.bf16.msra.mxu0 %v7548_v25  ;;  %4352 = vmatpush1.bf16.msra.mxu1 %v7551_v26  ;;  %v7614_v25 = vld [vmem:[#allocation2 + $0x450] ss:$244 sps:$4 sm:$0xff]   ;;  %v7617_v26 = vld [vmem:[#allocation2 + $0x458] ss:$244 sps:$4 sm:$0xff]  }
 0x138   :  { %4312 = vmatprep.subr.bf16.mxu0 %v7556_v27  ;;  %4353 = vmatprep.subr.bf16.mxu1 %v7559_v28  ;;  %v7622_v27 = vld [vmem:[#allocation2 + $0x26c] ss:$244 sps:$4 sm:$0xff]   ;;  %v7625_v28 = vld [vmem:[#allocation2 + $0x274] ss:$244 sps:$4 sm:$0xff]  }
 0x13b   :  { %4313 = vmatpush1.bf16.msra.mxu0 %v7554_v29  ;;  %4354 = vmatpush1.bf16.msra.mxu1 %v7557_v30  ;;  %v7620_v29 = vld [vmem:[#allocation2 + $0x268] ss:$244 sps:$4 sm:$0xff]   ;;  %v7623_v30 = vld [vmem:[#allocation2 + $0x270] ss:$244 sps:$4 sm:$0xff]  }
 0x13c   :  { %4314 = vmatprep.subr.bf16.mxu0 %v7562_v31  ;;  %4355 = vmatprep.subr.bf16.mxu1 %v7565_v32  ;;  %v7628_v31 = vld [vmem:[#allocation2 + $0x84] ss:$244 sps:$4 sm:$0xff]   ;;  %v7631_v32 = vld [vmem:[#allocation2 + $0x8c] ss:$244 sps:$4 sm:$0xff]  }
 0x13f   :  { %4315 = vmatpush1.bf16.msra.mxu0 %v7560_v34  ;;  %4356 = vmatpush1.bf16.msra.mxu1 %v7563_v35  ;;  %v7626_v34 = vld [vmem:[#allocation2 + $0x80] ss:$244 sps:$4 sm:$0xff]   ;;  %v7629_v35 = vld [vmem:[#allocation2 + $0x88] ss:$244 sps:$4 sm:$0xff]  }
 0x140   :  { %4316 = vmatprep.subr.bf16.mxu0 %v7568_v36  ;;  %4357 = vmatprep.subr.bf16.mxu1 %v7571_v38  ;;  %v7634_v36 = vld [vmem:[#allocation2 + $0x11ac] ss:$244 sps:$4 sm:$0xff]   ;;  %v7637_v38 = vld [vmem:[#allocation2 + $0x11b4] ss:$244 sps:$4 sm:$0xff]  }
 0x143   :  { %4317 = vmatpush1.bf16.msra.mxu0 %v7566_v39  ;;  %4358 = vmatpush1.bf16.msra.mxu1 %v7569_v40  ;;  %v7632_v39 = vld [vmem:[#allocation2 + $0x11a8] ss:$244 sps:$4 sm:$0xff]   ;;  %v7635_v40 = vld [vmem:[#allocation2 + $0x11b0] ss:$244 sps:$4 sm:$0xff]  }
 0x144   :  { %4330 = vmatprep.subr.bf16.mxu0 %v7574_v41  ;;  %4371 = vmatprep.subr.bf16.mxu1 %v7577_v42  ;;  %v7640_v41 = vld [vmem:[#allocation2 + $0xfc4] ss:$244 sps:$4 sm:$0xff]   ;;  %v7643_v42 = vld [vmem:[#allocation2 + $0xfcc] ss:$244 sps:$4 sm:$0xff]  }
 0x146   :  { %v8743_v47 = vpop.f32.mrf.mxu0  ;;  %v8745_v48 = vpop.f32.mrf.mxu1 }
 0x147   :  { %4331 = vmatpush2.bf16.msra.mxu0 %v7572_v43  ;;  %4372 = vmatpush2.bf16.msra.mxu1 %v7575_v44 }
 0x148   :  { %v8747_v53 = vpop.f32.mrf.mxu0  ;;  %v8749_v54 = vpop.f32.mrf.mxu1  ;;  %4332 = vmatprep.subr.bf16.mxu0 %v7580_v45  ;;  %4373 = vmatprep.subr.bf16.mxu1 %v7583_v46  ;;  %v7638_v45 = vld [vmem:[#allocation2 + $0xfc0] ss:$244 sps:$4 sm:$0xff]   ;;  %v7641_v46 = vld [vmem:[#allocation2 + $0xfc8] ss:$244 sps:$4 sm:$0xff]  }
 0x14a   :  { %v3930_v59 = vpop.f32.mrf.mxu0  ;;  %v3971_v60 = vpop.f32.mrf.mxu1 }
 0x14b   :  { %4333 = vmatpush2.bf16.msra.mxu0 %v7578_v49  ;;  %4374 = vmatpush2.bf16.msra.mxu1 %v7581_v50 }
 0x14c   :  { %v3931_v1 = vpop.f32.mrf.mxu0  ;;  %v3972_v2 = vpop.f32.mrf.mxu1  ;;  %4384 = vmatprep.subr.bf16.mxu0 %v7586_v55  ;;  %4425 = vmatprep.subr.bf16.mxu1 %v7589_v56  ;;  %v7646_v55 = vld [vmem:[#allocation2 + $0xdec] ss:$244 sps:$4 sm:$0xff]   ;;  %v7649_v56 = vld [vmem:[#allocation2 + $0xdf4] ss:$244 sps:$4 sm:$0xff]  }
 0x14e   :  { %4335 = vmatmul.mubr.bf16.vlgmr.msra.gmra.mxu0 %v8679_v52  ;;  %4376 = vmatmul.mubr.bf16.vlgmr.msra.gmra.mxu1 %v8679_v52 }
 0x14f   :  { %4385 = vmatpush1.bf16.msra.mxu0 %v7584_v63  ;;  %4426 = vmatpush1.bf16.msra.mxu1 %v7587_v0  ;;  %v7644_v63 = vld [vmem:[#allocation2 + $0xde8] ss:$244 sps:$4 sm:$0xff]   ;;  %v7647_v0 = vld [vmem:[#allocation2 + $0xdf0] ss:$244 sps:$4 sm:$0xff]  }
 0x150   :  { %4386 = vmatprep.subr.bf16.mxu0 %v7592_v3  ;;  %4427 = vmatprep.subr.bf16.mxu1 %v7595_v4  ;;  %v7652_v3 = vld [vmem:[#allocation2 + $0xc04] ss:$244 sps:$4 sm:$0xff]   ;;  %v7655_v4 = vld [vmem:[#allocation2 + $0xc0c] ss:$244 sps:$4 sm:$0xff]  }
 0x151   :  { %7053 = vmatprep.mubr.msk.bf16.mxu0 %vm3724_vm0, %v8677_v51  ;;  %7054 = vmatprep.mubr.msk.bf16.mxu1 %vm3724_vm0, %v8677_v51 }
 0x153   :  { %4387 = vmatpush1.bf16.msra.mxu0 %v7590_v7  ;;  %4428 = vmatpush1.bf16.msra.mxu1 %v7593_v8  ;;  %v7650_v7 = vld [vmem:[#allocation2 + $0xc00] ss:$244 sps:$4 sm:$0xff]   ;;  %v7653_v8 = vld [vmem:[#allocation2 + $0xc08] ss:$244 sps:$4 sm:$0xff]  }
 0x154   :  { %4388 = vmatprep.subr.bf16.mxu0 %v7598_v11  ;;  %4429 = vmatprep.subr.bf16.mxu1 %v7601_v12  ;;  %v7658_v11 = vld [vmem:[#allocation2 + $0xa1c] ss:$244 sps:$4 sm:$0xff]   ;;  %v7661_v12 = vld [vmem:[#allocation2 + $0xa24] ss:$244 sps:$4 sm:$0xff]  }
 0x157   :  { %4389 = vmatpush1.bf16.msra.mxu0 %v7596_v13  ;;  %4430 = vmatpush1.bf16.msra.mxu1 %v7599_v14  ;;  %v7656_v13 = vld [vmem:[#allocation2 + $0xa18] ss:$244 sps:$4 sm:$0xff]   ;;  %v7659_v14 = vld [vmem:[#allocation2 + $0xa20] ss:$244 sps:$4 sm:$0xff]  }
 0x158   :  { %4390 = vmatprep.subr.bf16.mxu0 %v7604_v15  ;;  %4431 = vmatprep.subr.bf16.mxu1 %v7607_v16  ;;  %v7664_v15 = vld [vmem:[#allocation2 + $0x834] ss:$244 sps:$4 sm:$0xff]   ;;  %v7667_v16 = vld [vmem:[#allocation2 + $0x83c] ss:$244 sps:$4 sm:$0xff]  }
 0x15b   :  { %4391 = vmatpush1.bf16.msra.mxu0 %v7602_v17  ;;  %4432 = vmatpush1.bf16.msra.mxu1 %v7605_v18  ;;  %v7662_v17 = vld [vmem:[#allocation2 + $0x830] ss:$244 sps:$4 sm:$0xff]   ;;  %v7665_v18 = vld [vmem:[#allocation2 + $0x838] ss:$244 sps:$4 sm:$0xff]  }
 0x15c   :  { %4392 = vmatprep.subr.bf16.mxu0 %v7610_v19  ;;  %4433 = vmatprep.subr.bf16.mxu1 %v7613_v20  ;;  %v7670_v19 = vld [vmem:[#allocation2 + $0x64c] ss:$244 sps:$4 sm:$0xff]   ;;  %v7673_v20 = vld [vmem:[#allocation2 + $0x654] ss:$244 sps:$4 sm:$0xff]  }
 0x15f   :  { %4393 = vmatpush1.bf16.msra.mxu0 %v7608_v21  ;;  %4434 = vmatpush1.bf16.msra.mxu1 %v7611_v22  ;;  %v7668_v21 = vld [vmem:[#allocation2 + $0x648] ss:$244 sps:$4 sm:$0xff]   ;;  %v7671_v22 = vld [vmem:[#allocation2 + $0x650] ss:$244 sps:$4 sm:$0xff]  }
 0x160   :  { %4394 = vmatprep.subr.bf16.mxu0 %v7616_v23  ;;  %4435 = vmatprep.subr.bf16.mxu1 %v7619_v24  ;;  %v7676_v23 = vld [vmem:[#allocation2 + $0x464] ss:$244 sps:$4 sm:$0xff]   ;;  %v7679_v24 = vld [vmem:[#allocation2 + $0x46c] ss:$244 sps:$4 sm:$0xff]  }
 0x163   :  { %4395 = vmatpush1.bf16.msra.mxu0 %v7614_v25  ;;  %4436 = vmatpush1.bf16.msra.mxu1 %v7617_v26  ;;  %v7674_v25 = vld [vmem:[#allocation2 + $0x460] ss:$244 sps:$4 sm:$0xff]   ;;  %v7677_v26 = vld [vmem:[#allocation2 + $0x468] ss:$244 sps:$4 sm:$0xff]  }
 0x164   :  { %4396 = vmatprep.subr.bf16.mxu0 %v7622_v27  ;;  %4437 = vmatprep.subr.bf16.mxu1 %v7625_v28  ;;  %v7682_v27 = vld [vmem:[#allocation2 + $0x27c] ss:$244 sps:$4 sm:$0xff]   ;;  %v7685_v28 = vld [vmem:[#allocation2 + $0x284] ss:$244 sps:$4 sm:$0xff]  }
 0x167   :  { %4397 = vmatpush1.bf16.msra.mxu0 %v7620_v29  ;;  %4438 = vmatpush1.bf16.msra.mxu1 %v7623_v30  ;;  %v7680_v29 = vld [vmem:[#allocation2 + $0x278] ss:$244 sps:$4 sm:$0xff]   ;;  %v7683_v30 = vld [vmem:[#allocation2 + $0x280] ss:$244 sps:$4 sm:$0xff]  }
 0x168   :  { %4398 = vmatprep.subr.bf16.mxu0 %v7628_v31  ;;  %4439 = vmatprep.subr.bf16.mxu1 %v7631_v32  ;;  %v7688_v31 = vld [vmem:[#allocation2 + $0x94] ss:$244 sps:$4 sm:$0xff]   ;;  %v7691_v32 = vld [vmem:[#allocation2 + $0x9c] ss:$244 sps:$4 sm:$0xff]  }
 0x16b   :  { %4399 = vmatpush1.bf16.msra.mxu0 %v7626_v34  ;;  %4440 = vmatpush1.bf16.msra.mxu1 %v7629_v35  ;;  %v7686_v34 = vld [vmem:[#allocation2 + $0x90] ss:$244 sps:$4 sm:$0xff]   ;;  %v7689_v35 = vld [vmem:[#allocation2 + $0x98] ss:$244 sps:$4 sm:$0xff]  }
 0x16c   :  { %4412 = vmatprep.subr.bf16.mxu0 %v7634_v36  ;;  %4453 = vmatprep.subr.bf16.mxu1 %v7637_v38  ;;  %v7694_v36 = vld [vmem:[#allocation2 + $0x11bc] ss:$244 sps:$4 sm:$0xff]   ;;  %v7697_v38 = vld [vmem:[#allocation2 + $0x11c4] ss:$244 sps:$4 sm:$0xff]  }
 0x16e   :  { %v8757_v43 = vpop.f32.mrf.mxu0  ;;  %v8759_v44 = vpop.f32.mrf.mxu1 }
 0x16f   :  { %4413 = vmatpush2.bf16.msra.mxu0 %v7632_v39  ;;  %4454 = vmatpush2.bf16.msra.mxu1 %v7635_v40  ;;  %v7692_v39 = vld [vmem:[#allocation2 + $0x11b8] ss:$244 sps:$4 sm:$0xff]   ;;  %v7695_v40 = vld [vmem:[#allocation2 + $0x11c0] ss:$244 sps:$4 sm:$0xff]  }
 0x170   :  { %v8761_v49 = vpop.f32.mrf.mxu0  ;;  %v8763_v50 = vpop.f32.mrf.mxu1  ;;  %4414 = vmatprep.subr.bf16.mxu0 %v7640_v41  ;;  %4455 = vmatprep.subr.bf16.mxu1 %v7643_v42  ;;  %v7700_v41 = vld [vmem:[#allocation2 + $0xfd4] ss:$244 sps:$4 sm:$0xff]   ;;  %v7703_v42 = vld [vmem:[#allocation2 + $0xfdc] ss:$244 sps:$4 sm:$0xff]  }
 0x172   :  { %v4012_v59 = vpop.f32.mrf.mxu0  ;;  %v4053_v60 = vpop.f32.mrf.mxu1 }
 0x173   :  { %4415 = vmatpush2.bf16.msra.mxu0 %v7638_v45  ;;  %4456 = vmatpush2.bf16.msra.mxu1 %v7641_v46 }
 0x174   :  { %v4013_v1 = vpop.f32.mrf.mxu0  ;;  %v4054_v2 = vpop.f32.mrf.mxu1  ;;  %4466 = vmatprep.subr.bf16.mxu0 %v7646_v55  ;;  %4507 = vmatprep.subr.bf16.mxu1 %v7649_v56  ;;  %v7698_v55 = vld [vmem:[#allocation2 + $0xfd0] ss:$244 sps:$4 sm:$0xff]   ;;  %v7701_v56 = vld [vmem:[#allocation2 + $0xfd8] ss:$244 sps:$4 sm:$0xff]  }
 0x176   :  { %4417 = vmatmul.mubr.bf16.vlgmr.msra.gmra.mxu0 %v8679_v52  ;;  %4458 = vmatmul.mubr.bf16.vlgmr.msra.gmra.mxu1 %v8679_v52 }
 0x177   :  { %4467 = vmatpush1.bf16.msra.mxu0 %v7644_v63  ;;  %4508 = vmatpush1.bf16.msra.mxu1 %v7647_v0  ;;  %v7706_v63 = vld [vmem:[#allocation2 + $0xdfc] ss:$244 sps:$4 sm:$0xff]   ;;  %v7709_v0 = vld [vmem:[#allocation2 + $0xe04] ss:$244 sps:$4 sm:$0xff]  }
 0x178   :  { %4468 = vmatprep.subr.bf16.mxu0 %v7652_v3  ;;  %4509 = vmatprep.subr.bf16.mxu1 %v7655_v4  ;;  %v7704_v3 = vld [vmem:[#allocation2 + $0xdf8] ss:$244 sps:$4 sm:$0xff]   ;;  %v7707_v4 = vld [vmem:[#allocation2 + $0xe00] ss:$244 sps:$4 sm:$0xff]  }
 0x179   :  { %7055 = vmatprep.mubr.msk.bf16.mxu0 %vm3724_vm0, %v8677_v51  ;;  %7056 = vmatprep.mubr.msk.bf16.mxu1 %vm3724_vm0, %v8677_v51 }
 0x17b   :  { %4469 = vmatpush1.bf16.msra.mxu0 %v7650_v7  ;;  %4510 = vmatpush1.bf16.msra.mxu1 %v7653_v8 }
 0x17c   :  { %4470 = vmatprep.subr.bf16.mxu0 %v7658_v11  ;;  %4511 = vmatprep.subr.bf16.mxu1 %v7661_v12  ;;  %v7712_v11 = vld [vmem:[#allocation2 + $0xc14] ss:$244 sps:$4 sm:$0xff]   ;;  %v7715_v12 = vld [vmem:[#allocation2 + $0xc1c] ss:$244 sps:$4 sm:$0xff]  }
 0x17f   :  { %4471 = vmatpush1.bf16.msra.mxu0 %v7656_v13  ;;  %4512 = vmatpush1.bf16.msra.mxu1 %v7659_v14  ;;  %v7710_v13 = vld [vmem:[#allocation2 + $0xc10] ss:$244 sps:$4 sm:$0xff]   ;;  %v7713_v14 = vld [vmem:[#allocation2 + $0xc18] ss:$244 sps:$4 sm:$0xff]  }
 0x180   :  { %4472 = vmatprep.subr.bf16.mxu0 %v7664_v15  ;;  %4513 = vmatprep.subr.bf16.mxu1 %v7667_v16  ;;  %v7718_v15 = vld [vmem:[#allocation2 + $0xa2c] ss:$244 sps:$4 sm:$0xff]   ;;  %v7721_v16 = vld [vmem:[#allocation2 + $0xa34] ss:$244 sps:$4 sm:$0xff]  }
 0x183   :  { %4473 = vmatpush1.bf16.msra.mxu0 %v7662_v17  ;;  %4514 = vmatpush1.bf16.msra.mxu1 %v7665_v18  ;;  %v7716_v17 = vld [vmem:[#allocation2 + $0xa28] ss:$244 sps:$4 sm:$0xff]   ;;  %v7719_v18 = vld [vmem:[#allocation2 + $0xa30] ss:$244 sps:$4 sm:$0xff]  }
 0x184   :  { %4474 = vmatprep.subr.bf16.mxu0 %v7670_v19  ;;  %4515 = vmatprep.subr.bf16.mxu1 %v7673_v20  ;;  %v7724_v19 = vld [vmem:[#allocation2 + $0x844] ss:$244 sps:$4 sm:$0xff]   ;;  %v7727_v20 = vld [vmem:[#allocation2 + $0x84c] ss:$244 sps:$4 sm:$0xff]  }
 0x187   :  { %4475 = vmatpush1.bf16.msra.mxu0 %v7668_v21  ;;  %4516 = vmatpush1.bf16.msra.mxu1 %v7671_v22  ;;  %v7722_v21 = vld [vmem:[#allocation2 + $0x840] ss:$244 sps:$4 sm:$0xff]   ;;  %v7725_v22 = vld [vmem:[#allocation2 + $0x848] ss:$244 sps:$4 sm:$0xff]  }
 0x188   :  { %4476 = vmatprep.subr.bf16.mxu0 %v7676_v23  ;;  %4517 = vmatprep.subr.bf16.mxu1 %v7679_v24  ;;  %v7730_v23 = vld [vmem:[#allocation2 + $0x65c] ss:$244 sps:$4 sm:$0xff]   ;;  %v7733_v24 = vld [vmem:[#allocation2 + $0x664] ss:$244 sps:$4 sm:$0xff]  }
 0x18b   :  { %4477 = vmatpush1.bf16.msra.mxu0 %v7674_v25  ;;  %4518 = vmatpush1.bf16.msra.mxu1 %v7677_v26  ;;  %v7728_v25 = vld [vmem:[#allocation2 + $0x658] ss:$244 sps:$4 sm:$0xff]   ;;  %v7731_v26 = vld [vmem:[#allocation2 + $0x660] ss:$244 sps:$4 sm:$0xff]  }
 0x18c   :  { %4478 = vmatprep.subr.bf16.mxu0 %v7682_v27  ;;  %4519 = vmatprep.subr.bf16.mxu1 %v7685_v28  ;;  %v7736_v27 = vld [vmem:[#allocation2 + $0x474] ss:$244 sps:$4 sm:$0xff]   ;;  %v7739_v28 = vld [vmem:[#allocation2 + $0x47c] ss:$244 sps:$4 sm:$0xff]  }
 0x18f   :  { %4479 = vmatpush1.bf16.msra.mxu0 %v7680_v29  ;;  %4520 = vmatpush1.bf16.msra.mxu1 %v7683_v30  ;;  %v7734_v29 = vld [vmem:[#allocation2 + $0x470] ss:$244 sps:$4 sm:$0xff]   ;;  %v7737_v30 = vld [vmem:[#allocation2 + $0x478] ss:$244 sps:$4 sm:$0xff]  }
 0x190   :  { %4480 = vmatprep.subr.bf16.mxu0 %v7688_v31  ;;  %4521 = vmatprep.subr.bf16.mxu1 %v7691_v32  ;;  %v7742_v31 = vld [vmem:[#allocation2 + $0x28c] ss:$244 sps:$4 sm:$0xff]   ;;  %v7745_v32 = vld [vmem:[#allocation2 + $0x294] ss:$244 sps:$4 sm:$0xff]  }
 0x193   :  { %4481 = vmatpush1.bf16.msra.mxu0 %v7686_v34  ;;  %4522 = vmatpush1.bf16.msra.mxu1 %v7689_v35  ;;  %v7740_v34 = vld [vmem:[#allocation2 + $0x288] ss:$244 sps:$4 sm:$0xff]   ;;  %v7743_v35 = vld [vmem:[#allocation2 + $0x290] ss:$244 sps:$4 sm:$0xff]  }
 0x194   :  { %4494 = vmatprep.subr.bf16.mxu0 %v7694_v36  ;;  %4535 = vmatprep.subr.bf16.mxu1 %v7697_v38  ;;  %v7748_v36 = vld [vmem:[#allocation2 + $0xa4] ss:$244 sps:$4 sm:$0xff]   ;;  %v7751_v38 = vld [vmem:[#allocation2 + $0xac] ss:$244 sps:$4 sm:$0xff]  }
 0x196   :  { %v8771_v45 = vpop.f32.mrf.mxu0  ;;  %v8773_v46 = vpop.f32.mrf.mxu1 }
 0x197   :  { %4495 = vmatpush2.bf16.msra.mxu0 %v7692_v39  ;;  %4536 = vmatpush2.bf16.msra.mxu1 %v7695_v40  ;;  %v7746_v39 = vld [vmem:[#allocation2 + $0xa0] ss:$244 sps:$4 sm:$0xff]   ;;  %v7749_v40 = vld [vmem:[#allocation2 + $0xa8] ss:$244 sps:$4 sm:$0xff]  }
 0x198   :  { %v8775_v59 = vpop.f32.mrf.mxu0  ;;  %v8777_v60 = vpop.f32.mrf.mxu1  ;;  %4496 = vmatprep.subr.bf16.mxu0 %v7700_v41  ;;  %4537 = vmatprep.subr.bf16.mxu1 %v7703_v42  ;;  %v7754_v41 = vld [vmem:[#allocation2 + $0x11cc] ss:$244 sps:$4 sm:$0xff]   ;;  %v7757_v42 = vld [vmem:[#allocation2 + $0x11d4] ss:$244 sps:$4 sm:$0xff]  }
 0x19a   :  { %v4094_v1 = vpop.f32.mrf.mxu0  ;;  %v4135_v2 = vpop.f32.mrf.mxu1 }
 0x19b   :  { %4497 = vmatpush2.bf16.msra.mxu0 %v7698_v55  ;;  %4538 = vmatpush2.bf16.msra.mxu1 %v7701_v56  ;;  %v7752_v55 = vld [vmem:[#allocation2 + $0x11c8] ss:$244 sps:$4 sm:$0xff]   ;;  %v7755_v56 = vld [vmem:[#allocation2 + $0x11d0] ss:$244 sps:$4 sm:$0xff]  }
 0x19c   :  { %v4095_v7 = vpop.f32.mrf.mxu0  ;;  %v4136_v8 = vpop.f32.mrf.mxu1  ;;  %4548 = vmatprep.subr.bf16.mxu0 %v7706_v63  ;;  %4589 = vmatprep.subr.bf16.mxu1 %v7709_v0  ;;  %v7760_v63 = vld [vmem:[#allocation2 + $0xfe4] ss:$244 sps:$4 sm:$0xff]   ;;  %v7763_v0 = vld [vmem:[#allocation2 + $0xfec] ss:$244 sps:$4 sm:$0xff]  }
 0x19e   :  { %4499 = vmatmul.mubr.bf16.vlgmr.msra.gmra.mxu0 %v8679_v52  ;;  %4540 = vmatmul.mubr.bf16.vlgmr.msra.gmra.mxu1 %v8679_v52 }
 0x19f   :  { %4549 = vmatpush1.bf16.msra.mxu0 %v7704_v3  ;;  %4590 = vmatpush1.bf16.msra.mxu1 %v7707_v4  ;;  %v7758_v3 = vld [vmem:[#allocation2 + $0xfe0] ss:$244 sps:$4 sm:$0xff]   ;;  %v7761_v4 = vld [vmem:[#allocation2 + $0xfe8] ss:$244 sps:$4 sm:$0xff]  }
 0x1a0   :  { %4550 = vmatprep.subr.bf16.mxu0 %v7712_v11  ;;  %4591 = vmatprep.subr.bf16.mxu1 %v7715_v12  ;;  %v7766_v11 = vld [vmem:[#allocation2 + $0xe0c] ss:$244 sps:$4 sm:$0xff]   ;;  %v7769_v12 = vld [vmem:[#allocation2 + $0xe14] ss:$244 sps:$4 sm:$0xff]  }
 0x1a1   :  { %7057 = vmatprep.mubr.msk.bf16.mxu0 %vm3724_vm0, %v8677_v51  ;;  %7058 = vmatprep.mubr.msk.bf16.mxu1 %vm3724_vm0, %v8677_v51 }
 0x1a3   :  { %4551 = vmatpush1.bf16.msra.mxu0 %v7710_v13  ;;  %4592 = vmatpush1.bf16.msra.mxu1 %v7713_v14 }
 0x1a4   :  { %4552 = vmatprep.subr.bf16.mxu0 %v7718_v15  ;;  %4593 = vmatprep.subr.bf16.mxu1 %v7721_v16  ;;  %v7764_v15 = vld [vmem:[#allocation2 + $0xe08] ss:$244 sps:$4 sm:$0xff]   ;;  %v7767_v16 = vld [vmem:[#allocation2 + $0xe10] ss:$244 sps:$4 sm:$0xff]  }
 0x1a7   :  { %4553 = vmatpush1.bf16.msra.mxu0 %v7716_v17  ;;  %4594 = vmatpush1.bf16.msra.mxu1 %v7719_v18 }
 0x1a8   :  { %4554 = vmatprep.subr.bf16.mxu0 %v7724_v19  ;;  %4595 = vmatprep.subr.bf16.mxu1 %v7727_v20  ;;  %v7772_v19 = vld [vmem:[#allocation2 + $0xc24] ss:$244 sps:$4 sm:$0xff]   ;;  %v7775_v20 = vld [vmem:[#allocation2 + $0xc2c] ss:$244 sps:$4 sm:$0xff]  }
 0x1ab   :  { %4555 = vmatpush1.bf16.msra.mxu0 %v7722_v21  ;;  %4596 = vmatpush1.bf16.msra.mxu1 %v7725_v22  ;;  %v7770_v21 = vld [vmem:[#allocation2 + $0xc20] ss:$244 sps:$4 sm:$0xff]   ;;  %v7773_v22 = vld [vmem:[#allocation2 + $0xc28] ss:$244 sps:$4 sm:$0xff]  }
 0x1ac   :  { %4556 = vmatprep.subr.bf16.mxu0 %v7730_v23  ;;  %4597 = vmatprep.subr.bf16.mxu1 %v7733_v24  ;;  %v7778_v23 = vld [vmem:[#allocation2 + $0xa3c] ss:$244 sps:$4 sm:$0xff]   ;;  %v7781_v24 = vld [vmem:[#allocation2 + $0xa44] ss:$244 sps:$4 sm:$0xff]  }
 0x1af   :  { %4557 = vmatpush1.bf16.msra.mxu0 %v7728_v25  ;;  %4598 = vmatpush1.bf16.msra.mxu1 %v7731_v26  ;;  %v7776_v25 = vld [vmem:[#allocation2 + $0xa38] ss:$244 sps:$4 sm:$0xff]   ;;  %v7779_v26 = vld [vmem:[#allocation2 + $0xa40] ss:$244 sps:$4 sm:$0xff]  }
 0x1b0   :  { %4558 = vmatprep.subr.bf16.mxu0 %v7736_v27  ;;  %4599 = vmatprep.subr.bf16.mxu1 %v7739_v28  ;;  %v7784_v27 = vld [vmem:[#allocation2 + $0x854] ss:$244 sps:$4 sm:$0xff]   ;;  %v7787_v28 = vld [vmem:[#allocation2 + $0x85c] ss:$244 sps:$4 sm:$0xff]  }
 0x1b3   :  { %4559 = vmatpush1.bf16.msra.mxu0 %v7734_v29  ;;  %4600 = vmatpush1.bf16.msra.mxu1 %v7737_v30  ;;  %v7782_v29 = vld [vmem:[#allocation2 + $0x850] ss:$244 sps:$4 sm:$0xff]   ;;  %v7785_v30 = vld [vmem:[#allocation2 + $0x858] ss:$244 sps:$4 sm:$0xff]  }
 0x1b4   :  { %4560 = vmatprep.subr.bf16.mxu0 %v7742_v31  ;;  %4601 = vmatprep.subr.bf16.mxu1 %v7745_v32  ;;  %v7790_v31 = vld [vmem:[#allocation2 + $0x66c] ss:$244 sps:$4 sm:$0xff]   ;;  %v7793_v32 = vld [vmem:[#allocation2 + $0x674] ss:$244 sps:$4 sm:$0xff]  }
 0x1b7   :  { %4561 = vmatpush1.bf16.msra.mxu0 %v7740_v34  ;;  %4602 = vmatpush1.bf16.msra.mxu1 %v7743_v35  ;;  %v7788_v34 = vld [vmem:[#allocation2 + $0x668] ss:$244 sps:$4 sm:$0xff]   ;;  %v7791_v35 = vld [vmem:[#allocation2 + $0x670] ss:$244 sps:$4 sm:$0xff]  }
 0x1b8   :  { %4562 = vmatprep.subr.bf16.mxu0 %v7748_v36  ;;  %4603 = vmatprep.subr.bf16.mxu1 %v7751_v38  ;;  %v7796_v36 = vld [vmem:[#allocation2 + $0x484] ss:$244 sps:$4 sm:$0xff]   ;;  %v7799_v38 = vld [vmem:[#allocation2 + $0x48c] ss:$244 sps:$4 sm:$0xff]  }
 0x1bb   :  { %4563 = vmatpush1.bf16.msra.mxu0 %v7746_v39  ;;  %4604 = vmatpush1.bf16.msra.mxu1 %v7749_v40  ;;  %v7794_v39 = vld [vmem:[#allocation2 + $0x480] ss:$244 sps:$4 sm:$0xff]   ;;  %v7797_v40 = vld [vmem:[#allocation2 + $0x488] ss:$244 sps:$4 sm:$0xff]  }
 0x1bc   :  { %4576 = vmatprep.subr.bf16.mxu0 %v7754_v41  ;;  %4617 = vmatprep.subr.bf16.mxu1 %v7757_v42  ;;  %v7802_v41 = vld [vmem:[#allocation2 + $0x29c] ss:$244 sps:$4 sm:$0xff]   ;;  %v7805_v42 = vld [vmem:[#allocation2 + $0x2a4] ss:$244 sps:$4 sm:$0xff]  }
 0x1be   :  { %v8785_v1 = vpop.f32.mrf.mxu0  ;;  %v8787_v2 = vpop.f32.mrf.mxu1 }
 0x1bf   :  { %4577 = vmatpush2.bf16.msra.mxu0 %v7752_v55  ;;  %4618 = vmatpush2.bf16.msra.mxu1 %v7755_v56  ;;  %v7800_v55 = vld [vmem:[#allocation2 + $0x298] ss:$244 sps:$4 sm:$0xff]   ;;  %v7803_v56 = vld [vmem:[#allocation2 + $0x2a0] ss:$244 sps:$4 sm:$0xff]  }
 0x1c0   :  { %v8789_v7 = vpop.f32.mrf.mxu0  ;;  %v8791_v8 = vpop.f32.mrf.mxu1  ;;  %4578 = vmatprep.subr.bf16.mxu0 %v7760_v63  ;;  %4619 = vmatprep.subr.bf16.mxu1 %v7763_v0  ;;  %v7808_v63 = vld [vmem:[#allocation2 + $0xb4] ss:$244 sps:$4 sm:$0xff]   ;;  %v7811_v0 = vld [vmem:[#allocation2 + $0xbc] ss:$244 sps:$4 sm:$0xff]  }
 0x1c2   :  { %v4176_v13 = vpop.f32.mrf.mxu0  ;;  %v4217_v14 = vpop.f32.mrf.mxu1 }
 0x1c3   :  { %4579 = vmatpush2.bf16.msra.mxu0 %v7758_v3  ;;  %4620 = vmatpush2.bf16.msra.mxu1 %v7761_v4  ;;  %v7806_v3 = vld [vmem:[#allocation2 + $0xb0] ss:$244 sps:$4 sm:$0xff]   ;;  %v7809_v4 = vld [vmem:[#allocation2 + $0xb8] ss:$244 sps:$4 sm:$0xff]   ;;  %v7815_v14 = vld [vmem:[#allocation2 + $0x11e0] ss:$244 sps:$4 sm:$0xff]  }
 0x1c4   :  { %v4177_v17 = vpop.f32.mrf.mxu0  ;;  %v4218_v18 = vpop.f32.mrf.mxu1  ;;  %4630 = vmatprep.subr.bf16.mxu0 %v7766_v11  ;;  %4671 = vmatprep.subr.bf16.mxu1 %v7769_v12  ;;  %v7814_v11 = vld [vmem:[#allocation2 + $0x11dc] ss:$244 sps:$4 sm:$0xff]   ;;  %v7817_v12 = vld [vmem:[#allocation2 + $0x11e4] ss:$244 sps:$4 sm:$0xff]  }
 0x1c5   :  { %v7812_v13 = vld [vmem:[#allocation2 + $0x11d8] ss:$244 sps:$4 sm:$0xff]  }
 0x1c6   :  { %4581 = vmatmul.mubr.bf16.vlgmr.msra.gmra.mxu0 %v8679_v52  ;;  %4622 = vmatmul.mubr.bf16.vlgmr.msra.gmra.mxu1 %v8679_v52 }
 0x1c7   :  { %4631 = vmatpush1.bf16.msra.mxu0 %v7764_v15  ;;  %4672 = vmatpush1.bf16.msra.mxu1 %v7767_v16  ;;  %v7820_v15 = vld [vmem:[#allocation2 + $0xff4] ss:$244 sps:$4 sm:$0xff]   ;;  %v7823_v16 = vld [vmem:[#allocation2 + $0xffc] ss:$244 sps:$4 sm:$0xff]  }
 0x1c8   :  { %4632 = vmatprep.subr.bf16.mxu0 %v7772_v19  ;;  %4673 = vmatprep.subr.bf16.mxu1 %v7775_v20  ;;  %v7818_v19 = vld [vmem:[#allocation2 + $0xff0] ss:$244 sps:$4 sm:$0xff]   ;;  %v7821_v20 = vld [vmem:[#allocation2 + $0xff8] ss:$244 sps:$4 sm:$0xff]  }
 0x1c9   :  { %7059 = vmatprep.mubr.msk.bf16.mxu0 %vm3724_vm0, %v8677_v51  ;;  %7060 = vmatprep.mubr.msk.bf16.mxu1 %vm3724_vm0, %v8677_v51 }
 0x1cb   :  { %4633 = vmatpush1.bf16.msra.mxu0 %v7770_v21  ;;  %4674 = vmatpush1.bf16.msra.mxu1 %v7773_v22 }
 0x1cc   :  { %4634 = vmatprep.subr.bf16.mxu0 %v7778_v23  ;;  %4675 = vmatprep.subr.bf16.mxu1 %v7781_v24  ;;  %v7826_v23 = vld [vmem:[#allocation2 + $0xe1c] ss:$244 sps:$4 sm:$0xff]   ;;  %v7829_v24 = vld [vmem:[#allocation2 + $0xe24] ss:$244 sps:$4 sm:$0xff]  }
 0x1cf   :  { %4635 = vmatpush1.bf16.msra.mxu0 %v7776_v25  ;;  %4676 = vmatpush1.bf16.msra.mxu1 %v7779_v26 }
 0x1d0   :  { %4636 = vmatprep.subr.bf16.mxu0 %v7784_v27  ;;  %4677 = vmatprep.subr.bf16.mxu1 %v7787_v28  ;;  %v7824_v27 = vld [vmem:[#allocation2 + $0xe18] ss:$244 sps:$4 sm:$0xff]   ;;  %v7827_v28 = vld [vmem:[#allocation2 + $0xe20] ss:$244 sps:$4 sm:$0xff]  }
 0x1d3   :  { %4637 = vmatpush1.bf16.msra.mxu0 %v7782_v29  ;;  %4678 = vmatpush1.bf16.msra.mxu1 %v7785_v30 }
 0x1d4   :  { %4638 = vmatprep.subr.bf16.mxu0 %v7790_v31  ;;  %4679 = vmatprep.subr.bf16.mxu1 %v7793_v32  ;;  %v7832_v31 = vld [vmem:[#allocation2 + $0xc34] ss:$244 sps:$4 sm:$0xff]   ;;  %v7835_v32 = vld [vmem:[#allocation2 + $0xc3c] ss:$244 sps:$4 sm:$0xff]  }
 0x1d7   :  { %4639 = vmatpush1.bf16.msra.mxu0 %v7788_v34  ;;  %4680 = vmatpush1.bf16.msra.mxu1 %v7791_v35  ;;  %v7830_v34 = vld [vmem:[#allocation2 + $0xc30] ss:$244 sps:$4 sm:$0xff]   ;;  %v7833_v35 = vld [vmem:[#allocation2 + $0xc38] ss:$244 sps:$4 sm:$0xff]  }
 0x1d8   :  { %4640 = vmatprep.subr.bf16.mxu0 %v7796_v36  ;;  %4681 = vmatprep.subr.bf16.mxu1 %v7799_v38  ;;  %v7838_v36 = vld [vmem:[#allocation2 + $0xa4c] ss:$244 sps:$4 sm:$0xff]   ;;  %v7841_v38 = vld [vmem:[#allocation2 + $0xa54] ss:$244 sps:$4 sm:$0xff]  }
 0x1db   :  { %4641 = vmatpush1.bf16.msra.mxu0 %v7794_v39  ;;  %4682 = vmatpush1.bf16.msra.mxu1 %v7797_v40  ;;  %v7836_v39 = vld [vmem:[#allocation2 + $0xa48] ss:$244 sps:$4 sm:$0xff]   ;;  %v7839_v40 = vld [vmem:[#allocation2 + $0xa50] ss:$244 sps:$4 sm:$0xff]  }
 0x1dc   :  { %4642 = vmatprep.subr.bf16.mxu0 %v7802_v41  ;;  %4683 = vmatprep.subr.bf16.mxu1 %v7805_v42  ;;  %v7844_v41 = vld [vmem:[#allocation2 + $0x864] ss:$244 sps:$4 sm:$0xff]   ;;  %v7847_v42 = vld [vmem:[#allocation2 + $0x86c] ss:$244 sps:$4 sm:$0xff]  }
 0x1df   :  { %4643 = vmatpush1.bf16.msra.mxu0 %v7800_v55  ;;  %4684 = vmatpush1.bf16.msra.mxu1 %v7803_v56  ;;  %v7842_v55 = vld [vmem:[#allocation2 + $0x860] ss:$244 sps:$4 sm:$0xff]   ;;  %v7845_v56 = vld [vmem:[#allocation2 + $0x868] ss:$244 sps:$4 sm:$0xff]  }
 0x1e0   :  { %4644 = vmatprep.subr.bf16.mxu0 %v7808_v63  ;;  %4685 = vmatprep.subr.bf16.mxu1 %v7811_v0  ;;  %v7850_v63 = vld [vmem:[#allocation2 + $0x67c] ss:$244 sps:$4 sm:$0xff]   ;;  %v7853_v0 = vld [vmem:[#allocation2 + $0x684] ss:$244 sps:$4 sm:$0xff]  }
 0x1e3   :  { %4645 = vmatpush1.bf16.msra.mxu0 %v7806_v3  ;;  %4686 = vmatpush1.bf16.msra.mxu1 %v7809_v4  ;;  %v7848_v3 = vld [vmem:[#allocation2 + $0x678] ss:$244 sps:$4 sm:$0xff]   ;;  %v7851_v4 = vld [vmem:[#allocation2 + $0x680] ss:$244 sps:$4 sm:$0xff]  }
 0x1e4   :  { %4658 = vmatprep.subr.bf16.mxu0 %v7814_v11  ;;  %4699 = vmatprep.subr.bf16.mxu1 %v7817_v12  ;;  %v7856_v11 = vld [vmem:[#allocation2 + $0x494] ss:$244 sps:$4 sm:$0xff]   ;;  %v7859_v12 = vld [vmem:[#allocation2 + $0x49c] ss:$244 sps:$4 sm:$0xff]  }
 0x1e6   :  { %v8799_v17 = vpop.f32.mrf.mxu0  ;;  %v8801_v18 = vpop.f32.mrf.mxu1 }
 0x1e7   :  { %4659 = vmatpush2.bf16.msra.mxu0 %v7812_v13  ;;  %4700 = vmatpush2.bf16.msra.mxu1 %v7815_v14  ;;  %v7854_v13 = vld [vmem:[#allocation2 + $0x490] ss:$244 sps:$4 sm:$0xff]   ;;  %v7857_v14 = vld [vmem:[#allocation2 + $0x498] ss:$244 sps:$4 sm:$0xff]  }
 0x1e8   :  { %v8803_v21 = vpop.f32.mrf.mxu0  ;;  %v8805_v22 = vpop.f32.mrf.mxu1  ;;  %4660 = vmatprep.subr.bf16.mxu0 %v7820_v15  ;;  %4701 = vmatprep.subr.bf16.mxu1 %v7823_v16  ;;  %v7862_v15 = vld [vmem:[#allocation2 + $0x2ac] ss:$244 sps:$4 sm:$0xff]   ;;  %v7865_v16 = vld [vmem:[#allocation2 + $0x2b4] ss:$244 sps:$4 sm:$0xff]  }
 0x1ea   :  { %v4258_v25 = vpop.f32.mrf.mxu0  ;;  %v4299_v26 = vpop.f32.mrf.mxu1 }
 0x1eb   :  { %4661 = vmatpush2.bf16.msra.mxu0 %v7818_v19  ;;  %4702 = vmatpush2.bf16.msra.mxu1 %v7821_v20  ;;  %v7860_v19 = vld [vmem:[#allocation2 + $0x2a8] ss:$244 sps:$4 sm:$0xff]   ;;  %v7863_v20 = vld [vmem:[#allocation2 + $0x2b0] ss:$244 sps:$4 sm:$0xff]   ;;  %v7866_v25 = vld [vmem:[#allocation2 + $0xc0] ss:$244 sps:$4 sm:$0xff]  }
 0x1ec   :  { %v4259_v29 = vpop.f32.mrf.mxu0  ;;  %v4300_v30 = vpop.f32.mrf.mxu1  ;;  %4712 = vmatprep.subr.bf16.mxu0 %v7826_v23  ;;  %4753 = vmatprep.subr.bf16.mxu1 %v7829_v24  ;;  %v7868_v23 = vld [vmem:[#allocation2 + $0xc4] ss:$244 sps:$4 sm:$0xff]   ;;  %v7871_v24 = vld [vmem:[#allocation2 + $0xcc] ss:$244 sps:$4 sm:$0xff]   ;;  %v7869_v26 = vld [vmem:[#allocation2 + $0xc8] ss:$244 sps:$4 sm:$0xff]  }
 0x1ed   :  { %v7872_v29 = vld [vmem:[#allocation2 + $0x11e8] ss:$244 sps:$4 sm:$0xff]   ;;  %v7875_v30 = vld [vmem:[#allocation2 + $0x11f0] ss:$244 sps:$4 sm:$0xff]  }
 0x1ee   :  { %4663 = vmatmul.mubr.bf16.vlgmr.msra.gmra.mxu0 %v8679_v52  ;;  %4704 = vmatmul.mubr.bf16.vlgmr.msra.gmra.mxu1 %v8679_v52 }
 0x1ef   :  { %4713 = vmatpush1.bf16.msra.mxu0 %v7824_v27  ;;  %4754 = vmatpush1.bf16.msra.mxu1 %v7827_v28  ;;  %v7874_v27 = vld [vmem:[#allocation2 + $0x11ec] ss:$244 sps:$4 sm:$0xff]   ;;  %v7877_v28 = vld [vmem:[#allocation2 + $0x11f4] ss:$244 sps:$4 sm:$0xff]  }
 0x1f0   :  { %4714 = vmatprep.subr.bf16.mxu0 %v7832_v31  ;;  %4755 = vmatprep.subr.bf16.mxu1 %v7835_v32  ;;  %v7880_v31 = vld [vmem:[#allocation2 + $0x1004] ss:$244 sps:$4 sm:$0xff]   ;;  %v7883_v32 = vld [vmem:[#allocation2 + $0x100c] ss:$244 sps:$4 sm:$0xff]  }
 0x1f1   :  { %7061 = vmatprep.mubr.msk.bf16.mxu0 %vm3724_vm0, %v8677_v51  ;;  %7062 = vmatprep.mubr.msk.bf16.mxu1 %vm3724_vm0, %v8677_v51 }
 0x1f3   :  { %4715 = vmatpush1.bf16.msra.mxu0 %v7830_v34  ;;  %4756 = vmatpush1.bf16.msra.mxu1 %v7833_v35 }
 0x1f4   :  { %4716 = vmatprep.subr.bf16.mxu0 %v7838_v36  ;;  %4757 = vmatprep.subr.bf16.mxu1 %v7841_v38  ;;  %v7878_v36 = vld [vmem:[#allocation2 + $0x1000] ss:$244 sps:$4 sm:$0xff]   ;;  %v7881_v38 = vld [vmem:[#allocation2 + $0x1008] ss:$244 sps:$4 sm:$0xff]  }
 0x1f7   :  { %4717 = vmatpush1.bf16.msra.mxu0 %v7836_v39  ;;  %4758 = vmatpush1.bf16.msra.mxu1 %v7839_v40 }
 0x1f8   :  { %4718 = vmatprep.subr.bf16.mxu0 %v7844_v41  ;;  %4759 = vmatprep.subr.bf16.mxu1 %v7847_v42  ;;  %v7886_v41 = vld [vmem:[#allocation2 + $0xe2c] ss:$244 sps:$4 sm:$0xff]   ;;  %v7889_v42 = vld [vmem:[#allocation2 + $0xe34] ss:$244 sps:$4 sm:$0xff]  }
 0x1fb   :  { %4719 = vmatpush1.bf16.msra.mxu0 %v7842_v55  ;;  %4760 = vmatpush1.bf16.msra.mxu1 %v7845_v56 }
 0x1fc   :  { %4720 = vmatprep.subr.bf16.mxu0 %v7850_v63  ;;  %4761 = vmatprep.subr.bf16.mxu1 %v7853_v0  ;;  %v7884_v63 = vld [vmem:[#allocation2 + $0xe28] ss:$244 sps:$4 sm:$0xff]   ;;  %v7887_v0 = vld [vmem:[#allocation2 + $0xe30] ss:$244 sps:$4 sm:$0xff]  }
 0x1ff   :  { %4721 = vmatpush1.bf16.msra.mxu0 %v7848_v3  ;;  %4762 = vmatpush1.bf16.msra.mxu1 %v7851_v4 }
 0x200   :  { %4722 = vmatprep.subr.bf16.mxu0 %v7856_v11  ;;  %4763 = vmatprep.subr.bf16.mxu1 %v7859_v12  ;;  %v7892_v11 = vld [vmem:[#allocation2 + $0xc44] ss:$244 sps:$4 sm:$0xff]   ;;  %v7895_v12 = vld [vmem:[#allocation2 + $0xc4c] ss:$244 sps:$4 sm:$0xff]  }
 0x203   :  { %4723 = vmatpush1.bf16.msra.mxu0 %v7854_v13  ;;  %4764 = vmatpush1.bf16.msra.mxu1 %v7857_v14  ;;  %v7890_v13 = vld [vmem:[#allocation2 + $0xc40] ss:$244 sps:$4 sm:$0xff]   ;;  %v7893_v14 = vld [vmem:[#allocation2 + $0xc48] ss:$244 sps:$4 sm:$0xff]  }
 0x204   :  { %4724 = vmatprep.subr.bf16.mxu0 %v7862_v15  ;;  %4765 = vmatprep.subr.bf16.mxu1 %v7865_v16  ;;  %v7898_v15 = vld [vmem:[#allocation2 + $0xa5c] ss:$244 sps:$4 sm:$0xff]   ;;  %v7901_v16 = vld [vmem:[#allocation2 + $0xa64] ss:$244 sps:$4 sm:$0xff]  }
 0x207   :  { %4725 = vmatpush1.bf16.msra.mxu0 %v7860_v19  ;;  %4766 = vmatpush1.bf16.msra.mxu1 %v7863_v20  ;;  %v7896_v19 = vld [vmem:[#allocation2 + $0xa58] ss:$244 sps:$4 sm:$0xff]   ;;  %v7899_v20 = vld [vmem:[#allocation2 + $0xa60] ss:$244 sps:$4 sm:$0xff]  }
 0x208   :  { %4726 = vmatprep.subr.bf16.mxu0 %v7868_v23  ;;  %4767 = vmatprep.subr.bf16.mxu1 %v7871_v24  ;;  %v7904_v23 = vld [vmem:[#allocation2 + $0x874] ss:$244 sps:$4 sm:$0xff]   ;;  %v7907_v24 = vld [vmem:[#allocation2 + $0x87c] ss:$244 sps:$4 sm:$0xff]  }
 0x20b   :  { %4727 = vmatpush1.bf16.msra.mxu0 %v7866_v25  ;;  %4768 = vmatpush1.bf16.msra.mxu1 %v7869_v26  ;;  %v7902_v25 = vld [vmem:[#allocation2 + $0x870] ss:$244 sps:$4 sm:$0xff]   ;;  %v7905_v26 = vld [vmem:[#allocation2 + $0x878] ss:$244 sps:$4 sm:$0xff]  }
 0x20c   :  { %4740 = vmatprep.subr.bf16.mxu0 %v7874_v27  ;;  %4781 = vmatprep.subr.bf16.mxu1 %v7877_v28  ;;  %v7910_v27 = vld [vmem:[#allocation2 + $0x68c] ss:$244 sps:$4 sm:$0xff]   ;;  %v7913_v28 = vld [vmem:[#allocation2 + $0x694] ss:$244 sps:$4 sm:$0xff]  }
 0x20e   :  { %v8813_v34 = vpop.f32.mrf.mxu0  ;;  %v8815_v35 = vpop.f32.mrf.mxu1 }
 0x20f   :  { %4741 = vmatpush2.bf16.msra.mxu0 %v7872_v29  ;;  %4782 = vmatpush2.bf16.msra.mxu1 %v7875_v30  ;;  %v7908_v29 = vld [vmem:[#allocation2 + $0x688] ss:$244 sps:$4 sm:$0xff]   ;;  %v7911_v30 = vld [vmem:[#allocation2 + $0x690] ss:$244 sps:$4 sm:$0xff]  }
 0x210   :  { %v8817_v39 = vpop.f32.mrf.mxu0  ;;  %v8819_v40 = vpop.f32.mrf.mxu1  ;;  %4742 = vmatprep.subr.bf16.mxu0 %v7880_v31  ;;  %4783 = vmatprep.subr.bf16.mxu1 %v7883_v32  ;;  %v7916_v31 = vld [vmem:[#allocation2 + $0x4a4] ss:$244 sps:$4 sm:$0xff]   ;;  %v7919_v32 = vld [vmem:[#allocation2 + $0x4ac] ss:$244 sps:$4 sm:$0xff]  }
 0x212   :  { %v4340_v55 = vpop.f32.mrf.mxu0  ;;  %v4381_v56 = vpop.f32.mrf.mxu1 }
 0x213   :  { %4743 = vmatpush2.bf16.msra.mxu0 %v7878_v36  ;;  %4784 = vmatpush2.bf16.msra.mxu1 %v7881_v38  ;;  %v7914_v36 = vld [vmem:[#allocation2 + $0x4a0] ss:$244 sps:$4 sm:$0xff]   ;;  %v7917_v38 = vld [vmem:[#allocation2 + $0x4a8] ss:$244 sps:$4 sm:$0xff]   ;;  %v7920_v55 = vld [vmem:[#allocation2 + $0x2b8] ss:$244 sps:$4 sm:$0xff]  }
 0x214   :  { %v4341_v3 = vpop.f32.mrf.mxu0  ;;  %v4382_v4 = vpop.f32.mrf.mxu1  ;;  %4794 = vmatprep.subr.bf16.mxu0 %v7886_v41  ;;  %4835 = vmatprep.subr.bf16.mxu1 %v7889_v42  ;;  %v7922_v41 = vld [vmem:[#allocation2 + $0x2bc] ss:$244 sps:$4 sm:$0xff]   ;;  %v7925_v42 = vld [vmem:[#allocation2 + $0x2c4] ss:$244 sps:$4 sm:$0xff]   ;;  %v7923_v56 = vld [vmem:[#allocation2 + $0x2c0] ss:$244 sps:$4 sm:$0xff]  }
 0x215   :  { %v7926_v3 = vld [vmem:[#allocation2 + $0xd0] ss:$244 sps:$4 sm:$0xff]   ;;  %v7929_v4 = vld [vmem:[#allocation2 + $0xd8] ss:$244 sps:$4 sm:$0xff]  }
 0x216   :  { %4745 = vmatmul.mubr.bf16.vlgmr.msra.gmra.mxu0 %v8679_v52  ;;  %4786 = vmatmul.mubr.bf16.vlgmr.msra.gmra.mxu1 %v8679_v52 }
 0x217   :  { %4795 = vmatpush1.bf16.msra.mxu0 %v7884_v63  ;;  %4836 = vmatpush1.bf16.msra.mxu1 %v7887_v0  ;;  %v7928_v63 = vld [vmem:[#allocation2 + $0xd4] ss:$244 sps:$4 sm:$0xff]   ;;  %v7931_v0 = vld [vmem:[#allocation2 + $0xdc] ss:$244 sps:$4 sm:$0xff]  }
 0x218   :  { %4796 = vmatprep.subr.bf16.mxu0 %v7892_v11  ;;  %4837 = vmatprep.subr.bf16.mxu1 %v7895_v12  ;;  %v7934_v11 = vld [vmem:[#allocation2 + $0x11fc] ss:$244 sps:$4 sm:$0xff]   ;;  %v7937_v12 = vld [vmem:[#allocation2 + $0x1204] ss:$244 sps:$4 sm:$0xff]  }
 0x219   :  { %7063 = vmatprep.mubr.msk.bf16.mxu0 %vm3724_vm0, %v8677_v51  ;;  %7064 = vmatprep.mubr.msk.bf16.mxu1 %vm3724_vm0, %v8677_v51 }
 0x21b   :  { %4797 = vmatpush1.bf16.msra.mxu0 %v7890_v13  ;;  %4838 = vmatpush1.bf16.msra.mxu1 %v7893_v14  ;;  %v7932_v13 = vld [vmem:[#allocation2 + $0x11f8] ss:$244 sps:$4 sm:$0xff]   ;;  %v7935_v14 = vld [vmem:[#allocation2 + $0x1200] ss:$244 sps:$4 sm:$0xff]  }
 0x21c   :  { %4798 = vmatprep.subr.bf16.mxu0 %v7898_v15  ;;  %4839 = vmatprep.subr.bf16.mxu1 %v7901_v16  ;;  %v7940_v15 = vld [vmem:[#allocation2 + $0x1014] ss:$244 sps:$4 sm:$0xff]   ;;  %v7943_v16 = vld [vmem:[#allocation2 + $0x101c] ss:$244 sps:$4 sm:$0xff]  }
 0x21f   :  { %4799 = vmatpush1.bf16.msra.mxu0 %v7896_v19  ;;  %4840 = vmatpush1.bf16.msra.mxu1 %v7899_v20 }
 0x220   :  { %4800 = vmatprep.subr.bf16.mxu0 %v7904_v23  ;;  %4841 = vmatprep.subr.bf16.mxu1 %v7907_v24  ;;  %v7938_v23 = vld [vmem:[#allocation2 + $0x1010] ss:$244 sps:$4 sm:$0xff]   ;;  %v7941_v24 = vld [vmem:[#allocation2 + $0x1018] ss:$244 sps:$4 sm:$0xff]  }
 0x223   :  { %4801 = vmatpush1.bf16.msra.mxu0 %v7902_v25  ;;  %4842 = vmatpush1.bf16.msra.mxu1 %v7905_v26 }
 0x224   :  { %4802 = vmatprep.subr.bf16.mxu0 %v7910_v27  ;;  %4843 = vmatprep.subr.bf16.mxu1 %v7913_v28  ;;  %v7946_v27 = vld [vmem:[#allocation2 + $0xe3c] ss:$244 sps:$4 sm:$0xff]   ;;  %v7949_v28 = vld [vmem:[#allocation2 + $0xe44] ss:$244 sps:$4 sm:$0xff]  }
 0x227   :  { %4803 = vmatpush1.bf16.msra.mxu0 %v7908_v29  ;;  %4844 = vmatpush1.bf16.msra.mxu1 %v7911_v30 }
 0x228   :  { %4804 = vmatprep.subr.bf16.mxu0 %v7916_v31  ;;  %4845 = vmatprep.subr.bf16.mxu1 %v7919_v32  ;;  %v7944_v31 = vld [vmem:[#allocation2 + $0xe38] ss:$244 sps:$4 sm:$0xff]   ;;  %v7947_v32 = vld [vmem:[#allocation2 + $0xe40] ss:$244 sps:$4 sm:$0xff]  }
 0x22b   :  { %4805 = vmatpush1.bf16.msra.mxu0 %v7914_v36  ;;  %4846 = vmatpush1.bf16.msra.mxu1 %v7917_v38 }
 0x22c   :  { %4806 = vmatprep.subr.bf16.mxu0 %v7922_v41  ;;  %4847 = vmatprep.subr.bf16.mxu1 %v7925_v42  ;;  %v7952_v41 = vld [vmem:[#allocation2 + $0xc54] ss:$244 sps:$4 sm:$0xff]   ;;  %v7955_v42 = vld [vmem:[#allocation2 + $0xc5c] ss:$244 sps:$4 sm:$0xff]  }
 0x22f   :  { %4807 = vmatpush1.bf16.msra.mxu0 %v7920_v55  ;;  %4848 = vmatpush1.bf16.msra.mxu1 %v7923_v56  ;;  %v7950_v55 = vld [vmem:[#allocation2 + $0xc50] ss:$244 sps:$4 sm:$0xff]   ;;  %v7953_v56 = vld [vmem:[#allocation2 + $0xc58] ss:$244 sps:$4 sm:$0xff]  }
 0x230   :  { %4808 = vmatprep.subr.bf16.mxu0 %v7928_v63  ;;  %4849 = vmatprep.subr.bf16.mxu1 %v7931_v0  ;;  %v7958_v63 = vld [vmem:[#allocation2 + $0xa6c] ss:$244 sps:$4 sm:$0xff]   ;;  %v7961_v0 = vld [vmem:[#allocation2 + $0xa74] ss:$244 sps:$4 sm:$0xff]  }
 0x233   :  { %4809 = vmatpush1.bf16.msra.mxu0 %v7926_v3  ;;  %4850 = vmatpush1.bf16.msra.mxu1 %v7929_v4  ;;  %v7956_v3 = vld [vmem:[#allocation2 + $0xa68] ss:$244 sps:$4 sm:$0xff]   ;;  %v7959_v4 = vld [vmem:[#allocation2 + $0xa70] ss:$244 sps:$4 sm:$0xff]  }
 0x234   :  { %4822 = vmatprep.subr.bf16.mxu0 %v7934_v11  ;;  %4863 = vmatprep.subr.bf16.mxu1 %v7937_v12  ;;  %v7964_v11 = vld [vmem:[#allocation2 + $0x884] ss:$244 sps:$4 sm:$0xff]   ;;  %v7967_v12 = vld [vmem:[#allocation2 + $0x88c] ss:$244 sps:$4 sm:$0xff]  }
 0x236   :  { %v8827_v19 = vpop.f32.mrf.mxu0  ;;  %v8829_v20 = vpop.f32.mrf.mxu1 }
 0x237   :  { %4823 = vmatpush2.bf16.msra.mxu0 %v7932_v13  ;;  %4864 = vmatpush2.bf16.msra.mxu1 %v7935_v14  ;;  %v7962_v13 = vld [vmem:[#allocation2 + $0x880] ss:$244 sps:$4 sm:$0xff]   ;;  %v7965_v14 = vld [vmem:[#allocation2 + $0x888] ss:$244 sps:$4 sm:$0xff]  }
 0x238   :  { %v8831_v25 = vpop.f32.mrf.mxu0  ;;  %v8833_v26 = vpop.f32.mrf.mxu1  ;;  %4824 = vmatprep.subr.bf16.mxu0 %v7940_v15  ;;  %4865 = vmatprep.subr.bf16.mxu1 %v7943_v16  ;;  %v7970_v15 = vld [vmem:[#allocation2 + $0x69c] ss:$244 sps:$4 sm:$0xff]   ;;  %v7973_v16 = vld [vmem:[#allocation2 + $0x6a4] ss:$244 sps:$4 sm:$0xff]  }
 0x23a   :  { %v4422_v29 = vpop.f32.mrf.mxu0  ;;  %v4463_v30 = vpop.f32.mrf.mxu1 }
 0x23b   :  { %4825 = vmatpush2.bf16.msra.mxu0 %v7938_v23  ;;  %4866 = vmatpush2.bf16.msra.mxu1 %v7941_v24  ;;  %v7968_v23 = vld [vmem:[#allocation2 + $0x698] ss:$244 sps:$4 sm:$0xff]   ;;  %v7971_v24 = vld [vmem:[#allocation2 + $0x6a0] ss:$244 sps:$4 sm:$0xff]   ;;  %v7974_v29 = vld [vmem:[#allocation2 + $0x4b0] ss:$244 sps:$4 sm:$0xff]  }
 0x23c   :  { %v4423_v36 = vpop.f32.mrf.mxu0  ;;  %v4464_v38 = vpop.f32.mrf.mxu1  ;;  %4876 = vmatprep.subr.bf16.mxu0 %v7946_v27  ;;  %4917 = vmatprep.subr.bf16.mxu1 %v7949_v28  ;;  %v7976_v27 = vld [vmem:[#allocation2 + $0x4b4] ss:$244 sps:$4 sm:$0xff]   ;;  %v7979_v28 = vld [vmem:[#allocation2 + $0x4bc] ss:$244 sps:$4 sm:$0xff]   ;;  %v7977_v30 = vld [vmem:[#allocation2 + $0x4b8] ss:$244 sps:$4 sm:$0xff]  }
 0x23d   :  { %v7980_v36 = vld [vmem:[#allocation2 + $0x2c8] ss:$244 sps:$4 sm:$0xff]   ;;  %v7983_v38 = vld [vmem:[#allocation2 + $0x2d0] ss:$244 sps:$4 sm:$0xff]  }
 0x23e   :  { %4827 = vmatmul.mubr.bf16.vlgmr.msra.gmra.mxu0 %v8679_v52  ;;  %4868 = vmatmul.mubr.bf16.vlgmr.msra.gmra.mxu1 %v8679_v52 }
 0x23f   :  { %4877 = vmatpush1.bf16.msra.mxu0 %v7944_v31  ;;  %4918 = vmatpush1.bf16.msra.mxu1 %v7947_v32  ;;  %v7982_v31 = vld [vmem:[#allocation2 + $0x2cc] ss:$244 sps:$4 sm:$0xff]   ;;  %v7985_v32 = vld [vmem:[#allocation2 + $0x2d4] ss:$244 sps:$4 sm:$0xff]  }
 0x240   :  { %4878 = vmatprep.subr.bf16.mxu0 %v7952_v41  ;;  %4919 = vmatprep.subr.bf16.mxu1 %v7955_v42  ;;  %v7988_v41 = vld [vmem:[#allocation2 + $0xe4] ss:$244 sps:$4 sm:$0xff]   ;;  %v7991_v42 = vld [vmem:[#allocation2 + $0xec] ss:$244 sps:$4 sm:$0xff]  }
 0x241   :  { %7065 = vmatprep.mubr.msk.bf16.mxu0 %vm3724_vm0, %v8677_v51  ;;  %7066 = vmatprep.mubr.msk.bf16.mxu1 %vm3724_vm0, %v8677_v51 }
 0x243   :  { %4879 = vmatpush1.bf16.msra.mxu0 %v7950_v55  ;;  %4920 = vmatpush1.bf16.msra.mxu1 %v7953_v56  ;;  %v7986_v55 = vld [vmem:[#allocation2 + $0xe0] ss:$244 sps:$4 sm:$0xff]   ;;  %v7989_v56 = vld [vmem:[#allocation2 + $0xe8] ss:$244 sps:$4 sm:$0xff]  }
 0x244   :  { %4880 = vmatprep.subr.bf16.mxu0 %v7958_v63  ;;  %4921 = vmatprep.subr.bf16.mxu1 %v7961_v0  ;;  %v7994_v63 = vld [vmem:[#allocation2 + $0x120c] ss:$244 sps:$4 sm:$0xff]   ;;  %v7997_v0 = vld [vmem:[#allocation2 + $0x1214] ss:$244 sps:$4 sm:$0xff]  }
 0x247   :  { %4881 = vmatpush1.bf16.msra.mxu0 %v7956_v3  ;;  %4922 = vmatpush1.bf16.msra.mxu1 %v7959_v4  ;;  %v7992_v3 = vld [vmem:[#allocation2 + $0x1208] ss:$244 sps:$4 sm:$0xff]   ;;  %v7995_v4 = vld [vmem:[#allocation2 + $0x1210] ss:$244 sps:$4 sm:$0xff]  }
 0x248   :  { %4882 = vmatprep.subr.bf16.mxu0 %v7964_v11  ;;  %4923 = vmatprep.subr.bf16.mxu1 %v7967_v12  ;;  %v8000_v11 = vld [vmem:[#allocation2 + $0x1024] ss:$244 sps:$4 sm:$0xff]   ;;  %v8003_v12 = vld [vmem:[#allocation2 + $0x102c] ss:$244 sps:$4 sm:$0xff]  }
 0x24b   :  { %4883 = vmatpush1.bf16.msra.mxu0 %v7962_v13  ;;  %4924 = vmatpush1.bf16.msra.mxu1 %v7965_v14 }
 0x24c   :  { %4884 = vmatprep.subr.bf16.mxu0 %v7970_v15  ;;  %4925 = vmatprep.subr.bf16.mxu1 %v7973_v16  ;;  %v7998_v15 = vld [vmem:[#allocation2 + $0x1020] ss:$244 sps:$4 sm:$0xff]   ;;  %v8001_v16 = vld [vmem:[#allocation2 + $0x1028] ss:$244 sps:$4 sm:$0xff]  }
 0x24f   :  { %4885 = vmatpush1.bf16.msra.mxu0 %v7968_v23  ;;  %4926 = vmatpush1.bf16.msra.mxu1 %v7971_v24 }
 0x250   :  { %4886 = vmatprep.subr.bf16.mxu0 %v7976_v27  ;;  %4927 = vmatprep.subr.bf16.mxu1 %v7979_v28 }
 0x253   :  { %4887 = vmatpush1.bf16.msra.mxu0 %v7974_v29  ;;  %4928 = vmatpush1.bf16.msra.mxu1 %v7977_v30  ;;  %v8004_v29 = vld [vmem:[#allocation2 + $0xe48] ss:$244 sps:$4 sm:$0xff]  }
 0x254   :  { %4888 = vmatprep.subr.bf16.mxu0 %v7982_v31  ;;  %4929 = vmatprep.subr.bf16.mxu1 %v7985_v32  ;;  %v9166_v32 = vmov 0  }
 0x257   :  { %4889 = vmatpush1.bf16.msra.mxu0 %v7980_v36  ;;  %4930 = vmatpush1.bf16.msra.mxu1 %v7983_v38  ;;  %v8014_v36 = vld [vmem:[#allocation2 + $0xd5c] ss:$244 sps:$4 sm:$0xff]   ;;  %v8015_v38 = vld [vmem:[#allocation2 + $0xd58] ss:$244 sps:$4 sm:$0xff]  }
 0x258   :  { %4890 = vmatprep.subr.bf16.mxu0 %v7988_v41  ;;  %4931 = vmatprep.subr.bf16.mxu1 %v7991_v42  ;;  %v8005_v41 = vld [vmem:[#allocation2 + $0xc60] ss:$244 sps:$4 sm:$0xff]  }
 0x259   :  { %v8016_v42 = vld [vmem:[#allocation2 + $0xb74] ss:$244 sps:$4 sm:$0xff]  }
 0x25b   :  { %4891 = vmatpush1.bf16.msra.mxu0 %v7986_v55  ;;  %4932 = vmatpush1.bf16.msra.mxu1 %v7989_v56  ;;  %v8017_v55 = vld [vmem:[#allocation2 + $0xb70] ss:$244 sps:$4 sm:$0xff]   ;;  %v8006_v56 = vld [vmem:[#allocation2 + $0xa78] ss:$244 sps:$4 sm:$0xff]  }
 0x25c   :  { %4904 = vmatprep.subr.bf16.mxu0 %v7994_v63  ;;  %4945 = vmatprep.subr.bf16.mxu1 %v7997_v0  ;;  %v8018_v63 = vld [vmem:[#allocation2 + $0x98c] ss:$244 sps:$4 sm:$0xff]   ;;  %v8019_v0 = vld [vmem:[#allocation2 + $0x988] ss:$244 sps:$4 sm:$0xff]  }
 0x25e   :  { %v8841_v13 = vpop.f32.mrf.mxu0  ;;  %v8843_v14 = vpop.f32.mrf.mxu1 }
 0x25f   :  { %4905 = vmatpush2.bf16.msra.mxu0 %v7992_v3  ;;  %4946 = vmatpush2.bf16.msra.mxu1 %v7995_v4  ;;  %v8007_v3 = vld [vmem:[#allocation2 + $0x890] ss:$244 sps:$4 sm:$0xff]  }
 0x260   :  { %v8845_v23 = vpop.f32.mrf.mxu0  ;;  %v8847_v24 = vpop.f32.mrf.mxu1  ;;  %4906 = vmatprep.subr.bf16.mxu0 %v8000_v11  ;;  %4947 = vmatprep.subr.bf16.mxu1 %v8003_v12  ;;  %v8020_v4 = vld [vmem:[#allocation2 + $0x7a4] ss:$244 sps:$4 sm:$0xff]   ;;  %v8008_v11 = vld [vmem:[#allocation2 + $0x6a8] ss:$244 sps:$4 sm:$0xff]  }
 0x261   :  { %v8022_v12 = vld [vmem:[#allocation2 + $0x5bc] ss:$244 sps:$4 sm:$0xff]  }
 0x262   :  { %v4504_v27 = vpop.f32.mrf.mxu0  ;;  %v4545_v28 = vpop.f32.mrf.mxu1 }
 0x263   :  { %4907 = vmatpush2.bf16.msra.mxu0 %v7998_v15  ;;  %4948 = vmatpush2.bf16.msra.mxu1 %v8001_v16  ;;  %v8023_v15 = vld [vmem:[#allocation2 + $0x5b8] ss:$244 sps:$4 sm:$0xff]   ;;  %v8009_v16 = vld [vmem:[#allocation2 + $0x4c0] ss:$244 sps:$4 sm:$0xff]   ;;  %v8025_v28 = vld [vmem:[#allocation2 + $0x3d0] ss:$244 sps:$4 sm:$0xff]  }
 0x264   :  { %v4505_v30 = vpop.f32.mrf.mxu0  ;;  %v4546_v31 = vpop.f32.mrf.mxu1  ;;  %4958 = vmatprep.subr.bf16.mxu0 %v9166_v32  ;;  %5001 = vmatprep.subr.bf16.mxu1 %v8014_v36  ;;  %v8024_v27 = vld [vmem:[#allocation2 + $0x3d4] ss:$244 sps:$4 sm:$0xff]   ;;  %v8011_v36 = vld [vmem:[#allocation2 + $0xf0] ss:$244 sps:$4 sm:$0xff]  }
 0x265   :  { %v8026_v30 = vld [vmem:[#allocation2 + $0x1ec] ss:$244 sps:$4 sm:$0xff]   ;;  %v8027_v31 = vld [vmem:[#allocation2 + $0x1e8] ss:$244 sps:$4 sm:$0xff]  }
 0x266   :  { %4909 = vmatmul.mubr.bf16.vlgmr.msra.gmra.mxu0 %v8679_v52  ;;  %4950 = vmatmul.mubr.bf16.vlgmr.msra.gmra.mxu1 %v8679_v52 }
 0x267   :  { %4959 = vmatpush1.bf16.msra.mxu0 %v8004_v29  ;;  %5002 = vmatpush1.bf16.msra.mxu1 %v8015_v38  ;;  %v8010_v29 = vld [vmem:[#allocation2 + $0x2d8] ss:$244 sps:$4 sm:$0xff]  }
 0x268   :  { %4960 = vmatprep.subr.bf16.mxu0 %v9166_v32  ;;  %5003 = vmatprep.subr.bf16.mxu1 %v8016_v42  ;;  %v8028_v38 = vld [vmem:[#allocation2 + $0x4] ss:$244 sps:$4 sm:$0xff]  }
 0x269   :  { %7067 = vmatprep.mubr.msk.bf16.mxu0 %vm3724_vm0, %v8677_v51  ;;  %7068 = vmatprep.mubr.msk.bf16.mxu1 %vm3724_vm0, %v8673_v37  ;;  %v8021_v51 = vld [vmem:[#allocation2 + $0x7a0] ss:$244 sps:$4 sm:$0xff]   ;;  %v8012_v42 = vld [vmem:[#allocation2 + $0x1218] ss:$244 sps:$4 sm:$0xff]  }
 0x26b   :  { %4961 = vmatpush1.bf16.msra.mxu0 %v8005_v41  ;;  %5004 = vmatpush1.bf16.msra.mxu1 %v8017_v55  ;;  %v8029_v41 = vld [vmem:[#allocation2] ss:$244 sps:$4 sm:$0xff]  }
 0x26c   :  { %4962 = vmatprep.subr.bf16.mxu0 %v9166_v32  ;;  %5005 = vmatprep.subr.bf16.mxu1 %v8018_v63  ;;  %v8030_v55 = vld [vmem:[#allocation2 + $0x112c] ss:$244 sps:$4 sm:$0xff]  }
 0x26f   :  { %4963 = vmatpush1.bf16.msra.mxu0 %v8006_v56  ;;  %5006 = vmatpush1.bf16.msra.mxu1 %v8019_v0  ;;  %v8031_v0 = vld [vmem:[#allocation2 + $0x1128] ss:$244 sps:$4 sm:$0xff]  }
 0x270   :  { %4964 = vmatprep.subr.bf16.mxu0 %v9166_v32  ;;  %5007 = vmatprep.subr.bf16.mxu1 %v8020_v4 }
 0x273   :  { %4965 = vmatpush1.bf16.msra.mxu0 %v8007_v3  ;;  %5008 = vmatpush1.bf16.msra.mxu1 %v8021_v51  ;;  %v8013_v3 = vld [vmem:[#allocation2 + $0x1030] ss:$244 sps:$4 sm:$0xff]  }
 0x274   :  { %4966 = vmatprep.subr.bf16.mxu0 %v9166_v32  ;;  %5009 = vmatprep.subr.bf16.mxu1 %v8022_v12 }
 0x277   :  { %4967 = vmatpush1.bf16.msra.mxu0 %v8008_v11  ;;  %5010 = vmatpush1.bf16.msra.mxu1 %v8023_v15  ;;  %v8032_v11 = vld [vmem:[#allocation2 + $0xf44] ss:$244 sps:$4 sm:$0xff]  }
 0x278   :  { %4968 = vmatprep.subr.bf16.mxu0 %v9166_v32  ;;  %5011 = vmatprep.subr.bf16.mxu1 %v8024_v27 }
 0x27b   :  { %4969 = vmatpush1.bf16.msra.mxu0 %v8009_v16  ;;  %5012 = vmatpush1.bf16.msra.mxu1 %v8025_v28  ;;  %v8033_v16 = vld [vmem:[#allocation2 + $0xf40] ss:$244 sps:$4 sm:$0xff]  }
 0x27c   :  { %4970 = vmatprep.subr.bf16.mxu0 %v9166_v32  ;;  %5013 = vmatprep.subr.bf16.mxu1 %v8026_v30  ;;  %v8035_v30 = vld [vmem:[#allocation2 + $0xd6c] ss:$244 sps:$4 sm:$0xff]  }
 0x27f   :  { %4971 = vmatpush1.bf16.msra.mxu0 %v8010_v29  ;;  %5014 = vmatpush1.bf16.msra.mxu1 %v8027_v31  ;;  %v8034_v29 = vld [vmem:[#allocation2 + $0xd64] ss:$244 sps:$4 sm:$0xff]   ;;  %v8036_v31 = vld [vmem:[#allocation2 + $0xd60] ss:$244 sps:$4 sm:$0xff]  }
 0x280   :  { %4972 = vmatprep.subr.bf16.mxu0 %v9166_v32  ;;  %5015 = vmatprep.subr.bf16.mxu1 %v8028_v38  ;;  %v8038_v38 = vld [vmem:[#allocation2 + $0xb7c] ss:$244 sps:$4 sm:$0xff]  }
 0x283   :  { %4973 = vmatpush1.bf16.msra.mxu0 %v8011_v36  ;;  %5016 = vmatpush1.bf16.msra.mxu1 %v8029_v41  ;;  %v8037_v36 = vld [vmem:[#allocation2 + $0xd68] ss:$244 sps:$4 sm:$0xff]   ;;  %v8039_v41 = vld [vmem:[#allocation2 + $0xb84] ss:$244 sps:$4 sm:$0xff]  }
 0x284   :  { %4986 = vmatprep.subr.bf16.mxu0 %v9166_v32  ;;  %5029 = vmatprep.subr.bf16.mxu1 %v8030_v55  ;;  %v8041_v55 = vld [vmem:[#allocation2 + $0xb80] ss:$244 sps:$4 sm:$0xff]  }
 0x286   :  { %v8864_v56 = vpop.f32.mrf.mxu0  ;;  %v8866_v63 = vpop.f32.mrf.mxu1 }
 0x287   :  { %4987 = vmatpush2.bf16.msra.mxu0 %v8012_v42  ;;  %5030 = vmatpush2.bf16.msra.mxu1 %v8031_v0  ;;  %v8040_v42 = vld [vmem:[#allocation2 + $0xb78] ss:$244 sps:$4 sm:$0xff]   ;;  %v8043_v0 = vld [vmem:[#allocation2 + $0x99c] ss:$244 sps:$4 sm:$0xff]  }
 0x288   :  { %v8868_v4 = vpop.f32.mrf.mxu0  ;;  %v8870_v51 = vpop.f32.mrf.mxu1  ;;  %4988 = vmatprep.subr.bf16.mxu0 %v9166_v32  ;;  %5031 = vmatprep.subr.bf16.mxu1 %v8032_v11  ;;  %v8045_v11 = vld [vmem:[#allocation2 + $0x998] ss:$244 sps:$4 sm:$0xff]  }
 0x28a   :  { %v4586_v12 = vpop.f32.mrf.mxu0  ;;  %v4627_v15 = vpop.f32.mrf.mxu1 }
 0x28b   :  { %4989 = vmatpush2.bf16.msra.mxu0 %v8013_v3  ;;  %5032 = vmatpush2.bf16.msra.mxu1 %v8033_v16  ;;  %v8044_v3 = vld [vmem:[#allocation2 + $0x990] ss:$244 sps:$4 sm:$0xff]   ;;  %v8046_v12 = vld [vmem:[#allocation2 + $0x7ac] ss:$244 sps:$4 sm:$0xff]   ;;  %v8047_v15 = vld [vmem:[#allocation2 + $0x7b4] ss:$244 sps:$4 sm:$0xff]  }
 0x28c   :  { %v4587_v27 = vpop.f32.mrf.mxu0  ;;  %v4628_v28 = vpop.f32.mrf.mxu1  ;;  %5042 = vmatprep.subr.bf16.mxu0 %v8034_v29  ;;  %5083 = vmatprep.subr.bf16.mxu1 %v8035_v30  ;;  %v8048_v16 = vld [vmem:[#allocation2 + $0x7a8] ss:$244 sps:$4 sm:$0xff]   ;;  %v8051_v29 = vld [vmem:[#allocation2 + $0x5cc] ss:$244 sps:$4 sm:$0xff]  }
 0x28d   :  { %v8049_v27 = vld [vmem:[#allocation2 + $0x7b0] ss:$244 sps:$4 sm:$0xff]   ;;  %v8052_v30 = vld [vmem:[#allocation2 + $0x5c0] ss:$244 sps:$4 sm:$0xff]  }
 0x28e   :  { %4991 = vmatmul.mubr.bf16.vlgmr.msra.gmra.mxu0 %v8679_v52  ;;  %5034 = vmatmul.mubr.bf16.vlgmr.msra.gmra.mxu1 %v8671_v33  ;;  %v8042_v52 = vld [vmem:[#allocation2 + $0x994] ss:$244 sps:$4 sm:$0xff]   ;;  %v8050_v28 = vld [vmem:[#allocation2 + $0x5c4] ss:$244 sps:$4 sm:$0xff]  }
 0x28f   :  { %5043 = vmatpush1.bf16.msra.mxu0 %v8036_v31  ;;  %5084 = vmatpush1.bf16.msra.mxu1 %v8037_v36  ;;  %v8053_v31 = vld [vmem:[#allocation2 + $0x5c8] ss:$244 sps:$4 sm:$0xff]  }
 0x290   :  { %5044 = vmatprep.subr.bf16.mxu0 %v8038_v38  ;;  %5085 = vmatprep.subr.bf16.mxu1 %v8039_v41  ;;  %v8054_v36 = vld [vmem:[#allocation2 + $0x3dc] ss:$244 sps:$4 sm:$0xff]   ;;  %v8055_v38 = vld [vmem:[#allocation2 + $0x3e4] ss:$244 sps:$4 sm:$0xff]  }
 0x291   :  { %7069 = vmatprep.mubr.msk.bf16.mxu0 %vm3724_vm0, %v8673_v37  ;;  %7070 = vmatprep.mubr.msk.bf16.mxu1 %vm3724_vm0, %v8673_v37  ;;  %v8056_v41 = vld [vmem:[#allocation2 + $0x3d8] ss:$244 sps:$4 sm:$0xff]  }
 0x293   :  { %5045 = vmatpush1.bf16.msra.mxu0 %v8040_v42  ;;  %5086 = vmatpush1.bf16.msra.mxu1 %v8041_v55  ;;  %v8057_v42 = vld [vmem:[#allocation2 + $0x3e0] ss:$244 sps:$4 sm:$0xff]  }
 0x294   :  { %5046 = vmatprep.subr.bf16.mxu0 %v8042_v52  ;;  %5087 = vmatprep.subr.bf16.mxu1 %v8043_v0  ;;  %v8058_v55 = vld [vmem:[#allocation2 + $0x1f4] ss:$244 sps:$4 sm:$0xff]   ;;  %v8059_v52 = vld [vmem:[#allocation2 + $0x1fc] ss:$244 sps:$4 sm:$0xff]  }
 0x295   :  { %v8060_v0 = vld [vmem:[#allocation2 + $0x1f0] ss:$244 sps:$4 sm:$0xff]  }
 0x297   :  { %5047 = vmatpush1.bf16.msra.mxu0 %v8044_v3  ;;  %5088 = vmatpush1.bf16.msra.mxu1 %v8045_v11  ;;  %v8061_v3 = vld [vmem:[#allocation2 + $0x1f8] ss:$244 sps:$4 sm:$0xff]  }
 0x298   :  { %5048 = vmatprep.subr.bf16.mxu0 %v8046_v12  ;;  %5089 = vmatprep.subr.bf16.mxu1 %v8047_v15  ;;  %v8062_v11 = vld [vmem:[#allocation2 + $0xc] ss:$244 sps:$4 sm:$0xff]   ;;  %v8063_v12 = vld [vmem:[#allocation2 + $0x14] ss:$244 sps:$4 sm:$0xff]  }
 0x299   :  { %v8064_v15 = vld [vmem:[#allocation2 + $0x8] ss:$244 sps:$4 sm:$0xff]  }
 0x29b   :  { %5049 = vmatpush1.bf16.msra.mxu0 %v8048_v16  ;;  %5090 = vmatpush1.bf16.msra.mxu1 %v8049_v27  ;;  %v8065_v16 = vld [vmem:[#allocation2 + $0x10] ss:$244 sps:$4 sm:$0xff]   ;;  %v8066_v27 = vld [vmem:[#allocation2 + $0x1134] ss:$244 sps:$4 sm:$0xff]  }
 0x29c   :  { %5050 = vmatprep.subr.bf16.mxu0 %v8050_v28  ;;  %5091 = vmatprep.subr.bf16.mxu1 %v8051_v29  ;;  %v8067_v28 = vld [vmem:[#allocation2 + $0x113c] ss:$244 sps:$4 sm:$0xff]  }
 0x29f   :  { %5051 = vmatpush1.bf16.msra.mxu0 %v8052_v30  ;;  %5092 = vmatpush1.bf16.msra.mxu1 %v8053_v31  ;;  %v8068_v31 = vld [vmem:[#allocation2 + $0x1130] ss:$244 sps:$4 sm:$0xff]  }
 0x2a0   :  { %5052 = vmatprep.subr.bf16.mxu0 %v8054_v36  ;;  %5093 = vmatprep.subr.bf16.mxu1 %v8055_v38  ;;  %v8069_v36 = vld [vmem:[#allocation2 + $0x1138] ss:$244 sps:$4 sm:$0xff]  }
 0x2a3   :  { %5053 = vmatpush1.bf16.msra.mxu0 %v8056_v41  ;;  %5094 = vmatpush1.bf16.msra.mxu1 %v8057_v42  ;;  %v8070_v42 = vld [vmem:[#allocation2 + $0xf4c] ss:$244 sps:$4 sm:$0xff]  }
 0x2a4   :  { %5054 = vmatprep.subr.bf16.mxu0 %v8058_v55  ;;  %5095 = vmatprep.subr.bf16.mxu1 %v8059_v52  ;;  %v8071_v55 = vld [vmem:[#allocation2 + $0xf54] ss:$244 sps:$4 sm:$0xff]  }
 0x2a7   :  { %5055 = vmatpush1.bf16.msra.mxu0 %v8060_v0  ;;  %5096 = vmatpush1.bf16.msra.mxu1 %v8061_v3  ;;  %v8072_v3 = vld [vmem:[#allocation2 + $0xf48] ss:$244 sps:$4 sm:$0xff]  }
 0x2a8   :  { %5056 = vmatprep.subr.bf16.mxu0 %v8062_v11  ;;  %5097 = vmatprep.subr.bf16.mxu1 %v8063_v12  ;;  %v8073_v11 = vld [vmem:[#allocation2 + $0xf50] ss:$244 sps:$4 sm:$0xff]  }
 0x2ab   :  { %5057 = vmatpush1.bf16.msra.mxu0 %v8064_v15  ;;  %5098 = vmatpush1.bf16.msra.mxu1 %v8065_v16  ;;  %v8074_v16 = vld [vmem:[#allocation2 + $0xd74] ss:$244 sps:$4 sm:$0xff]  }
 0x2ac   :  { %5070 = vmatprep.subr.bf16.mxu0 %v8066_v27  ;;  %5111 = vmatprep.subr.bf16.mxu1 %v8067_v28  ;;  %v8075_v27 = vld [vmem:[#allocation2 + $0xd7c] ss:$244 sps:$4 sm:$0xff]  }
 0x2ad   :  { %v8076_v28 = vld [vmem:[#allocation2 + $0xd70] ss:$244 sps:$4 sm:$0xff]  }
 0x2ae   :  { %v8879_v29 = vpop.f32.mrf.mxu0  ;;  %v8881_v30 = vpop.f32.mrf.mxu1 }
 0x2af   :  { %9168 = vst [vmem:[#allocation5_spill] sm:$0xff] %v8881_v30  ;;  %5071 = vmatpush2.bf16.msra.mxu0 %v8068_v31  ;;  %5112 = vmatpush2.bf16.msra.mxu1 %v8069_v36  ;;  %v8077_v31 = vld [vmem:[#allocation2 + $0xd78] ss:$244 sps:$4 sm:$0xff]  }
 0x2b0   :  { %v8883_v38 = vpop.f32.mrf.mxu0  ;;  %v8885_v41 = vpop.f32.mrf.mxu1  ;;  %5072 = vmatprep.subr.bf16.mxu0 %v8070_v42  ;;  %5113 = vmatprep.subr.bf16.mxu1 %v8071_v55  ;;  %v8078_v36 = vld [vmem:[#allocation2 + $0xb8c] ss:$244 sps:$4 sm:$0xff]   ;;  %v8079_v42 = vld [vmem:[#allocation2 + $0xb94] ss:$244 sps:$4 sm:$0xff]   ;;  %v8274_v30 = vld [vmem:[#allocation2 + $0xdc4] ss:$244 sps:$4 sm:$0xff]  }
 0x2b1   :  { %9169 = vst [vmem:[#allocation6_spill] sm:$0xff] %v8885_v41  ;;  %v8080_v55 = vld [vmem:[#allocation2 + $0xb88] ss:$244 sps:$4 sm:$0xff]  }
 0x2b2   :  { %v4668_v52 = vpop.f32.mrf.mxu0  ;;  %v4709_v0 = vpop.f32.mrf.mxu1  ;;  %v8232_v41 = vld [vmem:[#allocation2 + $0xf88] ss:$244 sps:$4 sm:$0xff]  }
 0x2b3   :  { %5073 = vmatpush2.bf16.msra.mxu0 %v8072_v3  ;;  %5114 = vmatpush2.bf16.msra.mxu1 %v8073_v11  ;;  %v8081_v52 = vld [vmem:[#allocation2 + $0xb90] ss:$244 sps:$4 sm:$0xff]   ;;  %v8083_v3 = vld [vmem:[#allocation2 + $0x9ac] ss:$244 sps:$4 sm:$0xff]  }
 0x2b4   :  { %v4669_v12 = vpop.f32.mrf.mxu0  ;;  %v4710_v15 = vpop.f32.mrf.mxu1  ;;  %5124 = vmatprep.subr.bf16.mxu0 %v8074_v16  ;;  %5165 = vmatprep.subr.bf16.mxu1 %v8075_v27  ;;  %v8082_v0 = vld [vmem:[#allocation2 + $0x9a4] ss:$244 sps:$4 sm:$0xff]   ;;  %v8084_v11 = vld [vmem:[#allocation2 + $0x9a0] ss:$244 sps:$4 sm:$0xff]  }
 0x2b5   :  { %v8085_v12 = vld [vmem:[#allocation2 + $0x9a8] ss:$244 sps:$4 sm:$0xff]   ;;  %v8087_v16 = vld [vmem:[#allocation2 + $0x7c4] ss:$244 sps:$4 sm:$0xff]  }
 0x2b6   :  { %5075 = vmatmul.mubr.bf16.vlgmr.msra.gmra.mxu0 %v8671_v33  ;;  %5116 = vmatmul.mubr.bf16.vlgmr.msra.gmra.mxu1 %v8671_v33  ;;  %v8086_v15 = vld [vmem:[#allocation2 + $0x7bc] ss:$244 sps:$4 sm:$0xff]   ;;  %v8088_v27 = vld [vmem:[#allocation2 + $0x7b8] ss:$244 sps:$4 sm:$0xff]  }
 0x2b7   :  { %5125 = vmatpush1.bf16.msra.mxu0 %v8076_v28  ;;  %5166 = vmatpush1.bf16.msra.mxu1 %v8077_v31  ;;  %v8089_v28 = vld [vmem:[#allocation2 + $0x7c0] ss:$244 sps:$4 sm:$0xff]  }
 0x2b8   :  { %5126 = vmatprep.subr.bf16.mxu0 %v8078_v36  ;;  %5167 = vmatprep.subr.bf16.mxu1 %v8079_v42  ;;  %v8090_v31 = vld [vmem:[#allocation2 + $0x5d4] ss:$244 sps:$4 sm:$0xff]   ;;  %v8091_v36 = vld [vmem:[#allocation2 + $0x5dc] ss:$244 sps:$4 sm:$0xff]  }
 0x2b9   :  { %7071 = vmatprep.mubr.msk.bf16.mxu0 %vm3724_vm0, %v8673_v37  ;;  %7072 = vmatprep.mubr.msk.bf16.mxu1 %vm3724_vm0, %v8673_v37  ;;  %v8092_v42 = vld [vmem:[#allocation2 + $0x5d0] ss:$244 sps:$4 sm:$0xff]  }
 0x2bb   :  { %5127 = vmatpush1.bf16.msra.mxu0 %v8080_v55  ;;  %5168 = vmatpush1.bf16.msra.mxu1 %v8081_v52  ;;  %v8093_v55 = vld [vmem:[#allocation2 + $0x5d8] ss:$244 sps:$4 sm:$0xff]  }
 0x2bc   :  { %5128 = vmatprep.subr.bf16.mxu0 %v8082_v0  ;;  %5169 = vmatprep.subr.bf16.mxu1 %v8083_v3  ;;  %v8094_v52 = vld [vmem:[#allocation2 + $0x3ec] ss:$244 sps:$4 sm:$0xff]   ;;  %v8095_v0 = vld [vmem:[#allocation2 + $0x3f4] ss:$244 sps:$4 sm:$0xff]  }
 0x2bd   :  { %v8096_v3 = vld [vmem:[#allocation2 + $0x3e8] ss:$244 sps:$4 sm:$0xff]  }
 0x2bf   :  { %5129 = vmatpush1.bf16.msra.mxu0 %v8084_v11  ;;  %5170 = vmatpush1.bf16.msra.mxu1 %v8085_v12  ;;  %v8097_v11 = vld [vmem:[#allocation2 + $0x3f0] ss:$244 sps:$4 sm:$0xff]  }
 0x2c0   :  { %5130 = vmatprep.subr.bf16.mxu0 %v8086_v15  ;;  %5171 = vmatprep.subr.bf16.mxu1 %v8087_v16  ;;  %v8098_v12 = vld [vmem:[#allocation2 + $0x204] ss:$244 sps:$4 sm:$0xff]   ;;  %v8099_v15 = vld [vmem:[#allocation2 + $0x20c] ss:$244 sps:$4 sm:$0xff]  }
 0x2c1   :  { %v8100_v16 = vld [vmem:[#allocation2 + $0x200] ss:$244 sps:$4 sm:$0xff]  }
 0x2c3   :  { %5131 = vmatpush1.bf16.msra.mxu0 %v8088_v27  ;;  %5172 = vmatpush1.bf16.msra.mxu1 %v8089_v28  ;;  %v8101_v27 = vld [vmem:[#allocation2 + $0x208] ss:$244 sps:$4 sm:$0xff]  }
 0x2c4   :  { %5132 = vmatprep.subr.bf16.mxu0 %v8090_v31  ;;  %5173 = vmatprep.subr.bf16.mxu1 %v8091_v36  ;;  %v8102_v28 = vld [vmem:[#allocation2 + $0x1c] ss:$244 sps:$4 sm:$0xff]   ;;  %v8103_v31 = vld [vmem:[#allocation2 + $0x24] ss:$244 sps:$4 sm:$0xff]  }
 0x2c5   :  { %v8104_v36 = vld [vmem:[#allocation2 + $0x18] ss:$244 sps:$4 sm:$0xff]  }
 0x2c7   :  { %5133 = vmatpush1.bf16.msra.mxu0 %v8092_v42  ;;  %5174 = vmatpush1.bf16.msra.mxu1 %v8093_v55  ;;  %v8105_v42 = vld [vmem:[#allocation2 + $0x20] ss:$244 sps:$4 sm:$0xff]   ;;  %v8106_v55 = vld [vmem:[#allocation2 + $0x1144] ss:$244 sps:$4 sm:$0xff]  }
 0x2c8   :  { %5134 = vmatprep.subr.bf16.mxu0 %v8094_v52  ;;  %5175 = vmatprep.subr.bf16.mxu1 %v8095_v0  ;;  %v8107_v52 = vld [vmem:[#allocation2 + $0x114c] ss:$244 sps:$4 sm:$0xff]  }
 0x2cb   :  { %5135 = vmatpush1.bf16.msra.mxu0 %v8096_v3  ;;  %5176 = vmatpush1.bf16.msra.mxu1 %v8097_v11  ;;  %v8108_v11 = vld [vmem:[#allocation2 + $0x1140] ss:$244 sps:$4 sm:$0xff]  }
 0x2cc   :  { %5136 = vmatprep.subr.bf16.mxu0 %v8098_v12  ;;  %5177 = vmatprep.subr.bf16.mxu1 %v8099_v15  ;;  %v8109_v12 = vld [vmem:[#allocation2 + $0x1148] ss:$244 sps:$4 sm:$0xff]  }
 0x2cf   :  { %5137 = vmatpush1.bf16.msra.mxu0 %v8100_v16  ;;  %5178 = vmatpush1.bf16.msra.mxu1 %v8101_v27  ;;  %v8110_v27 = vld [vmem:[#allocation2 + $0xf5c] ss:$244 sps:$4 sm:$0xff]  }
 0x2d0   :  { %5138 = vmatprep.subr.bf16.mxu0 %v8102_v28  ;;  %5179 = vmatprep.subr.bf16.mxu1 %v8103_v31  ;;  %v8111_v28 = vld [vmem:[#allocation2 + $0xf64] ss:$244 sps:$4 sm:$0xff]  }
 0x2d3   :  { %5139 = vmatpush1.bf16.msra.mxu0 %v8104_v36  ;;  %5180 = vmatpush1.bf16.msra.mxu1 %v8105_v42  ;;  %v8112_v42 = vld [vmem:[#allocation2 + $0xf58] ss:$244 sps:$4 sm:$0xff]  }
 0x2d4   :  { %5152 = vmatprep.subr.bf16.mxu0 %v8106_v55  ;;  %5193 = vmatprep.subr.bf16.mxu1 %v8107_v52  ;;  %v8113_v55 = vld [vmem:[#allocation2 + $0xf60] ss:$244 sps:$4 sm:$0xff]  }
 0x2d6   :  { %v8893_v0 = vpop.f32.mrf.mxu0  ;;  %v8895_v3 = vpop.f32.mrf.mxu1 }
 0x2d7   :  { %9170 = vst [vmem:[#allocation7_spill] sm:$0xff] %v8893_v0  ;;  %9171 = vst [vmem:[#allocation8_spill] sm:$0xff] %v8895_v3  ;;  %5153 = vmatpush2.bf16.msra.mxu0 %v8108_v11  ;;  %5194 = vmatpush2.bf16.msra.mxu1 %v8109_v12  ;;  %v8114_v3 = vld [vmem:[#allocation2 + $0xd84] ss:$244 sps:$4 sm:$0xff]   ;;  %v8115_v11 = vld [vmem:[#allocation2 + $0xd8c] ss:$244 sps:$4 sm:$0xff]  }
 0x2d8   :  { %v8897_v15 = vpop.f32.mrf.mxu0  ;;  %v8899_v16 = vpop.f32.mrf.mxu1  ;;  %5154 = vmatprep.subr.bf16.mxu0 %v8110_v27  ;;  %5195 = vmatprep.subr.bf16.mxu1 %v8111_v28  ;;  %v8116_v12 = vld [vmem:[#allocation2 + $0xd80] ss:$244 sps:$4 sm:$0xff]   ;;  %v8117_v27 = vld [vmem:[#allocation2 + $0xd88] ss:$244 sps:$4 sm:$0xff]  }
 0x2d9   :  { %9172 = vst [vmem:[#allocation9_spill] sm:$0xff] %v8897_v15  ;;  %9173 = vst [vmem:[#allocation10_spill] sm:$0xff] %v8899_v16  ;;  %v8118_v28 = vld [vmem:[#allocation2 + $0xb9c] ss:$244 sps:$4 sm:$0xff]   ;;  %v8154_v15 = vld [vmem:[#allocation2 + $0xd94] ss:$244 sps:$4 sm:$0xff]  }
 0x2da   :  { %v4750_v31 = vpop.f32.mrf.mxu0  ;;  %v4791_v36 = vpop.f32.mrf.mxu1  ;;  %v8152_v16 = vld [vmem:[#allocation2 + $0xf68] ss:$244 sps:$4 sm:$0xff]  }
 0x2db   :  { %5155 = vmatpush2.bf16.msra.mxu0 %v8112_v42  ;;  %5196 = vmatpush2.bf16.msra.mxu1 %v8113_v55  ;;  %v8119_v31 = vld [vmem:[#allocation2 + $0xba4] ss:$244 sps:$4 sm:$0xff]   ;;  %v8122_v36 = vld [vmem:[#allocation2 + $0x9b4] ss:$244 sps:$4 sm:$0xff]   ;;  %v8123_v42 = vld [vmem:[#allocation2 + $0x9bc] ss:$244 sps:$4 sm:$0xff]  }
 0x2dc   :  { %v4751_v52 = vpop.f32.mrf.mxu0  ;;  %v4792_v32 = vpop.f32.mrf.mxu1  ;;  %5206 = vmatprep.subr.bf16.mxu0 %v8114_v3  ;;  %5247 = vmatprep.subr.bf16.mxu1 %v8115_v11  ;;  %v8121_v3 = vld [vmem:[#allocation2 + $0xba0] ss:$244 sps:$4 sm:$0xff]   ;;  %v8124_v55 = vld [vmem:[#allocation2 + $0x9b0] ss:$244 sps:$4 sm:$0xff]  }
 0x2dd   :  { %v8120_v32 = vld [vmem:[#allocation2 + $0xb98] ss:$244 sps:$4 sm:$0xff]  }
 0x2de   :  { %5157 = vmatmul.mubr.bf16.vlgmr.msra.gmra.mxu0 %v8671_v33  ;;  %5198 = vmatmul.mubr.bf16.vlgmr.msra.gmra.mxu1 %v8671_v33  ;;  %v8125_v52 = vld [vmem:[#allocation2 + $0x9b8] ss:$244 sps:$4 sm:$0xff]  }
 0x2df   :  { %5207 = vmatpush1.bf16.msra.mxu0 %v8116_v12  ;;  %5248 = vmatpush1.bf16.msra.mxu1 %v8117_v27  ;;  %v8126_v11 = vld [vmem:[#allocation2 + $0x7cc] ss:$244 sps:$4 sm:$0xff]   ;;  %v8127_v12 = vld [vmem:[#allocation2 + $0x7d4] ss:$244 sps:$4 sm:$0xff]  }
 0x2e0   :  { %5208 = vmatprep.subr.bf16.mxu0 %v8118_v28  ;;  %5249 = vmatprep.subr.bf16.mxu1 %v8119_v31  ;;  %v8128_v27 = vld [vmem:[#allocation2 + $0x7c8] ss:$244 sps:$4 sm:$0xff]   ;;  %v8129_v28 = vld [vmem:[#allocation2 + $0x7d0] ss:$244 sps:$4 sm:$0xff]  }
 0x2e1   :  { %7073 = vmatprep.mubr.msk.bf16.mxu0 %vm3724_vm0, %v8673_v37  ;;  %7074 = vmatprep.mubr.msk.bf16.mxu1 %vm3724_vm0, %v8673_v37  ;;  %v8130_v31 = vld [vmem:[#allocation2 + $0x5e4] ss:$244 sps:$4 sm:$0xff]  }
 0x2e3   :  { %5209 = vmatpush1.bf16.msra.mxu0 %v8120_v32  ;;  %5250 = vmatpush1.bf16.msra.mxu1 %v8121_v3  ;;  %v8131_v32 = vld [vmem:[#allocation2 + $0x5ec] ss:$244 sps:$4 sm:$0xff]  }
 0x2e4   :  { %5210 = vmatprep.subr.bf16.mxu0 %v8122_v36  ;;  %5251 = vmatprep.subr.bf16.mxu1 %v8123_v42  ;;  %v8132_v3 = vld [vmem:[#allocation2 + $0x5e0] ss:$244 sps:$4 sm:$0xff]   ;;  %v8133_v36 = vld [vmem:[#allocation2 + $0x5e8] ss:$244 sps:$4 sm:$0xff]  }
 0x2e5   :  { %v8134_v42 = vld [vmem:[#allocation2 + $0x3fc] ss:$244 sps:$4 sm:$0xff]  }
 0x2e7   :  { %5211 = vmatpush1.bf16.msra.mxu0 %v8124_v55  ;;  %5252 = vmatpush1.bf16.msra.mxu1 %v8125_v52  ;;  %v8135_v55 = vld [vmem:[#allocation2 + $0x404] ss:$244 sps:$4 sm:$0xff]  }
 0x2e8   :  { %5212 = vmatprep.subr.bf16.mxu0 %v8126_v11  ;;  %5253 = vmatprep.subr.bf16.mxu1 %v8127_v12  ;;  %v8136_v52 = vld [vmem:[#allocation2 + $0x3f8] ss:$244 sps:$4 sm:$0xff]   ;;  %v8137_v11 = vld [vmem:[#allocation2 + $0x400] ss:$244 sps:$4 sm:$0xff]  }
 0x2e9   :  { %v8138_v12 = vld [vmem:[#allocation2 + $0x214] ss:$244 sps:$4 sm:$0xff]  }
 0x2eb   :  { %5213 = vmatpush1.bf16.msra.mxu0 %v8128_v27  ;;  %5254 = vmatpush1.bf16.msra.mxu1 %v8129_v28  ;;  %v8139_v27 = vld [vmem:[#allocation2 + $0x21c] ss:$244 sps:$4 sm:$0xff]  }
 0x2ec   :  { %5214 = vmatprep.subr.bf16.mxu0 %v8130_v31  ;;  %5255 = vmatprep.subr.bf16.mxu1 %v8131_v32  ;;  %v8140_v28 = vld [vmem:[#allocation2 + $0x210] ss:$244 sps:$4 sm:$0xff]   ;;  %v8141_v31 = vld [vmem:[#allocation2 + $0x218] ss:$244 sps:$4 sm:$0xff]  }
 0x2ed   :  { %v8142_v32 = vld [vmem:[#allocation2 + $0x2c] ss:$244 sps:$4 sm:$0xff]  }
 0x2ef   :  { %5215 = vmatpush1.bf16.msra.mxu0 %v8132_v3  ;;  %5256 = vmatpush1.bf16.msra.mxu1 %v8133_v36  ;;  %v8143_v3 = vld [vmem:[#allocation2 + $0x34] ss:$244 sps:$4 sm:$0xff]  }
 0x2f0   :  { %5216 = vmatprep.subr.bf16.mxu0 %v8134_v42  ;;  %5257 = vmatprep.subr.bf16.mxu1 %v8135_v55  ;;  %v8144_v36 = vld [vmem:[#allocation2 + $0x28] ss:$244 sps:$4 sm:$0xff]   ;;  %v8145_v42 = vld [vmem:[#allocation2 + $0x30] ss:$244 sps:$4 sm:$0xff]  }
 0x2f1   :  { %v8146_v55 = vld [vmem:[#allocation2 + $0x1154] ss:$244 sps:$4 sm:$0xff]  }
 0x2f3   :  { %5217 = vmatpush1.bf16.msra.mxu0 %v8136_v52  ;;  %5258 = vmatpush1.bf16.msra.mxu1 %v8137_v11  ;;  %v8147_v52 = vld [vmem:[#allocation2 + $0x115c] ss:$244 sps:$4 sm:$0xff]  }
 0x2f4   :  { %5218 = vmatprep.subr.bf16.mxu0 %v8138_v12  ;;  %5259 = vmatprep.subr.bf16.mxu1 %v8139_v27  ;;  %v8148_v27 = vld [vmem:[#allocation2 + $0x1150] ss:$244 sps:$4 sm:$0xff]  }
 0x2f7   :  { %5219 = vmatpush1.bf16.msra.mxu0 %v8140_v28  ;;  %5260 = vmatpush1.bf16.msra.mxu1 %v8141_v31  ;;  %v8149_v28 = vld [vmem:[#allocation2 + $0x1158] ss:$244 sps:$4 sm:$0xff]  }
 0x2f8   :  { %5220 = vmatprep.subr.bf16.mxu0 %v8142_v32  ;;  %5261 = vmatprep.subr.bf16.mxu1 %v8143_v3  ;;  %v8150_v3 = vld [vmem:[#allocation2 + $0xf6c] ss:$244 sps:$4 sm:$0xff]  }
 0x2fb   :  { %5221 = vmatpush1.bf16.msra.mxu0 %v8144_v36  ;;  %5262 = vmatpush1.bf16.msra.mxu1 %v8145_v42  ;;  %v8151_v36 = vld [vmem:[#allocation2 + $0xf74] ss:$244 sps:$4 sm:$0xff]  }
 0x2fc   :  { %5234 = vmatprep.subr.bf16.mxu0 %v8146_v55  ;;  %5275 = vmatprep.subr.bf16.mxu1 %v8147_v52  ;;  %v8153_v52 = vld [vmem:[#allocation2 + $0xf70] ss:$244 sps:$4 sm:$0xff]  }
 0x2fe   :  { %v8907_v11 = vpop.f32.mrf.mxu0  ;;  %v8909_v12 = vpop.f32.mrf.mxu1 }
 0x2ff   :  { %9174 = vst [vmem:[#allocation11_spill] sm:$0xff] %v8907_v11  ;;  %9175 = vst [vmem:[#allocation12_spill] sm:$0xff] %v8909_v12  ;;  %5235 = vmatpush2.bf16.msra.mxu0 %v8148_v27  ;;  %5276 = vmatpush2.bf16.msra.mxu1 %v8149_v28  ;;  %v8155_v27 = vld [vmem:[#allocation2 + $0xd9c] ss:$244 sps:$4 sm:$0xff]  }
 0x300   :  { %v8911_v31 = vpop.f32.mrf.mxu0  ;;  %v8913_v32 = vpop.f32.mrf.mxu1  ;;  %5236 = vmatprep.subr.bf16.mxu0 %v8150_v3  ;;  %5277 = vmatprep.subr.bf16.mxu1 %v8151_v36  ;;  %v8156_v28 = vld [vmem:[#allocation2 + $0xd90] ss:$244 sps:$4 sm:$0xff]   ;;  %v8157_v3 = vld [vmem:[#allocation2 + $0xd98] ss:$244 sps:$4 sm:$0xff]  }
 0x301   :  { %9176 = vst [vmem:[#allocation13_spill] sm:$0xff] %v8911_v31  ;;  %9177 = vst [vmem:[#allocation14_spill] sm:$0xff] %v8913_v32  ;;  %v8158_v36 = vld [vmem:[#allocation2 + $0xbac] ss:$244 sps:$4 sm:$0xff]   ;;  %v8194_v31 = vld [vmem:[#allocation2 + $0xda4] ss:$244 sps:$4 sm:$0xff]  }
 0x302   :  { %v4832_v42 = vpop.f32.mrf.mxu0  ;;  %v4873_v55 = vpop.f32.mrf.mxu1  ;;  %v8192_v32 = vld [vmem:[#allocation2 + $0xf78] ss:$244 sps:$4 sm:$0xff]  }
 0x303   :  { %5237 = vmatpush2.bf16.msra.mxu0 %v8152_v16  ;;  %5278 = vmatpush2.bf16.msra.mxu1 %v8153_v52  ;;  %v8159_v42 = vld [vmem:[#allocation2 + $0xbb4] ss:$244 sps:$4 sm:$0xff]   ;;  %v8161_v16 = vld [vmem:[#allocation2 + $0xbb0] ss:$244 sps:$4 sm:$0xff]  }
 0x304   :  { %v4833_v11 = vpop.f32.mrf.mxu0  ;;  %v4874_v12 = vpop.f32.mrf.mxu1  ;;  %5288 = vmatprep.subr.bf16.mxu0 %v8154_v15  ;;  %5329 = vmatprep.subr.bf16.mxu1 %v8155_v27  ;;  %v8160_v15 = vld [vmem:[#allocation2 + $0xba8] ss:$244 sps:$4 sm:$0xff]   ;;  %v8164_v55 = vld [vmem:[#allocation2 + $0x9c0] ss:$244 sps:$4 sm:$0xff]  }
 0x305   :  { %v8162_v11 = vld [vmem:[#allocation2 + $0x9c4] ss:$244 sps:$4 sm:$0xff]   ;;  %v8163_v12 = vld [vmem:[#allocation2 + $0x9cc] ss:$244 sps:$4 sm:$0xff]   ;;  %v8165_v52 = vld [vmem:[#allocation2 + $0x9c8] ss:$244 sps:$4 sm:$0xff]  }
 0x306   :  { %5239 = vmatmul.mubr.bf16.vlgmr.msra.gmra.mxu0 %v8671_v33  ;;  %5280 = vmatmul.mubr.bf16.vlgmr.msra.gmra.mxu1 %v8671_v33  ;;  %v8166_v27 = vld [vmem:[#allocation2 + $0x7dc] ss:$244 sps:$4 sm:$0xff]  }
 0x307   :  { %5289 = vmatpush1.bf16.msra.mxu0 %v8156_v28  ;;  %5330 = vmatpush1.bf16.msra.mxu1 %v8157_v3  ;;  %v8167_v28 = vld [vmem:[#allocation2 + $0x7e4] ss:$244 sps:$4 sm:$0xff]  }
 0x308   :  { %5290 = vmatprep.subr.bf16.mxu0 %v8158_v36  ;;  %5331 = vmatprep.subr.bf16.mxu1 %v8159_v42  ;;  %v8168_v3 = vld [vmem:[#allocation2 + $0x7d8] ss:$244 sps:$4 sm:$0xff]   ;;  %v8169_v36 = vld [vmem:[#allocation2 + $0x7e0] ss:$244 sps:$4 sm:$0xff]  }
 0x309   :  { %7075 = vmatprep.mubr.msk.bf16.mxu0 %vm3724_vm0, %v8673_v37  ;;  %7076 = vmatprep.mubr.msk.bf16.mxu1 %vm3724_vm0, %v8673_v37  ;;  %v8170_v42 = vld [vmem:[#allocation2 + $0x5f4] ss:$244 sps:$4 sm:$0xff]  }
 0x30b   :  { %5291 = vmatpush1.bf16.msra.mxu0 %v8160_v15  ;;  %5332 = vmatpush1.bf16.msra.mxu1 %v8161_v16  ;;  %v8171_v15 = vld [vmem:[#allocation2 + $0x5fc] ss:$244 sps:$4 sm:$0xff]  }
 0x30c   :  { %5292 = vmatprep.subr.bf16.mxu0 %v8162_v11  ;;  %5333 = vmatprep.subr.bf16.mxu1 %v8163_v12  ;;  %v8172_v16 = vld [vmem:[#allocation2 + $0x5f0] ss:$244 sps:$4 sm:$0xff]   ;;  %v8173_v11 = vld [vmem:[#allocation2 + $0x5f8] ss:$244 sps:$4 sm:$0xff]  }
 0x30d   :  { %v8174_v12 = vld [vmem:[#allocation2 + $0x40c] ss:$244 sps:$4 sm:$0xff]  }
 0x30f   :  { %5293 = vmatpush1.bf16.msra.mxu0 %v8164_v55  ;;  %5334 = vmatpush1.bf16.msra.mxu1 %v8165_v52  ;;  %v8175_v55 = vld [vmem:[#allocation2 + $0x414] ss:$244 sps:$4 sm:$0xff]  }
 0x310   :  { %5294 = vmatprep.subr.bf16.mxu0 %v8166_v27  ;;  %5335 = vmatprep.subr.bf16.mxu1 %v8167_v28  ;;  %v8176_v52 = vld [vmem:[#allocation2 + $0x408] ss:$244 sps:$4 sm:$0xff]   ;;  %v8177_v27 = vld [vmem:[#allocation2 + $0x410] ss:$244 sps:$4 sm:$0xff]  }
 0x311   :  { %v8178_v28 = vld [vmem:[#allocation2 + $0x224] ss:$244 sps:$4 sm:$0xff]  }
 0x313   :  { %5295 = vmatpush1.bf16.msra.mxu0 %v8168_v3  ;;  %5336 = vmatpush1.bf16.msra.mxu1 %v8169_v36  ;;  %v8179_v3 = vld [vmem:[#allocation2 + $0x22c] ss:$244 sps:$4 sm:$0xff]  }
 0x314   :  { %5296 = vmatprep.subr.bf16.mxu0 %v8170_v42  ;;  %5337 = vmatprep.subr.bf16.mxu1 %v8171_v15  ;;  %v8180_v36 = vld [vmem:[#allocation2 + $0x220] ss:$244 sps:$4 sm:$0xff]   ;;  %v8181_v42 = vld [vmem:[#allocation2 + $0x228] ss:$244 sps:$4 sm:$0xff]  }
 0x315   :  { %v8182_v15 = vld [vmem:[#allocation2 + $0x3c] ss:$244 sps:$4 sm:$0xff]  }
 0x317   :  { %5297 = vmatpush1.bf16.msra.mxu0 %v8172_v16  ;;  %5338 = vmatpush1.bf16.msra.mxu1 %v8173_v11  ;;  %v8183_v16 = vld [vmem:[#allocation2 + $0x44] ss:$244 sps:$4 sm:$0xff]  }
 0x318   :  { %5298 = vmatprep.subr.bf16.mxu0 %v8174_v12  ;;  %5339 = vmatprep.subr.bf16.mxu1 %v8175_v55  ;;  %v8184_v11 = vld [vmem:[#allocation2 + $0x38] ss:$244 sps:$4 sm:$0xff]   ;;  %v8185_v12 = vld [vmem:[#allocation2 + $0x40] ss:$244 sps:$4 sm:$0xff]  }
 0x319   :  { %v8186_v55 = vld [vmem:[#allocation2 + $0x1164] ss:$244 sps:$4 sm:$0xff]  }
 0x31b   :  { %5299 = vmatpush1.bf16.msra.mxu0 %v8176_v52  ;;  %5340 = vmatpush1.bf16.msra.mxu1 %v8177_v27  ;;  %v8187_v52 = vld [vmem:[#allocation2 + $0x116c] ss:$244 sps:$4 sm:$0xff]  }
 0x31c   :  { %5300 = vmatprep.subr.bf16.mxu0 %v8178_v28  ;;  %5341 = vmatprep.subr.bf16.mxu1 %v8179_v3  ;;  %v8188_v3 = vld [vmem:[#allocation2 + $0x1160] ss:$244 sps:$4 sm:$0xff]  }
 0x31f   :  { %5301 = vmatpush1.bf16.msra.mxu0 %v8180_v36  ;;  %5342 = vmatpush1.bf16.msra.mxu1 %v8181_v42  ;;  %v8189_v36 = vld [vmem:[#allocation2 + $0x1168] ss:$244 sps:$4 sm:$0xff]  }
 0x320   :  { %5302 = vmatprep.subr.bf16.mxu0 %v8182_v15  ;;  %5343 = vmatprep.subr.bf16.mxu1 %v8183_v16  ;;  %v8190_v16 = vld [vmem:[#allocation2 + $0xf7c] ss:$244 sps:$4 sm:$0xff]  }
 0x323   :  { %5303 = vmatpush1.bf16.msra.mxu0 %v8184_v11  ;;  %5344 = vmatpush1.bf16.msra.mxu1 %v8185_v12  ;;  %v8191_v11 = vld [vmem:[#allocation2 + $0xf84] ss:$244 sps:$4 sm:$0xff]  }
 0x324   :  { %5316 = vmatprep.subr.bf16.mxu0 %v8186_v55  ;;  %5357 = vmatprep.subr.bf16.mxu1 %v8187_v52  ;;  %v8193_v52 = vld [vmem:[#allocation2 + $0xf80] ss:$244 sps:$4 sm:$0xff]  }
 0x326   :  { %v8921_v27 = vpop.f32.mrf.mxu0  ;;  %v8923_v28 = vpop.f32.mrf.mxu1 }
 0x327   :  { %9178 = vst [vmem:[#allocation15_spill] sm:$0xff] %v8921_v27  ;;  %9179 = vst [vmem:[#allocation16_spill] sm:$0xff] %v8923_v28  ;;  %5317 = vmatpush2.bf16.msra.mxu0 %v8188_v3  ;;  %5358 = vmatpush2.bf16.msra.mxu1 %v8189_v36  ;;  %v8195_v3 = vld [vmem:[#allocation2 + $0xdac] ss:$244 sps:$4 sm:$0xff]  }
 0x328   :  { %v8925_v42 = vpop.f32.mrf.mxu0  ;;  %v8927_v15 = vpop.f32.mrf.mxu1  ;;  %5318 = vmatprep.subr.bf16.mxu0 %v8190_v16  ;;  %5359 = vmatprep.subr.bf16.mxu1 %v8191_v11  ;;  %v8196_v36 = vld [vmem:[#allocation2 + $0xda0] ss:$244 sps:$4 sm:$0xff]   ;;  %v8197_v16 = vld [vmem:[#allocation2 + $0xda8] ss:$244 sps:$4 sm:$0xff]  }
 0x329   :  { %9180 = vst [vmem:[#allocation17_spill] sm:$0xff] %v8925_v42  ;;  %9181 = vst [vmem:[#allocation18_spill] sm:$0xff] %v8927_v15  ;;  %v8198_v11 = vld [vmem:[#allocation2 + $0xbbc] ss:$244 sps:$4 sm:$0xff]  }
 0x32a   :  { %v4914_v12 = vpop.f32.mrf.mxu0  ;;  %v4955_v55 = vpop.f32.mrf.mxu1 }
 0x32b   :  { %5319 = vmatpush2.bf16.msra.mxu0 %v8192_v32  ;;  %5360 = vmatpush2.bf16.msra.mxu1 %v8193_v52  ;;  %v8199_v12 = vld [vmem:[#allocation2 + $0xbc4] ss:$244 sps:$4 sm:$0xff]   ;;  %v8201_v32 = vld [vmem:[#allocation2 + $0xbc0] ss:$244 sps:$4 sm:$0xff]  }
 0x32c   :  { %v4915_v27 = vpop.f32.mrf.mxu0  ;;  %v4956_v28 = vpop.f32.mrf.mxu1  ;;  %5370 = vmatprep.subr.bf16.mxu0 %v8194_v31  ;;  %5411 = vmatprep.subr.bf16.mxu1 %v8195_v3  ;;  %v8200_v31 = vld [vmem:[#allocation2 + $0xbb8] ss:$244 sps:$4 sm:$0xff]   ;;  %v8204_v55 = vld [vmem:[#allocation2 + $0x9d0] ss:$244 sps:$4 sm:$0xff]  }
 0x32d   :  { %v8202_v27 = vld [vmem:[#allocation2 + $0x9d4] ss:$244 sps:$4 sm:$0xff]   ;;  %v8203_v28 = vld [vmem:[#allocation2 + $0x9dc] ss:$244 sps:$4 sm:$0xff]   ;;  %v8205_v52 = vld [vmem:[#allocation2 + $0x9d8] ss:$244 sps:$4 sm:$0xff]  }
 0x32e   :  { %5321 = vmatmul.mubr.bf16.vlgmr.msra.gmra.mxu0 %v8671_v33  ;;  %5362 = vmatmul.mubr.bf16.vlgmr.msra.gmra.mxu1 %v8671_v33  ;;  %v8206_v3 = vld [vmem:[#allocation2 + $0x7ec] ss:$244 sps:$4 sm:$0xff]  }
 0x32f   :  { %5371 = vmatpush1.bf16.msra.mxu0 %v8196_v36  ;;  %5412 = vmatpush1.bf16.msra.mxu1 %v8197_v16  ;;  %v8207_v36 = vld [vmem:[#allocation2 + $0x7f4] ss:$244 sps:$4 sm:$0xff]  }
 0x330   :  { %5372 = vmatprep.subr.bf16.mxu0 %v8198_v11  ;;  %5413 = vmatprep.subr.bf16.mxu1 %v8199_v12  ;;  %v8208_v16 = vld [vmem:[#allocation2 + $0x7e8] ss:$244 sps:$4 sm:$0xff]   ;;  %v8209_v11 = vld [vmem:[#allocation2 + $0x7f0] ss:$244 sps:$4 sm:$0xff]  }
 0x331   :  { %7077 = vmatprep.mubr.msk.bf16.mxu0 %vm3724_vm0, %v8673_v37  ;;  %7078 = vmatprep.mubr.msk.bf16.mxu1 %vm3724_vm0, %v8673_v37  ;;  %v8210_v12 = vld [vmem:[#allocation2 + $0x604] ss:$244 sps:$4 sm:$0xff]  }
 0x333   :  { %5373 = vmatpush1.bf16.msra.mxu0 %v8200_v31  ;;  %5414 = vmatpush1.bf16.msra.mxu1 %v8201_v32  ;;  %v8211_v31 = vld [vmem:[#allocation2 + $0x60c] ss:$244 sps:$4 sm:$0xff]  }
 0x334   :  { %5374 = vmatprep.subr.bf16.mxu0 %v8202_v27  ;;  %5415 = vmatprep.subr.bf16.mxu1 %v8203_v28  ;;  %v8212_v32 = vld [vmem:[#allocation2 + $0x600] ss:$244 sps:$4 sm:$0xff]   ;;  %v8213_v27 = vld [vmem:[#allocation2 + $0x608] ss:$244 sps:$4 sm:$0xff]  }
 0x335   :  { %v8214_v28 = vld [vmem:[#allocation2 + $0x41c] ss:$244 sps:$4 sm:$0xff]  }
 0x337   :  { %5375 = vmatpush1.bf16.msra.mxu0 %v8204_v55  ;;  %5416 = vmatpush1.bf16.msra.mxu1 %v8205_v52  ;;  %v8215_v55 = vld [vmem:[#allocation2 + $0x424] ss:$244 sps:$4 sm:$0xff]  }
 0x338   :  { %5376 = vmatprep.subr.bf16.mxu0 %v8206_v3  ;;  %5417 = vmatprep.subr.bf16.mxu1 %v8207_v36  ;;  %v8216_v52 = vld [vmem:[#allocation2 + $0x418] ss:$244 sps:$4 sm:$0xff]   ;;  %v8217_v3 = vld [vmem:[#allocation2 + $0x420] ss:$244 sps:$4 sm:$0xff]  }
 0x339   :  { %v8218_v36 = vld [vmem:[#allocation2 + $0x234] ss:$244 sps:$4 sm:$0xff]  }
 0x33b   :  { %5377 = vmatpush1.bf16.msra.mxu0 %v8208_v16  ;;  %5418 = vmatpush1.bf16.msra.mxu1 %v8209_v11  ;;  %v8219_v16 = vld [vmem:[#allocation2 + $0x23c] ss:$244 sps:$4 sm:$0xff]  }
 0x33c   :  { %5378 = vmatprep.subr.bf16.mxu0 %v8210_v12  ;;  %5419 = vmatprep.subr.bf16.mxu1 %v8211_v31  ;;  %v8220_v11 = vld [vmem:[#allocation2 + $0x230] ss:$244 sps:$4 sm:$0xff]   ;;  %v8221_v12 = vld [vmem:[#allocation2 + $0x238] ss:$244 sps:$4 sm:$0xff]  }
 0x33d   :  { %v8222_v31 = vld [vmem:[#allocation2 + $0x4c] ss:$244 sps:$4 sm:$0xff]  }
 0x33f   :  { %5379 = vmatpush1.bf16.msra.mxu0 %v8212_v32  ;;  %5420 = vmatpush1.bf16.msra.mxu1 %v8213_v27  ;;  %v8223_v32 = vld [vmem:[#allocation2 + $0x54] ss:$244 sps:$4 sm:$0xff]  }
 0x340   :  { %5380 = vmatprep.subr.bf16.mxu0 %v8214_v28  ;;  %5421 = vmatprep.subr.bf16.mxu1 %v8215_v55  ;;  %v8224_v27 = vld [vmem:[#allocation2 + $0x48] ss:$244 sps:$4 sm:$0xff]   ;;  %v8225_v28 = vld [vmem:[#allocation2 + $0x50] ss:$244 sps:$4 sm:$0xff]  }
 0x341   :  { %v8226_v55 = vld [vmem:[#allocation2 + $0x1174] ss:$244 sps:$4 sm:$0xff]  }
 0x343   :  { %5381 = vmatpush1.bf16.msra.mxu0 %v8216_v52  ;;  %5422 = vmatpush1.bf16.msra.mxu1 %v8217_v3  ;;  %v8227_v52 = vld [vmem:[#allocation2 + $0x117c] ss:$244 sps:$4 sm:$0xff]  }
 0x344   :  { %5382 = vmatprep.subr.bf16.mxu0 %v8218_v36  ;;  %5423 = vmatprep.subr.bf16.mxu1 %v8219_v16  ;;  %v8228_v16 = vld [vmem:[#allocation2 + $0x1170] ss:$244 sps:$4 sm:$0xff]  }
 0x347   :  { %5383 = vmatpush1.bf16.msra.mxu0 %v8220_v11  ;;  %5424 = vmatpush1.bf16.msra.mxu1 %v8221_v12  ;;  %v8229_v11 = vld [vmem:[#allocation2 + $0x1178] ss:$244 sps:$4 sm:$0xff]  }
 0x348   :  { %5384 = vmatprep.subr.bf16.mxu0 %v8222_v31  ;;  %5425 = vmatprep.subr.bf16.mxu1 %v8223_v32  ;;  %v8230_v31 = vld [vmem:[#allocation2 + $0xf8c] ss:$244 sps:$4 sm:$0xff]   ;;  %v8231_v32 = vld [vmem:[#allocation2 + $0xf94] ss:$244 sps:$4 sm:$0xff]  }
 0x34b   :  { %5385 = vmatpush1.bf16.msra.mxu0 %v8224_v27  ;;  %5426 = vmatpush1.bf16.msra.mxu1 %v8225_v28 }
 0x34c   :  { %5398 = vmatprep.subr.bf16.mxu0 %v8226_v55  ;;  %5439 = vmatprep.subr.bf16.mxu1 %v8227_v52 }
 0x34e   :  { %v8935_v3 = vpop.f32.mrf.mxu0  ;;  %v5035_v36 = vpop.f32.mrf.mxu1 }
 0x34f   :  { %9182 = vst [vmem:[#allocation19_spill] sm:$0xff] %v8935_v3  ;;  %5399 = vmatpush2.bf16.msra.mxu0 %v8228_v16  ;;  %5440 = vmatpush2.bf16.msra.mxu1 %v8229_v11  ;;  %v5036_v27 = vadd.f32 %v5035_v36, %v8715_v5  ;;  %v8233_v3 = vld [vmem:[#allocation2 + $0xf90] ss:$244 sps:$4 sm:$0xff]   ;;  %v8234_v11 = vld [vmem:[#allocation2 + $0xdb4] ss:$244 sps:$4 sm:$0xff]  }
 0x350   :  { %v4994_v12 = vpop.f32.mrf.mxu0  ;;  %v5037_v15 = vpop.f32.mrf.mxu1  ;;  %5400 = vmatprep.subr.bf16.mxu0 %v8230_v31  ;;  %5441 = vmatprep.subr.bf16.mxu1 %v8231_v32  ;;  %v8236_v5 = vld [vmem:[#allocation2 + $0xdb0] ss:$244 sps:$4 sm:$0xff]   ;;  %v8243_v36 = vld [vmem:[#allocation2 + $0x9ec] ss:$244 sps:$4 sm:$0xff]   ;;  %v8245_v32 = vld [vmem:[#allocation2 + $0x9e8] ss:$244 sps:$4 sm:$0xff]  }
 0x351   :  { %v5038_v28 = vadd.f32 %v5037_v15, %v8719_v9  ;;  %v8235_v12 = vld [vmem:[#allocation2 + $0xdbc] ss:$244 sps:$4 sm:$0xff]   ;;  %v8237_v9 = vld [vmem:[#allocation2 + $0xdb8] ss:$244 sps:$4 sm:$0xff]   ;;  %v8244_v31 = vld [vmem:[#allocation2 + $0x9e0] ss:$244 sps:$4 sm:$0xff]  }
 0x352   :  { %v4995_v55 = vpop.f32.mrf.mxu0  ;;  %v5039_v42 = vpop.f32.mrf.mxu1  ;;  %v8241_v15 = vld [vmem:[#allocation2 + $0xbd0] ss:$244 sps:$4 sm:$0xff]  }
 0x353   :  { %v6331_v52 = vcombine.low %v5036_v27, %v5038_v28  ;;  %5401 = vmatpush2.bf16.msra.mxu0 %v8232_v41  ;;  %5442 = vmatpush2.bf16.msra.mxu1 %v8233_v3  ;;  %v8238_v41 = vld [vmem:[#allocation2 + $0xbcc] ss:$244 sps:$4 sm:$0xff]   ;;  %v8239_v42 = vld [vmem:[#allocation2 + $0xbd4] ss:$244 sps:$4 sm:$0xff]   ;;  %v8242_v3 = vld [vmem:[#allocation2 + $0x9e4] ss:$244 sps:$4 sm:$0xff]  }
 0x354   :  { %v4996_v16 = vpop.f32.mrf.mxu0  ;;  %v5040_v0 = vpop.f32.mrf.mxu1  ;;  %5452 = vmatprep.subr.bf16.mxu0 %v8234_v11  ;;  %5493 = vmatprep.subr.bf16.mxu1 %v8235_v12  ;;  %v8246_v27 = vld [vmem:[#allocation2 + $0x7fc] ss:$244 sps:$4 sm:$0xff]   ;;  %v8247_v28 = vld [vmem:[#allocation2 + $0x804] ss:$244 sps:$4 sm:$0xff]  }
 0x355   :  { %6391 = vst [vmem:[%s9165_s2] sm:$0xff] %v6331_v52  ;;  %v8240_v0 = vld [vmem:[#allocation2 + $0xbc8] ss:$244 sps:$4 sm:$0xff]   ;;  %v8248_v55 = vld [vmem:[#allocation2 + $0x7f8] ss:$244 sps:$4 sm:$0xff]   ;;  %v8249_v52 = vld [vmem:[#allocation2 + $0x800] ss:$244 sps:$4 sm:$0xff]  }
 0x356   :  { %5403 = vmatmul.mubr.bf16.vlgmr.msra.gmra.mxu0 %v8671_v33  ;;  %5444 = vmatmul.mubr.bf16.vlgmr.msra.gmra.mxu1 %v8671_v33  ;;  %v8250_v16 = vld [vmem:[#allocation2 + $0x614] ss:$244 sps:$4 sm:$0xff]   ;;  %v8251_v11 = vld [vmem:[#allocation2 + $0x61c] ss:$244 sps:$4 sm:$0xff]  }
 0x357   :  { %5453 = vmatpush1.bf16.msra.mxu0 %v8236_v5  ;;  %5494 = vmatpush1.bf16.msra.mxu1 %v8237_v9  ;;  %v8252_v12 = vld [vmem:[#allocation2 + $0x610] ss:$244 sps:$4 sm:$0xff]   ;;  %v8253_v5 = vld [vmem:[#allocation2 + $0x618] ss:$244 sps:$4 sm:$0xff]  }
 0x358   :  { %5454 = vmatprep.subr.bf16.mxu0 %v8238_v41  ;;  %5495 = vmatprep.subr.bf16.mxu1 %v8239_v42  ;;  %v8254_v9 = vld [vmem:[#allocation2 + $0x42c] ss:$244 sps:$4 sm:$0xff]   ;;  %v8255_v41 = vld [vmem:[#allocation2 + $0x434] ss:$244 sps:$4 sm:$0xff]  }
 0x359   :  { %7079 = vmatprep.mubr.msk.bf16.mxu0 %vm3724_vm0, %v8673_v37  ;;  %7080 = vmatprep.mubr.msk.bf16.mxu1 %vm3724_vm0, %v8673_v37  ;;  %v8256_v42 = vld [vmem:[#allocation2 + $0x428] ss:$244 sps:$4 sm:$0xff]  }
 0x35b   :  { %5455 = vmatpush1.bf16.msra.mxu0 %v8240_v0  ;;  %5496 = vmatpush1.bf16.msra.mxu1 %v8241_v15  ;;  %v8257_v0 = vld [vmem:[#allocation2 + $0x430] ss:$244 sps:$4 sm:$0xff]  }
 0x35c   :  { %5456 = vmatprep.subr.bf16.mxu0 %v8242_v3  ;;  %5497 = vmatprep.subr.bf16.mxu1 %v8243_v36  ;;  %v8258_v15 = vld [vmem:[#allocation2 + $0x244] ss:$244 sps:$4 sm:$0xff]   ;;  %v8259_v3 = vld [vmem:[#allocation2 + $0x24c] ss:$244 sps:$4 sm:$0xff]  }
 0x35d   :  { %v8260_v36 = vld [vmem:[#allocation2 + $0x240] ss:$244 sps:$4 sm:$0xff]  }
 0x35f   :  { %5457 = vmatpush1.bf16.msra.mxu0 %v8244_v31  ;;  %5498 = vmatpush1.bf16.msra.mxu1 %v8245_v32  ;;  %v8261_v31 = vld [vmem:[#allocation2 + $0x248] ss:$244 sps:$4 sm:$0xff]  }
 0x360   :  { %5458 = vmatprep.subr.bf16.mxu0 %v8246_v27  ;;  %5499 = vmatprep.subr.bf16.mxu1 %v8247_v28  ;;  %v8262_v32 = vld [vmem:[#allocation2 + $0x5c] ss:$244 sps:$4 sm:$0xff]   ;;  %v8263_v27 = vld [vmem:[#allocation2 + $0x64] ss:$244 sps:$4 sm:$0xff]  }
 0x361   :  { %v8264_v28 = vld [vmem:[#allocation2 + $0x58] ss:$244 sps:$4 sm:$0xff]  }
 0x363   :  { %5459 = vmatpush1.bf16.msra.mxu0 %v8248_v55  ;;  %5500 = vmatpush1.bf16.msra.mxu1 %v8249_v52  ;;  %v8265_v55 = vld [vmem:[#allocation2 + $0x60] ss:$244 sps:$4 sm:$0xff]   ;;  %v8266_v52 = vld [vmem:[#allocation2 + $0x1184] ss:$244 sps:$4 sm:$0xff]  }
 0x364   :  { %5460 = vmatprep.subr.bf16.mxu0 %v8250_v16  ;;  %5501 = vmatprep.subr.bf16.mxu1 %v8251_v11  ;;  %v8267_v16 = vld [vmem:[#allocation2 + $0x118c] ss:$244 sps:$4 sm:$0xff]  }
 0x367   :  { %5461 = vmatpush1.bf16.msra.mxu0 %v8252_v12  ;;  %5502 = vmatpush1.bf16.msra.mxu1 %v8253_v5  ;;  %v8268_v5 = vld [vmem:[#allocation2 + $0x1180] ss:$244 sps:$4 sm:$0xff]  }
 0x368   :  { %5462 = vmatprep.subr.bf16.mxu0 %v8254_v9  ;;  %5503 = vmatprep.subr.bf16.mxu1 %v8255_v41  ;;  %v8269_v9 = vld [vmem:[#allocation2 + $0x1188] ss:$244 sps:$4 sm:$0xff]  }
 0x36b   :  { %5463 = vmatpush1.bf16.msra.mxu0 %v8256_v42  ;;  %5504 = vmatpush1.bf16.msra.mxu1 %v8257_v0  ;;  %v8270_v0 = vld [vmem:[#allocation2 + $0xf9c] ss:$244 sps:$4 sm:$0xff]  }
 0x36c   :  { %5464 = vmatprep.subr.bf16.mxu0 %v8258_v15  ;;  %5505 = vmatprep.subr.bf16.mxu1 %v8259_v3  ;;  %v8271_v15 = vld [vmem:[#allocation2 + $0xfa4] ss:$244 sps:$4 sm:$0xff]  }
 0x36f   :  { %5465 = vmatpush1.bf16.msra.mxu0 %v8260_v36  ;;  %5506 = vmatpush1.bf16.msra.mxu1 %v8261_v31 }
 0x370   :  { %5466 = vmatprep.subr.bf16.mxu0 %v8262_v32  ;;  %5507 = vmatprep.subr.bf16.mxu1 %v8263_v27 }
 0x373   :  { %5467 = vmatpush1.bf16.msra.mxu0 %v8264_v28  ;;  %5508 = vmatpush1.bf16.msra.mxu1 %v8265_v55 }
 0x374   :  { %5480 = vmatprep.subr.bf16.mxu0 %v8266_v52  ;;  %5521 = vmatprep.subr.bf16.mxu1 %v8267_v16  ;;  %v8272_v16 = vld [vmem:[#allocation2 + $0xf98] ss:$244 sps:$4 sm:$0xff]  }
 0x376   :  { %v5076_v11 = vpop.f32.mrf.mxu0  ;;  %v5117_v12 = vpop.f32.mrf.mxu1 }
 0x377   :  { %5481 = vmatpush2.bf16.msra.mxu0 %v8268_v5  ;;  %5522 = vmatpush2.bf16.msra.mxu1 %v8269_v9  ;;  %v5077_v3 = vadd.f32 %v5076_v11, %v8717_v6  ;;  %v5118_v36 = vadd.f32 %v5117_v12, %v8729_v57  ;;  %v8273_v5 = vld [vmem:[#allocation2 + $0xfa0] ss:$244 sps:$4 sm:$0xff]   ;;  %v8278_v57 = vld [vmem:[#allocation2 + $0xbdc] ss:$244 sps:$4 sm:$0xff]  }
 0x378   :  { %v5078_v41 = vpop.f32.mrf.mxu0  ;;  %v5119_v42 = vpop.f32.mrf.mxu1  ;;  %5482 = vmatprep.subr.bf16.mxu0 %v8270_v0  ;;  %5523 = vmatprep.subr.bf16.mxu1 %v8271_v15  ;;  %v8275_v15 = vld [vmem:[#allocation2 + $0xdcc] ss:$244 sps:$4 sm:$0xff]   ;;  %v8282_v12 = vld [vmem:[#allocation2 + $0x9f4] ss:$244 sps:$4 sm:$0xff]  }
 0x379   :  { %v5079_v31 = vadd.f32 %v5078_v41, %v8721_v10  ;;  %v5120_v32 = vadd.f32 %v5119_v42, %v8733_v61  ;;  %v8276_v6 = vld [vmem:[#allocation2 + $0xdc0] ss:$244 sps:$4 sm:$0xff]   ;;  %v8277_v10 = vld [vmem:[#allocation2 + $0xdc8] ss:$244 sps:$4 sm:$0xff]   ;;  %v8279_v61 = vld [vmem:[#allocation2 + $0xbe4] ss:$244 sps:$4 sm:$0xff]  }
 0x37a   :  { %v5080_v27 = vpop.f32.mrf.mxu0  ;;  %v5121_v28 = vpop.f32.mrf.mxu1  ;;  %v8281_v11 = vld [vmem:[#allocation2 + $0xbe0] ss:$244 sps:$4 sm:$0xff]   ;;  %v8283_v41 = vld [vmem:[#allocation2 + $0x9fc] ss:$244 sps:$4 sm:$0xff]  }
 0x37b   :  { %v6332_v55 = vcombine.low %v5077_v3, %v5079_v31  ;;  %v6333_v52 = vcombine.low %v5118_v36, %v5120_v32  ;;  %5483 = vmatpush2.bf16.msra.mxu0 %v8272_v16  ;;  %5524 = vmatpush2.bf16.msra.mxu1 %v8273_v5  ;;  %v8284_v42 = vld [vmem:[#allocation2 + $0x9f0] ss:$244 sps:$4 sm:$0xff]   ;;  %v8285_v3 = vld [vmem:[#allocation2 + $0x9f8] ss:$244 sps:$4 sm:$0xff]   ;;  %v8287_v31 = vld [vmem:[#allocation2 + $0x814] ss:$244 sps:$4 sm:$0xff]  }
 0x37c   :  { %v5081_v9 = vpop.f32.mrf.mxu0  ;;  %v5122_v0 = vpop.f32.mrf.mxu1  ;;  %5534 = vmatprep.subr.bf16.mxu0 %v8274_v30  ;;  %5575 = vmatprep.subr.bf16.mxu1 %v8275_v15  ;;  %v8280_v30 = vld [vmem:[#allocation2 + $0xbd8] ss:$244 sps:$4 sm:$0xff]   ;;  %v8288_v32 = vld [vmem:[#allocation2 + $0x808] ss:$244 sps:$4 sm:$0xff]   ;;  %v8289_v27 = vld [vmem:[#allocation2 + $0x810] ss:$244 sps:$4 sm:$0xff]  }
 0x37d   :  { %6392 = vst [vmem:[%s9165_s2 + $0x8] sm:$0xff] %v6332_v55  ;;  %6393 = vst [vmem:[%s9165_s2 + $0x10] sm:$0xff] %v6333_v52  ;;  %v8286_v36 = vld [vmem:[#allocation2 + $0x80c] ss:$244 sps:$4 sm:$0xff]   ;;  %v8290_v28 = vld [vmem:[#allocation2 + $0x624] ss:$244 sps:$4 sm:$0xff]  }
 0x37e   :  { %5485 = vmatmul.mubr.bf16.vlgmr.msra.gmra.mxu0 %v8671_v33  ;;  %5526 = vmatmul.mubr.bf16.vlgmr.msra.gmra.mxu1 %v8671_v33  ;;  %v8291_v55 = vld [vmem:[#allocation2 + $0x62c] ss:$244 sps:$4 sm:$0xff]   ;;  %v8293_v16 = vld [vmem:[#allocation2 + $0x628] ss:$244 sps:$4 sm:$0xff]   ;;  %v8295_v9 = vld [vmem:[#allocation2 + $0x444] ss:$244 sps:$4 sm:$0xff]  }
 0x37f   :  { %5535 = vmatpush1.bf16.msra.mxu0 %v8276_v6  ;;  %5576 = vmatpush1.bf16.msra.mxu1 %v8277_v10  ;;  %v8292_v52 = vld [vmem:[#allocation2 + $0x620] ss:$244 sps:$4 sm:$0xff]   ;;  %v8294_v5 = vld [vmem:[#allocation2 + $0x43c] ss:$244 sps:$4 sm:$0xff]   ;;  %v8296_v0 = vld [vmem:[#allocation2 + $0x438] ss:$244 sps:$4 sm:$0xff]  }
 0x380   :  { %5536 = vmatprep.subr.bf16.mxu0 %v8278_v57  ;;  %5577 = vmatprep.subr.bf16.mxu1 %v8279_v61  ;;  %v8297_v15 = vld [vmem:[#allocation2 + $0x440] ss:$244 sps:$4 sm:$0xff]   ;;  %v8299_v10 = vld [vmem:[#allocation2 + $0x25c] ss:$244 sps:$4 sm:$0xff]   ;;  %v8301_v61 = vld [vmem:[#allocation2 + $0x258] ss:$244 sps:$4 sm:$0xff]  }
 0x381   :  { %7081 = vmatprep.mubr.msk.bf16.mxu0 %vm3724_vm0, %v8673_v37  ;;  %7082 = vmatprep.mubr.msk.bf16.mxu1 %vm3724_vm0, %v8673_v37  ;;  %v8298_v6 = vld [vmem:[#allocation2 + $0x254] ss:$244 sps:$4 sm:$0xff]   ;;  %v8300_v57 = vld [vmem:[#allocation2 + $0x250] ss:$244 sps:$4 sm:$0xff]  }
 0x383   :  { %5537 = vmatpush1.bf16.msra.mxu0 %v8280_v30  ;;  %5578 = vmatpush1.bf16.msra.mxu1 %v8281_v11  ;;  %v8302_v30 = vld [vmem:[#allocation2 + $0x6c] ss:$244 sps:$4 sm:$0xff]   ;;  %v8303_v11 = vld [vmem:[#allocation2 + $0x74] ss:$244 sps:$4 sm:$0xff]  }
 0x384   :  { %5538 = vmatprep.subr.bf16.mxu0 %v8282_v12  ;;  %5579 = vmatprep.subr.bf16.mxu1 %v8283_v41  ;;  %v8304_v12 = vld [vmem:[#allocation2 + $0x68] ss:$244 sps:$4 sm:$0xff]   ;;  %v8305_v41 = vld [vmem:[#allocation2 + $0x70] ss:$244 sps:$4 sm:$0xff]  }
 0x387   :  { %5539 = vmatpush1.bf16.msra.mxu0 %v8284_v42  ;;  %5580 = vmatpush1.bf16.msra.mxu1 %v8285_v3  ;;  %v8306_v42 = vld [vmem:[#allocation2 + $0x1194] ss:$244 sps:$4 sm:$0xff]   ;;  %v8307_v3 = vld [vmem:[#allocation2 + $0x119c] ss:$244 sps:$4 sm:$0xff]  }
 0x388   :  { %5540 = vmatprep.subr.bf16.mxu0 %v8286_v36  ;;  %5581 = vmatprep.subr.bf16.mxu1 %v8287_v31 }
 0x38b   :  { %5541 = vmatpush1.bf16.msra.mxu0 %v8288_v32  ;;  %5582 = vmatpush1.bf16.msra.mxu1 %v8289_v27  ;;  %v8308_v32 = vld [vmem:[#allocation2 + $0x1190] ss:$244 sps:$4 sm:$0xff]   ;;  %v8309_v27 = vld [vmem:[#allocation2 + $0x1198] ss:$244 sps:$4 sm:$0xff]  }
 0x38c   :  { %5542 = vmatprep.subr.bf16.mxu0 %v8290_v28  ;;  %5583 = vmatprep.subr.bf16.mxu1 %v8291_v55 }
 0x38f   :  { %5543 = vmatpush1.bf16.msra.mxu0 %v8292_v52  ;;  %5584 = vmatpush1.bf16.msra.mxu1 %v8293_v16  ;;  %v8310_v52 = vld [vmem:[#allocation2 + $0xfac] ss:$244 sps:$4 sm:$0xff]   ;;  %v8311_v16 = vld [vmem:[#allocation2 + $0xfb4] ss:$244 sps:$4 sm:$0xff]  }
 0x390   :  { %5544 = vmatprep.subr.bf16.mxu0 %v8294_v5  ;;  %5585 = vmatprep.subr.bf16.mxu1 %v8295_v9 }
 0x393   :  { %5545 = vmatpush1.bf16.msra.mxu0 %v8296_v0  ;;  %5586 = vmatpush1.bf16.msra.mxu1 %v8297_v15 }
 0x394   :  { %5546 = vmatprep.subr.bf16.mxu0 %v8298_v6  ;;  %5587 = vmatprep.subr.bf16.mxu1 %v8299_v10 }
 0x397   :  { %5547 = vmatpush1.bf16.msra.mxu0 %v8300_v57  ;;  %5588 = vmatpush1.bf16.msra.mxu1 %v8301_v61 }
 0x398   :  { %5548 = vmatprep.subr.bf16.mxu0 %v8302_v30  ;;  %5589 = vmatprep.subr.bf16.mxu1 %v8303_v11  ;;  %v8312_v30 = vld [vmem:[#allocation2 + $0xfa8] ss:$244 sps:$4 sm:$0xff]   ;;  %v8313_v11 = vld [vmem:[#allocation2 + $0xfb0] ss:$244 sps:$4 sm:$0xff]  }
 0x39b   :  { %5549 = vmatpush1.bf16.msra.mxu0 %v8304_v12  ;;  %5590 = vmatpush1.bf16.msra.mxu1 %v8305_v41 }
 0x39c   :  { %5562 = vmatprep.subr.bf16.mxu0 %v8306_v42  ;;  %5603 = vmatprep.subr.bf16.mxu1 %v8307_v3  ;;  %v8314_v42 = vld [vmem:[#allocation2 + $0xdd4] ss:$244 sps:$4 sm:$0xff]   ;;  %v8315_v3 = vld [vmem:[#allocation2 + $0xddc] ss:$244 sps:$4 sm:$0xff]  }
 0x39e   :  { %v5158_v36 = vpop.f32.mrf.mxu0  ;;  %v5199_v31 = vpop.f32.mrf.mxu1 }
 0x39f   :  { %5563 = vmatpush2.bf16.msra.mxu0 %v8308_v32  ;;  %5604 = vmatpush2.bf16.msra.mxu1 %v8309_v27  ;;  %v5159_v5 = vadd.f32 %v5158_v36, %v8731_v58  ;;  %v5200_v9 = vadd.f32 %v5199_v31, %v8743_v47  ;;  %v8316_v58 = vld [vmem:[#allocation2 + $0xdd0] ss:$244 sps:$4 sm:$0xff]   ;;  %v8318_v47 = vld [vmem:[#allocation2 + $0xbec] ss:$244 sps:$4 sm:$0xff]   ;;  %v8320_v36 = vld [vmem:[#allocation2 + $0xbe8] ss:$244 sps:$4 sm:$0xff]  }
 0x3a0   :  { %v5160_v28 = vpop.f32.mrf.mxu0  ;;  %v5201_v55 = vpop.f32.mrf.mxu1  ;;  %5564 = vmatprep.subr.bf16.mxu0 %v8310_v52  ;;  %5605 = vmatprep.subr.bf16.mxu1 %v8311_v16  ;;  %v8321_v31 = vld [vmem:[#allocation2 + $0xbf0] ss:$244 sps:$4 sm:$0xff]   ;;  %v8323_v27 = vld [vmem:[#allocation2 + $0xa0c] ss:$244 sps:$4 sm:$0xff]  }
 0x3a1   :  { %v5161_v0 = vadd.f32 %v5160_v28, %v8735_v62  ;;  %v5202_v15 = vadd.f32 %v5201_v55, %v8747_v53  ;;  %v8317_v62 = vld [vmem:[#allocation2 + $0xdd8] ss:$244 sps:$4 sm:$0xff]   ;;  %v8319_v53 = vld [vmem:[#allocation2 + $0xbf4] ss:$244 sps:$4 sm:$0xff]   ;;  %v8326_v52 = vld [vmem:[#allocation2 + $0x81c] ss:$244 sps:$4 sm:$0xff]  }
 0x3a2   :  { %v5162_v6 = vpop.f32.mrf.mxu0  ;;  %v5203_v10 = vpop.f32.mrf.mxu1  ;;  %v8322_v32 = vld [vmem:[#allocation2 + $0xa04] ss:$244 sps:$4 sm:$0xff]   ;;  %v8324_v28 = vld [vmem:[#allocation2 + $0xa00] ss:$244 sps:$4 sm:$0xff]   ;;  %v8325_v55 = vld [vmem:[#allocation2 + $0xa08] ss:$244 sps:$4 sm:$0xff]  }
 0x3a3   :  { %v6334_v57 = vcombine.low %v5159_v5, %v5161_v0  ;;  %v6335_v61 = vcombine.low %v5200_v9, %v5202_v15  ;;  %5565 = vmatpush2.bf16.msra.mxu0 %v8312_v30  ;;  %5606 = vmatpush2.bf16.msra.mxu1 %v8313_v11  ;;  %v8327_v16 = vld [vmem:[#allocation2 + $0x824] ss:$244 sps:$4 sm:$0xff]   ;;  %v8329_v9 = vld [vmem:[#allocation2 + $0x820] ss:$244 sps:$4 sm:$0xff]   ;;  %v8331_v15 = vld [vmem:[#allocation2 + $0x63c] ss:$244 sps:$4 sm:$0xff]  }
 0x3a4   :  { %v5163_v12 = vpop.f32.mrf.mxu0  ;;  %v5204_v41 = vpop.f32.mrf.mxu1  ;;  %5616 = vmatprep.subr.bf16.mxu0 %v8314_v42  ;;  %5657 = vmatprep.subr.bf16.mxu1 %v8315_v3  ;;  %v8328_v5 = vld [vmem:[#allocation2 + $0x818] ss:$244 sps:$4 sm:$0xff]   ;;  %v8330_v0 = vld [vmem:[#allocation2 + $0x634] ss:$244 sps:$4 sm:$0xff]   ;;  %v8332_v6 = vld [vmem:[#allocation2 + $0x630] ss:$244 sps:$4 sm:$0xff]  }
 0x3a5   :  { %6394 = vst [vmem:[%s9165_s2 + $0x18] sm:$0xff] %v6334_v57  ;;  %6395 = vst [vmem:[%s9165_s2 + $0x20] sm:$0xff] %v6335_v61  ;;  %v8333_v10 = vld [vmem:[#allocation2 + $0x638] ss:$244 sps:$4 sm:$0xff]   ;;  %v8335_v61 = vld [vmem:[#allocation2 + $0x454] ss:$244 sps:$4 sm:$0xff]  }
 0x3a6   :  { %5567 = vmatmul.mubr.bf16.vlgmr.msra.gmra.mxu0 %v8671_v33  ;;  %5608 = vmatmul.mubr.bf16.vlgmr.msra.gmra.mxu1 %v8671_v33  ;;  %v8334_v57 = vld [vmem:[#allocation2 + $0x44c] ss:$244 sps:$4 sm:$0xff]   ;;  %v8336_v30 = vld [vmem:[#allocation2 + $0x448] ss:$244 sps:$4 sm:$0xff]   ;;  %v8337_v11 = vld [vmem:[#allocation2 + $0x450] ss:$244 sps:$4 sm:$0xff]  }
 0x3a7   :  { %5617 = vmatpush1.bf16.msra.mxu0 %v8316_v58  ;;  %5658 = vmatpush1.bf16.msra.mxu1 %v8317_v62  ;;  %v8338_v12 = vld [vmem:[#allocation2 + $0x264] ss:$244 sps:$4 sm:$0xff]   ;;  %v8339_v41 = vld [vmem:[#allocation2 + $0x26c] ss:$244 sps:$4 sm:$0xff]   ;;  %v8341_v3 = vld [vmem:[#allocation2 + $0x268] ss:$244 sps:$4 sm:$0xff]  }
 0x3a8   :  { %5618 = vmatprep.subr.bf16.mxu0 %v8318_v47  ;;  %5659 = vmatprep.subr.bf16.mxu1 %v8319_v53  ;;  %v8340_v42 = vld [vmem:[#allocation2 + $0x260] ss:$244 sps:$4 sm:$0xff]   ;;  %v8342_v58 = vld [vmem:[#allocation2 + $0x7c] ss:$244 sps:$4 sm:$0xff]   ;;  %v8343_v62 = vld [vmem:[#allocation2 + $0x84] ss:$244 sps:$4 sm:$0xff]  }
 0x3a9   :  { %7083 = vmatprep.mubr.msk.bf16.mxu0 %vm3724_vm0, %v8673_v37  ;;  %7084 = vmatprep.mubr.msk.bf16.mxu1 %vm3724_vm0, %v8673_v37  ;;  %v8344_v47 = vld [vmem:[#allocation2 + $0x78] ss:$244 sps:$4 sm:$0xff]   ;;  %v8345_v53 = vld [vmem:[#allocation2 + $0x80] ss:$244 sps:$4 sm:$0xff]  }
 0x3ab   :  { %5619 = vmatpush1.bf16.msra.mxu0 %v8320_v36  ;;  %5660 = vmatpush1.bf16.msra.mxu1 %v8321_v31  ;;  %v8346_v36 = vld [vmem:[#allocation2 + $0x11a4] ss:$244 sps:$4 sm:$0xff]   ;;  %v8347_v31 = vld [vmem:[#allocation2 + $0x11ac] ss:$244 sps:$4 sm:$0xff]  }
 0x3ac   :  { %5620 = vmatprep.subr.bf16.mxu0 %v8322_v32  ;;  %5661 = vmatprep.subr.bf16.mxu1 %v8323_v27 }
 0x3af   :  { %5621 = vmatpush1.bf16.msra.mxu0 %v8324_v28  ;;  %5662 = vmatpush1.bf16.msra.mxu1 %v8325_v55  ;;  %v8348_v28 = vld [vmem:[#allocation2 + $0x11a0] ss:$244 sps:$4 sm:$0xff]   ;;  %v8349_v55 = vld [vmem:[#allocation2 + $0x11a8] ss:$244 sps:$4 sm:$0xff]  }
 0x3b0   :  { %5622 = vmatprep.subr.bf16.mxu0 %v8326_v52  ;;  %5663 = vmatprep.subr.bf16.mxu1 %v8327_v16 }
 0x3b3   :  { %5623 = vmatpush1.bf16.msra.mxu0 %v8328_v5  ;;  %5664 = vmatpush1.bf16.msra.mxu1 %v8329_v9  ;;  %v8350_v5 = vld [vmem:[#allocation2 + $0xfbc] ss:$244 sps:$4 sm:$0xff]   ;;  %v8351_v9 = vld [vmem:[#allocation2 + $0xfc4] ss:$244 sps:$4 sm:$0xff]  }
 0x3b4   :  { %5624 = vmatprep.subr.bf16.mxu0 %v8330_v0  ;;  %5665 = vmatprep.subr.bf16.mxu1 %v8331_v15 }
 0x3b7   :  { %5625 = vmatpush1.bf16.msra.mxu0 %v8332_v6  ;;  %5666 = vmatpush1.bf16.msra.mxu1 %v8333_v10 }
 0x3b8   :  { %5626 = vmatprep.subr.bf16.mxu0 %v8334_v57  ;;  %5667 = vmatprep.subr.bf16.mxu1 %v8335_v61 }
 0x3bb   :  { %5627 = vmatpush1.bf16.msra.mxu0 %v8336_v30  ;;  %5668 = vmatpush1.bf16.msra.mxu1 %v8337_v11 }
 0x3bc   :  { %5628 = vmatprep.subr.bf16.mxu0 %v8338_v12  ;;  %5669 = vmatprep.subr.bf16.mxu1 %v8339_v41  ;;  %v8352_v12 = vld [vmem:[#allocation2 + $0xfb8] ss:$244 sps:$4 sm:$0xff]   ;;  %v8353_v41 = vld [vmem:[#allocation2 + $0xfc0] ss:$244 sps:$4 sm:$0xff]  }
 0x3bf   :  { %5629 = vmatpush1.bf16.msra.mxu0 %v8340_v42  ;;  %5670 = vmatpush1.bf16.msra.mxu1 %v8341_v3 }
 0x3c0   :  { %5630 = vmatprep.subr.bf16.mxu0 %v8342_v58  ;;  %5671 = vmatprep.subr.bf16.mxu1 %v8343_v62  ;;  %v8354_v58 = vld [vmem:[#allocation2 + $0xde4] ss:$244 sps:$4 sm:$0xff]   ;;  %v8355_v62 = vld [vmem:[#allocation2 + $0xdec] ss:$244 sps:$4 sm:$0xff]  }
 0x3c3   :  { %5631 = vmatpush1.bf16.msra.mxu0 %v8344_v47  ;;  %5672 = vmatpush1.bf16.msra.mxu1 %v8345_v53  ;;  %v8360_v47 = vld [vmem:[#allocation2 + $0xbf8] ss:$244 sps:$4 sm:$0xff]   ;;  %v8361_v53 = vld [vmem:[#allocation2 + $0xc00] ss:$244 sps:$4 sm:$0xff]  }
 0x3c4   :  { %5644 = vmatprep.subr.bf16.mxu0 %v8346_v36  ;;  %5685 = vmatprep.subr.bf16.mxu1 %v8347_v31  ;;  %v8362_v36 = vld [vmem:[#allocation2 + $0xa14] ss:$244 sps:$4 sm:$0xff]   ;;  %v8363_v31 = vld [vmem:[#allocation2 + $0xa1c] ss:$244 sps:$4 sm:$0xff]  }
 0x3c6   :  { %v5240_v32 = vpop.f32.mrf.mxu0  ;;  %v5281_v27 = vpop.f32.mrf.mxu1 }
 0x3c7   :  { %5645 = vmatpush2.bf16.msra.mxu0 %v8348_v28  ;;  %5686 = vmatpush2.bf16.msra.mxu1 %v8349_v55  ;;  %v5241_v0 = vadd.f32 %v5240_v32, %v8745_v48  ;;  %v5282_v15 = vadd.f32 %v5281_v27, %v8757_v43  ;;  %v8356_v48 = vld [vmem:[#allocation2 + $0xde0] ss:$244 sps:$4 sm:$0xff]   ;;  %v8358_v43 = vld [vmem:[#allocation2 + $0xbfc] ss:$244 sps:$4 sm:$0xff]   ;;  %v8365_v27 = vld [vmem:[#allocation2 + $0xa18] ss:$244 sps:$4 sm:$0xff]  }
 0x3c8   :  { %v5242_v52 = vpop.f32.mrf.mxu0  ;;  %v5283_v16 = vpop.f32.mrf.mxu1  ;;  %5646 = vmatprep.subr.bf16.mxu0 %v8350_v5  ;;  %5687 = vmatprep.subr.bf16.mxu1 %v8351_v9  ;;  %v8364_v32 = vld [vmem:[#allocation2 + $0xa10] ss:$244 sps:$4 sm:$0xff]   ;;  %v8366_v28 = vld [vmem:[#allocation2 + $0x82c] ss:$244 sps:$4 sm:$0xff]   ;;  %v8367_v55 = vld [vmem:[#allocation2 + $0x834] ss:$244 sps:$4 sm:$0xff]  }
 0x3c9   :  { %v5243_v6 = vadd.f32 %v5242_v52, %v8749_v54  ;;  %v5284_v10 = vadd.f32 %v5283_v16, %v8761_v49  ;;  %v8357_v54 = vld [vmem:[#allocation2 + $0xde8] ss:$244 sps:$4 sm:$0xff]   ;;  %v8359_v49 = vld [vmem:[#allocation2 + $0xc04] ss:$244 sps:$4 sm:$0xff]   ;;  %v8371_v9 = vld [vmem:[#allocation2 + $0x64c] ss:$244 sps:$4 sm:$0xff]  }
 0x3ca   :  { %v5244_v57 = vpop.f32.mrf.mxu0  ;;  %v5285_v61 = vpop.f32.mrf.mxu1  ;;  %v8368_v52 = vld [vmem:[#allocation2 + $0x828] ss:$244 sps:$4 sm:$0xff]   ;;  %v8369_v16 = vld [vmem:[#allocation2 + $0x830] ss:$244 sps:$4 sm:$0xff]  }
 0x3cb   :  { %v6336_v30 = vcombine.low %v5241_v0, %v5243_v6  ;;  %v6337_v11 = vcombine.low %v5282_v15, %v5284_v10  ;;  %5647 = vmatpush2.bf16.msra.mxu0 %v8352_v12  ;;  %5688 = vmatpush2.bf16.msra.mxu1 %v8353_v41  ;;  %v8370_v5 = vld [vmem:[#allocation2 + $0x644] ss:$244 sps:$4 sm:$0xff]   ;;  %v8372_v0 = vld [vmem:[#allocation2 + $0x640] ss:$244 sps:$4 sm:$0xff]   ;;  %v8373_v15 = vld [vmem:[#allocation2 + $0x648] ss:$244 sps:$4 sm:$0xff]  }
 0x3cc   :  { %v5245_v42 = vpop.f32.mrf.mxu0  ;;  %v5286_v3 = vpop.f32.mrf.mxu1  ;;  %5698 = vmatprep.subr.bf16.mxu0 %v8354_v58  ;;  %5739 = vmatprep.subr.bf16.mxu1 %v8355_v62  ;;  %v8374_v6 = vld [vmem:[#allocation2 + $0x45c] ss:$244 sps:$4 sm:$0xff]   ;;  %v8375_v10 = vld [vmem:[#allocation2 + $0x464] ss:$244 sps:$4 sm:$0xff]   ;;  %v8377_v61 = vld [vmem:[#allocation2 + $0x460] ss:$244 sps:$4 sm:$0xff]  }
 0x3cd   :  { %6396 = vst [vmem:[%s9165_s2 + $0x28] sm:$0xff] %v6336_v30  ;;  %6397 = vst [vmem:[%s9165_s2 + $0x30] sm:$0xff] %v6337_v11  ;;  %v8376_v57 = vld [vmem:[#allocation2 + $0x458] ss:$244 sps:$4 sm:$0xff]   ;;  %v8378_v30 = vld [vmem:[#allocation2 + $0x274] ss:$244 sps:$4 sm:$0xff]  }
 0x3ce   :  { %5649 = vmatmul.mubr.bf16.vlgmr.msra.gmra.mxu0 %v8671_v33  ;;  %5690 = vmatmul.mubr.bf16.vlgmr.msra.gmra.mxu1 %v8671_v33  ;;  %v8379_v11 = vld [vmem:[#allocation2 + $0x27c] ss:$244 sps:$4 sm:$0xff]   ;;  %v8381_v41 = vld [vmem:[#allocation2 + $0x278] ss:$244 sps:$4 sm:$0xff]   ;;  %v8383_v3 = vld [vmem:[#allocation2 + $0x94] ss:$244 sps:$4 sm:$0xff]  }
 0x3cf   :  { %5699 = vmatpush1.bf16.msra.mxu0 %v8356_v48  ;;  %5740 = vmatpush1.bf16.msra.mxu1 %v8357_v54  ;;  %v8380_v12 = vld [vmem:[#allocation2 + $0x270] ss:$244 sps:$4 sm:$0xff]   ;;  %v8382_v42 = vld [vmem:[#allocation2 + $0x8c] ss:$244 sps:$4 sm:$0xff]   ;;  %v8384_v58 = vld [vmem:[#allocation2 + $0x88] ss:$244 sps:$4 sm:$0xff]  }
 0x3d0   :  { %5700 = vmatprep.subr.bf16.mxu0 %v8358_v43  ;;  %5741 = vmatprep.subr.bf16.mxu1 %v8359_v49  ;;  %v8385_v62 = vld [vmem:[#allocation2 + $0x90] ss:$244 sps:$4 sm:$0xff]   ;;  %v8386_v48 = vld [vmem:[#allocation2 + $0x11b4] ss:$244 sps:$4 sm:$0xff]  }
 0x3d1   :  { %7085 = vmatprep.mubr.msk.bf16.mxu0 %vm3724_vm0, %v8673_v37  ;;  %7086 = vmatprep.mubr.msk.bf16.mxu1 %vm3724_vm0, %v8673_v37  ;;  %v8387_v54 = vld [vmem:[#allocation2 + $0x11bc] ss:$244 sps:$4 sm:$0xff]  }
 0x3d3   :  { %5701 = vmatpush1.bf16.msra.mxu0 %v8360_v47  ;;  %5742 = vmatpush1.bf16.msra.mxu1 %v8361_v53  ;;  %v8388_v47 = vld [vmem:[#allocation2 + $0x11b0] ss:$244 sps:$4 sm:$0xff]   ;;  %v8389_v53 = vld [vmem:[#allocation2 + $0x11b8] ss:$244 sps:$4 sm:$0xff]  }
 0x3d4   :  { %5702 = vmatprep.subr.bf16.mxu0 %v8362_v36  ;;  %5743 = vmatprep.subr.bf16.mxu1 %v8363_v31 }
 0x3d7   :  { %5703 = vmatpush1.bf16.msra.mxu0 %v8364_v32  ;;  %5744 = vmatpush1.bf16.msra.mxu1 %v8365_v27  ;;  %v8390_v32 = vld [vmem:[#allocation2 + $0xfcc] ss:$244 sps:$4 sm:$0xff]   ;;  %v8391_v27 = vld [vmem:[#allocation2 + $0xfd4] ss:$244 sps:$4 sm:$0xff]  }
 0x3d8   :  { %5704 = vmatprep.subr.bf16.mxu0 %v8366_v28  ;;  %5745 = vmatprep.subr.bf16.mxu1 %v8367_v55 }
 0x3db   :  { %5705 = vmatpush1.bf16.msra.mxu0 %v8368_v52  ;;  %5746 = vmatpush1.bf16.msra.mxu1 %v8369_v16 }
 0x3dc   :  { %5706 = vmatprep.subr.bf16.mxu0 %v8370_v5  ;;  %5747 = vmatprep.subr.bf16.mxu1 %v8371_v9 }
 0x3df   :  { %5707 = vmatpush1.bf16.msra.mxu0 %v8372_v0  ;;  %5748 = vmatpush1.bf16.msra.mxu1 %v8373_v15 }
 0x3e0   :  { %5708 = vmatprep.subr.bf16.mxu0 %v8374_v6  ;;  %5749 = vmatprep.subr.bf16.mxu1 %v8375_v10  ;;  %v8392_v6 = vld [vmem:[#allocation2 + $0xfc8] ss:$244 sps:$4 sm:$0xff]   ;;  %v8393_v10 = vld [vmem:[#allocation2 + $0xfd0] ss:$244 sps:$4 sm:$0xff]  }
 0x3e3   :  { %5709 = vmatpush1.bf16.msra.mxu0 %v8376_v57  ;;  %5750 = vmatpush1.bf16.msra.mxu1 %v8377_v61 }
 0x3e4   :  { %5710 = vmatprep.subr.bf16.mxu0 %v8378_v30  ;;  %5751 = vmatprep.subr.bf16.mxu1 %v8379_v11  ;;  %v8394_v30 = vld [vmem:[#allocation2 + $0xdf4] ss:$244 sps:$4 sm:$0xff]   ;;  %v8395_v11 = vld [vmem:[#allocation2 + $0xdfc] ss:$244 sps:$4 sm:$0xff]  }
 0x3e7   :  { %5711 = vmatpush1.bf16.msra.mxu0 %v8380_v12  ;;  %5752 = vmatpush1.bf16.msra.mxu1 %v8381_v41  ;;  %v8400_v12 = vld [vmem:[#allocation2 + $0xc08] ss:$244 sps:$4 sm:$0xff]   ;;  %v8401_v41 = vld [vmem:[#allocation2 + $0xc10] ss:$244 sps:$4 sm:$0xff]  }
 0x3e8   :  { %5712 = vmatprep.subr.bf16.mxu0 %v8382_v42  ;;  %5753 = vmatprep.subr.bf16.mxu1 %v8383_v3  ;;  %v8402_v42 = vld [vmem:[#allocation2 + $0xa24] ss:$244 sps:$4 sm:$0xff]   ;;  %v8403_v3 = vld [vmem:[#allocation2 + $0xa2c] ss:$244 sps:$4 sm:$0xff]  }
 0x3eb   :  { %5713 = vmatpush1.bf16.msra.mxu0 %v8384_v58  ;;  %5754 = vmatpush1.bf16.msra.mxu1 %v8385_v62  ;;  %v8404_v58 = vld [vmem:[#allocation2 + $0xa20] ss:$244 sps:$4 sm:$0xff]   ;;  %v8405_v62 = vld [vmem:[#allocation2 + $0xa28] ss:$244 sps:$4 sm:$0xff]  }
 0x3ec   :  { %5726 = vmatprep.subr.bf16.mxu0 %v8386_v48  ;;  %5767 = vmatprep.subr.bf16.mxu1 %v8387_v54  ;;  %v8406_v48 = vld [vmem:[#allocation2 + $0x83c] ss:$244 sps:$4 sm:$0xff]   ;;  %v8407_v54 = vld [vmem:[#allocation2 + $0x844] ss:$244 sps:$4 sm:$0xff]  }
 0x3ee   :  { %v5322_v43 = vpop.f32.mrf.mxu0  ;;  %v5363_v49 = vpop.f32.mrf.mxu1 }
 0x3ef   :  { %5727 = vmatpush2.bf16.msra.mxu0 %v8388_v47  ;;  %5768 = vmatpush2.bf16.msra.mxu1 %v8389_v53  ;;  %v5323_v28 = vadd.f32 %v5322_v43, %v8759_v44  ;;  %v5364_v55 = vadd.f32 %v5363_v49, %v8771_v45  ;;  %v8396_v44 = vld [vmem:[#allocation2 + $0xdf0] ss:$244 sps:$4 sm:$0xff]   ;;  %v8398_v45 = vld [vmem:[#allocation2 + $0xc0c] ss:$244 sps:$4 sm:$0xff]   ;;  %v8410_v47 = vld [vmem:[#allocation2 + $0x654] ss:$244 sps:$4 sm:$0xff]  }
 0x3f0   :  { %v5324_v36 = vpop.f32.mrf.mxu0  ;;  %v5365_v31 = vpop.f32.mrf.mxu1  ;;  %5728 = vmatprep.subr.bf16.mxu0 %v8390_v32  ;;  %5769 = vmatprep.subr.bf16.mxu1 %v8391_v27  ;;  %v8408_v43 = vld [vmem:[#allocation2 + $0x838] ss:$244 sps:$4 sm:$0xff]   ;;  %v8409_v49 = vld [vmem:[#allocation2 + $0x840] ss:$244 sps:$4 sm:$0xff]   ;;  %v8411_v53 = vld [vmem:[#allocation2 + $0x65c] ss:$244 sps:$4 sm:$0xff]  }
 0x3f1   :  { %v5325_v52 = vadd.f32 %v5324_v36, %v8763_v50  ;;  %v5366_v16 = vadd.f32 %v5365_v31, %v8775_v59  ;;  %v8397_v50 = vld [vmem:[#allocation2 + $0xdf8] ss:$244 sps:$4 sm:$0xff]   ;;  %v8399_v59 = vld [vmem:[#allocation2 + $0xc14] ss:$244 sps:$4 sm:$0xff]   ;;  %v8412_v36 = vld [vmem:[#allocation2 + $0x650] ss:$244 sps:$4 sm:$0xff]  }
 0x3f2   :  { %v5326_v5 = vpop.f32.mrf.mxu0  ;;  %v5367_v9 = vpop.f32.mrf.mxu1  ;;  %v8413_v31 = vld [vmem:[#allocation2 + $0x658] ss:$244 sps:$4 sm:$0xff]   ;;  %v8415_v27 = vld [vmem:[#allocation2 + $0x474] ss:$244 sps:$4 sm:$0xff]  }
 0x3f3   :  { %v6338_v0 = vcombine.low %v5323_v28, %v5325_v52  ;;  %v6339_v15 = vcombine.low %v5364_v55, %v5366_v16  ;;  %5729 = vmatpush2.bf16.msra.mxu0 %v8392_v6  ;;  %5770 = vmatpush2.bf16.msra.mxu1 %v8393_v10  ;;  %v8414_v32 = vld [vmem:[#allocation2 + $0x46c] ss:$244 sps:$4 sm:$0xff]   ;;  %v8416_v28 = vld [vmem:[#allocation2 + $0x468] ss:$244 sps:$4 sm:$0xff]   ;;  %v8417_v55 = vld [vmem:[#allocation2 + $0x470] ss:$244 sps:$4 sm:$0xff]  }
 0x3f4   :  { %v5327_v57 = vpop.f32.mrf.mxu0  ;;  %v5368_v61 = vpop.f32.mrf.mxu1  ;;  %5780 = vmatprep.subr.bf16.mxu0 %v8394_v30  ;;  %5821 = vmatprep.subr.bf16.mxu1 %v8395_v11  ;;  %v8418_v52 = vld [vmem:[#allocation2 + $0x284] ss:$244 sps:$4 sm:$0xff]   ;;  %v8419_v16 = vld [vmem:[#allocation2 + $0x28c] ss:$244 sps:$4 sm:$0xff]   ;;  %v8421_v9 = vld [vmem:[#allocation2 + $0x288] ss:$244 sps:$4 sm:$0xff]  }
 0x3f5   :  { %6398 = vst [vmem:[%s9165_s2 + $0x38] sm:$0xff] %v6338_v0  ;;  %6399 = vst [vmem:[%s9165_s2 + $0x40] sm:$0xff] %v6339_v15  ;;  %v8420_v5 = vld [vmem:[#allocation2 + $0x280] ss:$244 sps:$4 sm:$0xff]   ;;  %v8422_v0 = vld [vmem:[#allocation2 + $0x9c] ss:$244 sps:$4 sm:$0xff]  }
 0x3f6   :  { %5731 = vmatmul.mubr.bf16.vlgmr.msra.gmra.mxu0 %v8671_v33  ;;  %5772 = vmatmul.mubr.bf16.vlgmr.msra.gmra.mxu1 %v8671_v33  ;;  %v8423_v15 = vld [vmem:[#allocation2 + $0xa4] ss:$244 sps:$4 sm:$0xff]   ;;  %v8425_v10 = vld [vmem:[#allocation2 + $0xa0] ss:$244 sps:$4 sm:$0xff]  }
 0x3f7   :  { %5781 = vmatpush1.bf16.msra.mxu0 %v8396_v44  ;;  %5822 = vmatpush1.bf16.msra.mxu1 %v8397_v50  ;;  %v8424_v6 = vld [vmem:[#allocation2 + $0x98] ss:$244 sps:$4 sm:$0xff]   ;;  %v8428_v44 = vld [vmem:[#allocation2 + $0x11c0] ss:$244 sps:$4 sm:$0xff]   ;;  %v8429_v50 = vld [vmem:[#allocation2 + $0x11c8] ss:$244 sps:$4 sm:$0xff]  }
 0x3f8   :  { %5782 = vmatprep.subr.bf16.mxu0 %v8398_v45  ;;  %5823 = vmatprep.subr.bf16.mxu1 %v8399_v59  ;;  %v8426_v57 = vld [vmem:[#allocation2 + $0x11c4] ss:$244 sps:$4 sm:$0xff]   ;;  %v8427_v61 = vld [vmem:[#allocation2 + $0x11cc] ss:$244 sps:$4 sm:$0xff]  }
 0x3f9   :  { %7087 = vmatprep.mubr.msk.bf16.mxu0 %vm3724_vm0, %v8673_v37  ;;  %7088 = vmatprep.mubr.msk.bf16.mxu1 %vm3724_vm0, %v8673_v37 }
 0x3fb   :  { %5783 = vmatpush1.bf16.msra.mxu0 %v8400_v12  ;;  %5824 = vmatpush1.bf16.msra.mxu1 %v8401_v41  ;;  %v8430_v12 = vld [vmem:[#allocation2 + $0xfdc] ss:$244 sps:$4 sm:$0xff]   ;;  %v8431_v41 = vld [vmem:[#allocation2 + $0xfe4] ss:$244 sps:$4 sm:$0xff]  }
 0x3fc   :  { %5784 = vmatprep.subr.bf16.mxu0 %v8402_v42  ;;  %5825 = vmatprep.subr.bf16.mxu1 %v8403_v3 }
 0x3ff   :  { %5785 = vmatpush1.bf16.msra.mxu0 %v8404_v58  ;;  %5826 = vmatpush1.bf16.msra.mxu1 %v8405_v62 }
 0x400   :  { %5786 = vmatprep.subr.bf16.mxu0 %v8406_v48  ;;  %5827 = vmatprep.subr.bf16.mxu1 %v8407_v54 }
 0x403   :  { %5787 = vmatpush1.bf16.msra.mxu0 %v8408_v43  ;;  %5828 = vmatpush1.bf16.msra.mxu1 %v8409_v49 }
 0x404   :  { %5788 = vmatprep.subr.bf16.mxu0 %v8410_v47  ;;  %5829 = vmatprep.subr.bf16.mxu1 %v8411_v53  ;;  %v8432_v47 = vld [vmem:[#allocation2 + $0xfd8] ss:$244 sps:$4 sm:$0xff]   ;;  %v8433_v53 = vld [vmem:[#allocation2 + $0xfe0] ss:$244 sps:$4 sm:$0xff]  }
 0x407   :  { %5789 = vmatpush1.bf16.msra.mxu0 %v8412_v36  ;;  %5830 = vmatpush1.bf16.msra.mxu1 %v8413_v31 }
 0x408   :  { %5790 = vmatprep.subr.bf16.mxu0 %v8414_v32  ;;  %5831 = vmatprep.subr.bf16.mxu1 %v8415_v27  ;;  %v8434_v32 = vld [vmem:[#allocation2 + $0xe04] ss:$244 sps:$4 sm:$0xff]   ;;  %v8435_v27 = vld [vmem:[#allocation2 + $0xe0c] ss:$244 sps:$4 sm:$0xff]  }
 0x40b   :  { %5791 = vmatpush1.bf16.msra.mxu0 %v8416_v28  ;;  %5832 = vmatpush1.bf16.msra.mxu1 %v8417_v55  ;;  %v8440_v28 = vld [vmem:[#allocation2 + $0xc18] ss:$244 sps:$4 sm:$0xff]   ;;  %v8441_v55 = vld [vmem:[#allocation2 + $0xc20] ss:$244 sps:$4 sm:$0xff]  }
 0x40c   :  { %5792 = vmatprep.subr.bf16.mxu0 %v8418_v52  ;;  %5833 = vmatprep.subr.bf16.mxu1 %v8419_v16  ;;  %v8442_v52 = vld [vmem:[#allocation2 + $0xa34] ss:$244 sps:$4 sm:$0xff]   ;;  %v8443_v16 = vld [vmem:[#allocation2 + $0xa3c] ss:$244 sps:$4 sm:$0xff]  }
 0x40f   :  { %5793 = vmatpush1.bf16.msra.mxu0 %v8420_v5  ;;  %5834 = vmatpush1.bf16.msra.mxu1 %v8421_v9  ;;  %v8444_v5 = vld [vmem:[#allocation2 + $0xa30] ss:$244 sps:$4 sm:$0xff]   ;;  %v8445_v9 = vld [vmem:[#allocation2 + $0xa38] ss:$244 sps:$4 sm:$0xff]  }
 0x410   :  { %5794 = vmatprep.subr.bf16.mxu0 %v8422_v0  ;;  %5835 = vmatprep.subr.bf16.mxu1 %v8423_v15  ;;  %v8446_v0 = vld [vmem:[#allocation2 + $0x84c] ss:$244 sps:$4 sm:$0xff]   ;;  %v8447_v15 = vld [vmem:[#allocation2 + $0x854] ss:$244 sps:$4 sm:$0xff]  }
 0x413   :  { %5795 = vmatpush1.bf16.msra.mxu0 %v8424_v6  ;;  %5836 = vmatpush1.bf16.msra.mxu1 %v8425_v10  ;;  %v8448_v6 = vld [vmem:[#allocation2 + $0x848] ss:$244 sps:$4 sm:$0xff]   ;;  %v8449_v10 = vld [vmem:[#allocation2 + $0x850] ss:$244 sps:$4 sm:$0xff]  }
 0x414   :  { %5808 = vmatprep.subr.bf16.mxu0 %v8426_v57  ;;  %5849 = vmatprep.subr.bf16.mxu1 %v8427_v61  ;;  %v8450_v57 = vld [vmem:[#allocation2 + $0x664] ss:$244 sps:$4 sm:$0xff]   ;;  %v8451_v61 = vld [vmem:[#allocation2 + $0x66c] ss:$244 sps:$4 sm:$0xff]  }
 0x416   :  { %v5404_v30 = vpop.f32.mrf.mxu0  ;;  %v5445_v11 = vpop.f32.mrf.mxu1 }
 0x417   :  { %5809 = vmatpush2.bf16.msra.mxu0 %v8428_v44  ;;  %5850 = vmatpush2.bf16.msra.mxu1 %v8429_v50  ;;  %v5405_v42 = vadd.f32 %v5404_v30, %v8773_v46  ;;  %v5446_v3 = vadd.f32 %v5445_v11, %v8785_v1  ;;  %v8436_v46 = vld [vmem:[#allocation2 + $0xe00] ss:$244 sps:$4 sm:$0xff]   ;;  %v8438_v1 = vld [vmem:[#allocation2 + $0xc1c] ss:$244 sps:$4 sm:$0xff]   ;;  %v8455_v50 = vld [vmem:[#allocation2 + $0x484] ss:$244 sps:$4 sm:$0xff]  }
 0x418   :  { %v5406_v45 = vpop.f32.mrf.mxu0  ;;  %v5447_v59 = vpop.f32.mrf.mxu1  ;;  %5810 = vmatprep.subr.bf16.mxu0 %v8430_v12  ;;  %5851 = vmatprep.subr.bf16.mxu1 %v8431_v41  ;;  %v8452_v30 = vld [vmem:[#allocation2 + $0x660] ss:$244 sps:$4 sm:$0xff]   ;;  %v8453_v11 = vld [vmem:[#allocation2 + $0x668] ss:$244 sps:$4 sm:$0xff]  }
 0x419   :  { %v5407_v58 = vadd.f32 %v5406_v45, %v8777_v60  ;;  %v5448_v62 = vadd.f32 %v5447_v59, %v8789_v7  ;;  %v8437_v60 = vld [vmem:[#allocation2 + $0xe08] ss:$244 sps:$4 sm:$0xff]   ;;  %v8439_v7 = vld [vmem:[#allocation2 + $0xc24] ss:$244 sps:$4 sm:$0xff]   ;;  %v8457_v59 = vld [vmem:[#allocation2 + $0x480] ss:$244 sps:$4 sm:$0xff]  }
 0x41a   :  { %v5408_v48 = vpop.f32.mrf.mxu0  ;;  %v5449_v54 = vpop.f32.mrf.mxu1  ;;  %v8454_v44 = vld [vmem:[#allocation2 + $0x47c] ss:$244 sps:$4 sm:$0xff]   ;;  %v8456_v45 = vld [vmem:[#allocation2 + $0x478] ss:$244 sps:$4 sm:$0xff]   ;;  %v8458_v12 = vld [vmem:[#allocation2 + $0x294] ss:$244 sps:$4 sm:$0xff]  }
 0x41b   :  { %v6340_v43 = vcombine.low %v5405_v42, %v5407_v58  ;;  %v6341_v49 = vcombine.low %v5446_v3, %v5448_v62  ;;  %5811 = vmatpush2.bf16.msra.mxu0 %v8432_v47  ;;  %5852 = vmatpush2.bf16.msra.mxu1 %v8433_v53  ;;  %v8459_v41 = vld [vmem:[#allocation2 + $0x29c] ss:$244 sps:$4 sm:$0xff]   ;;  %v8461_v3 = vld [vmem:[#allocation2 + $0x298] ss:$244 sps:$4 sm:$0xff]   ;;  %v8463_v62 = vld [vmem:[#allocation2 + $0xb4] ss:$244 sps:$4 sm:$0xff]  }
 0x41c   :  { %v5409_v36 = vpop.f32.mrf.mxu0  ;;  %v5450_v31 = vpop.f32.mrf.mxu1  ;;  %5862 = vmatprep.subr.bf16.mxu0 %v8434_v32  ;;  %5903 = vmatprep.subr.bf16.mxu1 %v8435_v27  ;;  %v8460_v42 = vld [vmem:[#allocation2 + $0x290] ss:$244 sps:$4 sm:$0xff]   ;;  %v8462_v58 = vld [vmem:[#allocation2 + $0xac] ss:$244 sps:$4 sm:$0xff]   ;;  %v8464_v48 = vld [vmem:[#allocation2 + $0xa8] ss:$244 sps:$4 sm:$0xff]  }
 0x41d   :  { %6400 = vst [vmem:[%s9165_s2 + $0x48] sm:$0xff] %v6340_v43  ;;  %6401 = vst [vmem:[%s9165_s2 + $0x50] sm:$0xff] %v6341_v49  ;;  %v8465_v54 = vld [vmem:[#allocation2 + $0xb0] ss:$244 sps:$4 sm:$0xff]   ;;  %v8466_v43 = vld [vmem:[#allocation2 + $0x11d4] ss:$244 sps:$4 sm:$0xff]  }
 0x41e   :  { %5813 = vmatmul.mubr.bf16.vlgmr.msra.gmra.mxu0 %v8671_v33  ;;  %5854 = vmatmul.mubr.bf16.vlgmr.msra.gmra.mxu1 %v8671_v33  ;;  %v8467_v49 = vld [vmem:[#allocation2 + $0x11dc] ss:$244 sps:$4 sm:$0xff]   ;;  %v8469_v31 = vld [vmem:[#allocation2 + $0x11d8] ss:$244 sps:$4 sm:$0xff]  }
 0x41f   :  { %5863 = vmatpush1.bf16.msra.mxu0 %v8436_v46  ;;  %5904 = vmatpush1.bf16.msra.mxu1 %v8437_v60  ;;  %v8468_v36 = vld [vmem:[#allocation2 + $0x11d0] ss:$244 sps:$4 sm:$0xff]   ;;  %v8470_v46 = vld [vmem:[#allocation2 + $0xfec] ss:$244 sps:$4 sm:$0xff]   ;;  %v8471_v60 = vld [vmem:[#allocation2 + $0xff4] ss:$244 sps:$4 sm:$0xff]  }
 0x420   :  { %5864 = vmatprep.subr.bf16.mxu0 %v8438_v1  ;;  %5905 = vmatprep.subr.bf16.mxu1 %v8439_v7 }
 0x421   :  { %7089 = vmatprep.mubr.msk.bf16.mxu0 %vm3724_vm0, %v8673_v37  ;;  %7090 = vmatprep.mubr.msk.bf16.mxu1 %vm3724_vm0, %v8673_v37 }
 0x423   :  { %5865 = vmatpush1.bf16.msra.mxu0 %v8440_v28  ;;  %5906 = vmatpush1.bf16.msra.mxu1 %v8441_v55 }
 0x424   :  { %5866 = vmatprep.subr.bf16.mxu0 %v8442_v52  ;;  %5907 = vmatprep.subr.bf16.mxu1 %v8443_v16 }
 0x427   :  { %5867 = vmatpush1.bf16.msra.mxu0 %v8444_v5  ;;  %5908 = vmatpush1.bf16.msra.mxu1 %v8445_v9 }
 0x428   :  { %5868 = vmatprep.subr.bf16.mxu0 %v8446_v0  ;;  %5909 = vmatprep.subr.bf16.mxu1 %v8447_v15  ;;  %v8472_v0 = vld [vmem:[#allocation2 + $0xfe8] ss:$244 sps:$4 sm:$0xff]   ;;  %v8473_v15 = vld [vmem:[#allocation2 + $0xff0] ss:$244 sps:$4 sm:$0xff]  }
 0x42b   :  { %5869 = vmatpush1.bf16.msra.mxu0 %v8448_v6  ;;  %5910 = vmatpush1.bf16.msra.mxu1 %v8449_v10 }
 0x42c   :  { %5870 = vmatprep.subr.bf16.mxu0 %v8450_v57  ;;  %5911 = vmatprep.subr.bf16.mxu1 %v8451_v61  ;;  %v8474_v57 = vld [vmem:[#allocation2 + $0xe14] ss:$244 sps:$4 sm:$0xff]   ;;  %v8475_v61 = vld [vmem:[#allocation2 + $0xe1c] ss:$244 sps:$4 sm:$0xff]  }
 0x42f   :  { %5871 = vmatpush1.bf16.msra.mxu0 %v8452_v30  ;;  %5912 = vmatpush1.bf16.msra.mxu1 %v8453_v11  ;;  %v8480_v30 = vld [vmem:[#allocation2 + $0xc28] ss:$244 sps:$4 sm:$0xff]   ;;  %v8481_v11 = vld [vmem:[#allocation2 + $0xc30] ss:$244 sps:$4 sm:$0xff]  }
 0x430   :  { %5872 = vmatprep.subr.bf16.mxu0 %v8454_v44  ;;  %5913 = vmatprep.subr.bf16.mxu1 %v8455_v50  ;;  %v8482_v44 = vld [vmem:[#allocation2 + $0xa44] ss:$244 sps:$4 sm:$0xff]   ;;  %v8483_v50 = vld [vmem:[#allocation2 + $0xa4c] ss:$244 sps:$4 sm:$0xff]  }
 0x433   :  { %5873 = vmatpush1.bf16.msra.mxu0 %v8456_v45  ;;  %5914 = vmatpush1.bf16.msra.mxu1 %v8457_v59  ;;  %v8484_v45 = vld [vmem:[#allocation2 + $0xa40] ss:$244 sps:$4 sm:$0xff]   ;;  %v8485_v59 = vld [vmem:[#allocation2 + $0xa48] ss:$244 sps:$4 sm:$0xff]  }
 0x434   :  { %5874 = vmatprep.subr.bf16.mxu0 %v8458_v12  ;;  %5915 = vmatprep.subr.bf16.mxu1 %v8459_v41  ;;  %v8486_v12 = vld [vmem:[#allocation2 + $0x85c] ss:$244 sps:$4 sm:$0xff]   ;;  %v8487_v41 = vld [vmem:[#allocation2 + $0x864] ss:$244 sps:$4 sm:$0xff]  }
 0x437   :  { %5875 = vmatpush1.bf16.msra.mxu0 %v8460_v42  ;;  %5916 = vmatpush1.bf16.msra.mxu1 %v8461_v3  ;;  %v8488_v42 = vld [vmem:[#allocation2 + $0x858] ss:$244 sps:$4 sm:$0xff]   ;;  %v8489_v3 = vld [vmem:[#allocation2 + $0x860] ss:$244 sps:$4 sm:$0xff]  }
 0x438   :  { %5876 = vmatprep.subr.bf16.mxu0 %v8462_v58  ;;  %5917 = vmatprep.subr.bf16.mxu1 %v8463_v62  ;;  %v8490_v58 = vld [vmem:[#allocation2 + $0x674] ss:$244 sps:$4 sm:$0xff]   ;;  %v8491_v62 = vld [vmem:[#allocation2 + $0x67c] ss:$244 sps:$4 sm:$0xff]  }
 0x43b   :  { %5877 = vmatpush1.bf16.msra.mxu0 %v8464_v48  ;;  %5918 = vmatpush1.bf16.msra.mxu1 %v8465_v54  ;;  %v8492_v48 = vld [vmem:[#allocation2 + $0x670] ss:$244 sps:$4 sm:$0xff]   ;;  %v8493_v54 = vld [vmem:[#allocation2 + $0x678] ss:$244 sps:$4 sm:$0xff]  }
 0x43c   :  { %5890 = vmatprep.subr.bf16.mxu0 %v8466_v43  ;;  %5931 = vmatprep.subr.bf16.mxu1 %v8467_v49  ;;  %v8494_v43 = vld [vmem:[#allocation2 + $0x48c] ss:$244 sps:$4 sm:$0xff]   ;;  %v8495_v49 = vld [vmem:[#allocation2 + $0x494] ss:$244 sps:$4 sm:$0xff]  }
 0x43e   :  { %v5486_v47 = vpop.f32.mrf.mxu0  ;;  %v5527_v53 = vpop.f32.mrf.mxu1 }
 0x43f   :  { %5891 = vmatpush2.bf16.msra.mxu0 %v8468_v36  ;;  %5932 = vmatpush2.bf16.msra.mxu1 %v8469_v31  ;;  %v5487_v1 = vadd.f32 %v5486_v47, %v8787_v2  ;;  %v5528_v7 = vadd.f32 %v5527_v53, %v8799_v17  ;;  %v8476_v2 = vld [vmem:[#allocation2 + $0xe10] ss:$244 sps:$4 sm:$0xff]   ;;  %v8478_v17 = vld [vmem:[#allocation2 + $0xc2c] ss:$244 sps:$4 sm:$0xff]   ;;  %v8496_v47 = vld [vmem:[#allocation2 + $0x488] ss:$244 sps:$4 sm:$0xff]  }
 0x440   :  { %v5488_v32 = vpop.f32.mrf.mxu0  ;;  %v5529_v27 = vpop.f32.mrf.mxu1  ;;  %5892 = vmatprep.subr.bf16.mxu0 %v8470_v46  ;;  %5933 = vmatprep.subr.bf16.mxu1 %v8471_v60  ;;  %v8497_v53 = vld [vmem:[#allocation2 + $0x490] ss:$244 sps:$4 sm:$0xff]   ;;  %v8499_v31 = vld [vmem:[#allocation2 + $0x2ac] ss:$244 sps:$4 sm:$0xff]  }
 0x441   :  { %v5489_v28 = vadd.f32 %v5488_v32, %v8791_v8  ;;  %v5530_v55 = vadd.f32 %v5529_v27, %v8803_v21  ;;  %v8477_v8 = vld [vmem:[#allocation2 + $0xe18] ss:$244 sps:$4 sm:$0xff]   ;;  %v8479_v21 = vld [vmem:[#allocation2 + $0xc34] ss:$244 sps:$4 sm:$0xff]   ;;  %v8502_v46 = vld [vmem:[#allocation2 + $0xbc] ss:$244 sps:$4 sm:$0xff]  }
 0x442   :  { %v5490_v52 = vpop.f32.mrf.mxu0  ;;  %v5531_v16 = vpop.f32.mrf.mxu1  ;;  %v8498_v36 = vld [vmem:[#allocation2 + $0x2a4] ss:$244 sps:$4 sm:$0xff]   ;;  %v8500_v32 = vld [vmem:[#allocation2 + $0x2a0] ss:$244 sps:$4 sm:$0xff]   ;;  %v8501_v27 = vld [vmem:[#allocation2 + $0x2a8] ss:$244 sps:$4 sm:$0xff]  }
 0x443   :  { %v6342_v5 = vcombine.low %v5487_v1, %v5489_v28  ;;  %v6343_v9 = vcombine.low %v5528_v7, %v5530_v55  ;;  %5893 = vmatpush2.bf16.msra.mxu0 %v8472_v0  ;;  %5934 = vmatpush2.bf16.msra.mxu1 %v8473_v15  ;;  %v8503_v60 = vld [vmem:[#allocation2 + $0xc4] ss:$244 sps:$4 sm:$0xff]   ;;  %v8505_v7 = vld [vmem:[#allocation2 + $0xc0] ss:$244 sps:$4 sm:$0xff]  }
 0x444   :  { %v5491_v6 = vpop.f32.mrf.mxu0  ;;  %v5532_v10 = vpop.f32.mrf.mxu1  ;;  %5944 = vmatprep.subr.bf16.mxu0 %v8474_v57  ;;  %5985 = vmatprep.subr.bf16.mxu1 %v8475_v61  ;;  %v8504_v1 = vld [vmem:[#allocation2 + $0xb8] ss:$244 sps:$4 sm:$0xff]  }
 0x445   :  { %6402 = vst [vmem:[%s9165_s2 + $0x58] sm:$0xff] %v6342_v5  ;;  %6403 = vst [vmem:[%s9165_s2 + $0x60] sm:$0xff] %v6343_v9  ;;  %v8506_v28 = vld [vmem:[#allocation2 + $0x11e4] ss:$244 sps:$4 sm:$0xff]   ;;  %v8507_v55 = vld [vmem:[#allocation2 + $0x11ec] ss:$244 sps:$4 sm:$0xff]  }
 0x446   :  { %5895 = vmatmul.mubr.bf16.vlgmr.msra.gmra.mxu0 %v8671_v33  ;;  %5936 = vmatmul.mubr.bf16.vlgmr.msra.gmra.mxu1 %v8671_v33  ;;  %v8508_v5 = vld [vmem:[#allocation2 + $0x11e0] ss:$244 sps:$4 sm:$0xff]   ;;  %v8509_v9 = vld [vmem:[#allocation2 + $0x11e8] ss:$244 sps:$4 sm:$0xff]   ;;  %v8511_v10 = vld [vmem:[#allocation2 + $0x1004] ss:$244 sps:$4 sm:$0xff]  }
 0x447   :  { %5945 = vmatpush1.bf16.msra.mxu0 %v8476_v2  ;;  %5986 = vmatpush1.bf16.msra.mxu1 %v8477_v8  ;;  %v8510_v6 = vld [vmem:[#allocation2 + $0xffc] ss:$244 sps:$4 sm:$0xff]  }
 0x448   :  { %5946 = vmatprep.subr.bf16.mxu0 %v8478_v17  ;;  %5987 = vmatprep.subr.bf16.mxu1 %v8479_v21 }
 0x449   :  { %7091 = vmatprep.mubr.msk.bf16.mxu0 %vm3724_vm0, %v8673_v37  ;;  %7092 = vmatprep.mubr.msk.bf16.mxu1 %vm3724_vm0, %v8673_v37 }
 0x44b   :  { %5947 = vmatpush1.bf16.msra.mxu0 %v8480_v30  ;;  %5988 = vmatpush1.bf16.msra.mxu1 %v8481_v11 }
 0x44c   :  { %5948 = vmatprep.subr.bf16.mxu0 %v8482_v44  ;;  %5989 = vmatprep.subr.bf16.mxu1 %v8483_v50  ;;  %v8512_v44 = vld [vmem:[#allocation2 + $0xff8] ss:$244 sps:$4 sm:$0xff]   ;;  %v8513_v50 = vld [vmem:[#allocation2 + $0x1000] ss:$244 sps:$4 sm:$0xff]  }
 0x44f   :  { %5949 = vmatpush1.bf16.msra.mxu0 %v8484_v45  ;;  %5990 = vmatpush1.bf16.msra.mxu1 %v8485_v59 }
 0x450   :  { %5950 = vmatprep.subr.bf16.mxu0 %v8486_v12  ;;  %5991 = vmatprep.subr.bf16.mxu1 %v8487_v41  ;;  %v8514_v12 = vld [vmem:[#allocation2 + $0xe24] ss:$244 sps:$4 sm:$0xff]   ;;  %v8515_v41 = vld [vmem:[#allocation2 + $0xe2c] ss:$244 sps:$4 sm:$0xff]  }
 0x453   :  { %5951 = vmatpush1.bf16.msra.mxu0 %v8488_v42  ;;  %5992 = vmatpush1.bf16.msra.mxu1 %v8489_v3  ;;  %v8520_v42 = vld [vmem:[#allocation2 + $0xc38] ss:$244 sps:$4 sm:$0xff]   ;;  %v8521_v3 = vld [vmem:[#allocation2 + $0xc40] ss:$244 sps:$4 sm:$0xff]  }
 0x454   :  { %5952 = vmatprep.subr.bf16.mxu0 %v8490_v58  ;;  %5993 = vmatprep.subr.bf16.mxu1 %v8491_v62  ;;  %v8522_v58 = vld [vmem:[#allocation2 + $0xa54] ss:$244 sps:$4 sm:$0xff]   ;;  %v8523_v62 = vld [vmem:[#allocation2 + $0xa5c] ss:$244 sps:$4 sm:$0xff]  }
 0x457   :  { %5953 = vmatpush1.bf16.msra.mxu0 %v8492_v48  ;;  %5994 = vmatpush1.bf16.msra.mxu1 %v8493_v54  ;;  %v8524_v48 = vld [vmem:[#allocation2 + $0xa50] ss:$244 sps:$4 sm:$0xff]   ;;  %v8525_v54 = vld [vmem:[#allocation2 + $0xa58] ss:$244 sps:$4 sm:$0xff]  }
 0x458   :  { %5954 = vmatprep.subr.bf16.mxu0 %v8494_v43  ;;  %5995 = vmatprep.subr.bf16.mxu1 %v8495_v49  ;;  %v8526_v43 = vld [vmem:[#allocation2 + $0x86c] ss:$244 sps:$4 sm:$0xff]   ;;  %v8527_v49 = vld [vmem:[#allocation2 + $0x874] ss:$244 sps:$4 sm:$0xff]  }
 0x45b   :  { %5955 = vmatpush1.bf16.msra.mxu0 %v8496_v47  ;;  %5996 = vmatpush1.bf16.msra.mxu1 %v8497_v53  ;;  %v8528_v47 = vld [vmem:[#allocation2 + $0x868] ss:$244 sps:$4 sm:$0xff]   ;;  %v8529_v53 = vld [vmem:[#allocation2 + $0x870] ss:$244 sps:$4 sm:$0xff]  }
 0x45c   :  { %5956 = vmatprep.subr.bf16.mxu0 %v8498_v36  ;;  %5997 = vmatprep.subr.bf16.mxu1 %v8499_v31  ;;  %v8530_v36 = vld [vmem:[#allocation2 + $0x684] ss:$244 sps:$4 sm:$0xff]   ;;  %v8531_v31 = vld [vmem:[#allocation2 + $0x68c] ss:$244 sps:$4 sm:$0xff]  }
 0x45f   :  { %5957 = vmatpush1.bf16.msra.mxu0 %v8500_v32  ;;  %5998 = vmatpush1.bf16.msra.mxu1 %v8501_v27  ;;  %v8532_v32 = vld [vmem:[#allocation2 + $0x680] ss:$244 sps:$4 sm:$0xff]   ;;  %v8533_v27 = vld [vmem:[#allocation2 + $0x688] ss:$244 sps:$4 sm:$0xff]  }
 0x460   :  { %5958 = vmatprep.subr.bf16.mxu0 %v8502_v46  ;;  %5999 = vmatprep.subr.bf16.mxu1 %v8503_v60  ;;  %v8534_v46 = vld [vmem:[#allocation2 + $0x49c] ss:$244 sps:$4 sm:$0xff]   ;;  %v8535_v60 = vld [vmem:[#allocation2 + $0x4a4] ss:$244 sps:$4 sm:$0xff]  }
 0x463   :  { %5959 = vmatpush1.bf16.msra.mxu0 %v8504_v1  ;;  %6000 = vmatpush1.bf16.msra.mxu1 %v8505_v7  ;;  %v8536_v1 = vld [vmem:[#allocation2 + $0x498] ss:$244 sps:$4 sm:$0xff]   ;;  %v8537_v7 = vld [vmem:[#allocation2 + $0x4a0] ss:$244 sps:$4 sm:$0xff]  }
 0x464   :  { %5972 = vmatprep.subr.bf16.mxu0 %v8506_v28  ;;  %6013 = vmatprep.subr.bf16.mxu1 %v8507_v55  ;;  %v8538_v28 = vld [vmem:[#allocation2 + $0x2b4] ss:$244 sps:$4 sm:$0xff]   ;;  %v8539_v55 = vld [vmem:[#allocation2 + $0x2bc] ss:$244 sps:$4 sm:$0xff]  }
 0x466   :  { %v5568_v52 = vpop.f32.mrf.mxu0  ;;  %v5609_v16 = vpop.f32.mrf.mxu1 }
 0x467   :  { %5973 = vmatpush2.bf16.msra.mxu0 %v8508_v5  ;;  %6014 = vmatpush2.bf16.msra.mxu1 %v8509_v9  ;;  %v5569_v57 = vadd.f32 %v5568_v52, %v8801_v18  ;;  %v5610_v61 = vadd.f32 %v5609_v16, %v8813_v34  ;;  %v8516_v18 = vld [vmem:[#allocation2 + $0xe20] ss:$244 sps:$4 sm:$0xff]   ;;  %v8518_v34 = vld [vmem:[#allocation2 + $0xc3c] ss:$244 sps:$4 sm:$0xff]   ;;  %v8541_v16 = vld [vmem:[#allocation2 + $0x2b8] ss:$244 sps:$4 sm:$0xff]  }
 0x468   :  { %v5570_v0 = vpop.f32.mrf.mxu0  ;;  %v5611_v15 = vpop.f32.mrf.mxu1  ;;  %5974 = vmatprep.subr.bf16.mxu0 %v8510_v6  ;;  %6015 = vmatprep.subr.bf16.mxu1 %v8511_v10  ;;  %v8540_v52 = vld [vmem:[#allocation2 + $0x2b0] ss:$244 sps:$4 sm:$0xff]   ;;  %v8542_v5 = vld [vmem:[#allocation2 + $0xcc] ss:$244 sps:$4 sm:$0xff]   ;;  %v8543_v9 = vld [vmem:[#allocation2 + $0xd4] ss:$244 sps:$4 sm:$0xff]  }
 0x469   :  { %v5571_v2 = vadd.f32 %v5570_v0, %v8805_v22  ;;  %v5612_v8 = vadd.f32 %v5611_v15, %v8817_v39  ;;  %v8517_v22 = vld [vmem:[#allocation2 + $0xe28] ss:$244 sps:$4 sm:$0xff]   ;;  %v8519_v39 = vld [vmem:[#allocation2 + $0xc44] ss:$244 sps:$4 sm:$0xff]  }
 0x46a   :  { %v5572_v17 = vpop.f32.mrf.mxu0  ;;  %v5613_v21 = vpop.f32.mrf.mxu1  ;;  %v8544_v0 = vld [vmem:[#allocation2 + $0xc8] ss:$244 sps:$4 sm:$0xff]   ;;  %v8545_v15 = vld [vmem:[#allocation2 + $0xd0] ss:$244 sps:$4 sm:$0xff]  }
 0x46b   :  { %v6344_v30 = vcombine.low %v5569_v57, %v5571_v2  ;;  %v6345_v11 = vcombine.low %v5610_v61, %v5612_v8  ;;  %5975 = vmatpush2.bf16.msra.mxu0 %v8512_v44  ;;  %6016 = vmatpush2.bf16.msra.mxu1 %v8513_v50  ;;  %v8546_v6 = vld [vmem:[#allocation2 + $0x11f4] ss:$244 sps:$4 sm:$0xff]   ;;  %v8547_v10 = vld [vmem:[#allocation2 + $0x11fc] ss:$244 sps:$4 sm:$0xff]   ;;  %v8549_v8 = vld [vmem:[#allocation2 + $0x11f8] ss:$244 sps:$4 sm:$0xff]  }
 0x46c   :  { %v5573_v45 = vpop.f32.mrf.mxu0  ;;  %v5614_v59 = vpop.f32.mrf.mxu1  ;;  %6026 = vmatprep.subr.bf16.mxu0 %v8514_v12  ;;  %6067 = vmatprep.subr.bf16.mxu1 %v8515_v41  ;;  %v8548_v2 = vld [vmem:[#allocation2 + $0x11f0] ss:$244 sps:$4 sm:$0xff]  }
 0x46d   :  { %6404 = vst [vmem:[%s9165_s2 + $0x68] sm:$0xff] %v6344_v30  ;;  %6405 = vst [vmem:[%s9165_s2 + $0x70] sm:$0xff] %v6345_v11  ;;  %v8550_v30 = vld [vmem:[#allocation2 + $0x100c] ss:$244 sps:$4 sm:$0xff]   ;;  %v8551_v11 = vld [vmem:[#allocation2 + $0x1014] ss:$244 sps:$4 sm:$0xff]  }
 0x46e   :  { %5977 = vmatmul.mubr.bf16.vlgmr.msra.gmra.mxu0 %v8671_v33  ;;  %6018 = vmatmul.mubr.bf16.vlgmr.msra.gmra.mxu1 %v8671_v33 }
 0x46f   :  { %6027 = vmatpush1.bf16.msra.mxu0 %v8516_v18  ;;  %6068 = vmatpush1.bf16.msra.mxu1 %v8517_v22 }
 0x470   :  { %6028 = vmatprep.subr.bf16.mxu0 %v8518_v34  ;;  %6069 = vmatprep.subr.bf16.mxu1 %v8519_v39  ;;  %v8552_v34 = vld [vmem:[#allocation2 + $0x1008] ss:$244 sps:$4 sm:$0xff]   ;;  %v8553_v39 = vld [vmem:[#allocation2 + $0x1010] ss:$244 sps:$4 sm:$0xff]  }
 0x471   :  { %7093 = vmatprep.mubr.msk.bf16.mxu0 %vm3724_vm0, %v8673_v37  ;;  %7094 = vmatprep.mubr.msk.bf16.mxu1 %vm3724_vm0, %v8673_v37 }
 0x473   :  { %6029 = vmatpush1.bf16.msra.mxu0 %v8520_v42  ;;  %6070 = vmatpush1.bf16.msra.mxu1 %v8521_v3 }
 0x474   :  { %6030 = vmatprep.subr.bf16.mxu0 %v8522_v58  ;;  %6071 = vmatprep.subr.bf16.mxu1 %v8523_v62  ;;  %v8554_v58 = vld [vmem:[#allocation2 + $0xe34] ss:$244 sps:$4 sm:$0xff]   ;;  %v8555_v62 = vld [vmem:[#allocation2 + $0xe3c] ss:$244 sps:$4 sm:$0xff]  }
 0x477   :  { %6031 = vmatpush1.bf16.msra.mxu0 %v8524_v48  ;;  %6072 = vmatpush1.bf16.msra.mxu1 %v8525_v54  ;;  %v8560_v48 = vld [vmem:[#allocation2 + $0xc48] ss:$244 sps:$4 sm:$0xff]   ;;  %v8561_v54 = vld [vmem:[#allocation2 + $0xc50] ss:$244 sps:$4 sm:$0xff]  }
 0x478   :  { %6032 = vmatprep.subr.bf16.mxu0 %v8526_v43  ;;  %6073 = vmatprep.subr.bf16.mxu1 %v8527_v49  ;;  %v8562_v43 = vld [vmem:[#allocation2 + $0xa64] ss:$244 sps:$4 sm:$0xff]   ;;  %v8563_v49 = vld [vmem:[#allocation2 + $0xa6c] ss:$244 sps:$4 sm:$0xff]  }
 0x47b   :  { %6033 = vmatpush1.bf16.msra.mxu0 %v8528_v47  ;;  %6074 = vmatpush1.bf16.msra.mxu1 %v8529_v53  ;;  %v8564_v47 = vld [vmem:[#allocation2 + $0xa60] ss:$244 sps:$4 sm:$0xff]   ;;  %v8565_v53 = vld [vmem:[#allocation2 + $0xa68] ss:$244 sps:$4 sm:$0xff]  }
 0x47c   :  { %6034 = vmatprep.subr.bf16.mxu0 %v8530_v36  ;;  %6075 = vmatprep.subr.bf16.mxu1 %v8531_v31  ;;  %v8566_v36 = vld [vmem:[#allocation2 + $0x87c] ss:$244 sps:$4 sm:$0xff]   ;;  %v8567_v31 = vld [vmem:[#allocation2 + $0x884] ss:$244 sps:$4 sm:$0xff]  }
 0x47f   :  { %6035 = vmatpush1.bf16.msra.mxu0 %v8532_v32  ;;  %6076 = vmatpush1.bf16.msra.mxu1 %v8533_v27  ;;  %v8568_v32 = vld [vmem:[#allocation2 + $0x878] ss:$244 sps:$4 sm:$0xff]   ;;  %v8569_v27 = vld [vmem:[#allocation2 + $0x880] ss:$244 sps:$4 sm:$0xff]  }
 0x480   :  { %6036 = vmatprep.subr.bf16.mxu0 %v8534_v46  ;;  %6077 = vmatprep.subr.bf16.mxu1 %v8535_v60  ;;  %v8570_v46 = vld [vmem:[#allocation2 + $0x694] ss:$244 sps:$4 sm:$0xff]   ;;  %v8571_v60 = vld [vmem:[#allocation2 + $0x69c] ss:$244 sps:$4 sm:$0xff]  }
 0x483   :  { %6037 = vmatpush1.bf16.msra.mxu0 %v8536_v1  ;;  %6078 = vmatpush1.bf16.msra.mxu1 %v8537_v7  ;;  %v8572_v1 = vld [vmem:[#allocation2 + $0x690] ss:$244 sps:$4 sm:$0xff]   ;;  %v8573_v7 = vld [vmem:[#allocation2 + $0x698] ss:$244 sps:$4 sm:$0xff]  }
 0x484   :  { %6038 = vmatprep.subr.bf16.mxu0 %v8538_v28  ;;  %6079 = vmatprep.subr.bf16.mxu1 %v8539_v55  ;;  %v8574_v28 = vld [vmem:[#allocation2 + $0x4ac] ss:$244 sps:$4 sm:$0xff]   ;;  %v8575_v55 = vld [vmem:[#allocation2 + $0x4b4] ss:$244 sps:$4 sm:$0xff]  }
 0x487   :  { %6039 = vmatpush1.bf16.msra.mxu0 %v8540_v52  ;;  %6080 = vmatpush1.bf16.msra.mxu1 %v8541_v16  ;;  %v8576_v52 = vld [vmem:[#allocation2 + $0x4a8] ss:$244 sps:$4 sm:$0xff]   ;;  %v8577_v16 = vld [vmem:[#allocation2 + $0x4b0] ss:$244 sps:$4 sm:$0xff]  }
 0x488   :  { %6040 = vmatprep.subr.bf16.mxu0 %v8542_v5  ;;  %6081 = vmatprep.subr.bf16.mxu1 %v8543_v9  ;;  %v8578_v5 = vld [vmem:[#allocation2 + $0x2c4] ss:$244 sps:$4 sm:$0xff]   ;;  %v8579_v9 = vld [vmem:[#allocation2 + $0x2cc] ss:$244 sps:$4 sm:$0xff]  }
 0x48b   :  { %6041 = vmatpush1.bf16.msra.mxu0 %v8544_v0  ;;  %6082 = vmatpush1.bf16.msra.mxu1 %v8545_v15  ;;  %v8580_v0 = vld [vmem:[#allocation2 + $0x2c0] ss:$244 sps:$4 sm:$0xff]   ;;  %v8581_v15 = vld [vmem:[#allocation2 + $0x2c8] ss:$244 sps:$4 sm:$0xff]  }
 0x48c   :  { %6054 = vmatprep.subr.bf16.mxu0 %v8546_v6  ;;  %6095 = vmatprep.subr.bf16.mxu1 %v8547_v10  ;;  %v8582_v6 = vld [vmem:[#allocation2 + $0xdc] ss:$244 sps:$4 sm:$0xff]   ;;  %v8583_v10 = vld [vmem:[#allocation2 + $0xe4] ss:$244 sps:$4 sm:$0xff]  }
 0x48e   :  { %v5650_v57 = vpop.f32.mrf.mxu0  ;;  %v5691_v61 = vpop.f32.mrf.mxu1 }
 0x48f   :  { %6055 = vmatpush2.bf16.msra.mxu0 %v8548_v2  ;;  %6096 = vmatpush2.bf16.msra.mxu1 %v8549_v8  ;;  %v5651_v44 = vadd.f32 %v5650_v57, %v8815_v35  ;;  %v5692_v50 = vadd.f32 %v5691_v61, %v8827_v19  ;;  %v8556_v35 = vld [vmem:[#allocation2 + $0xe30] ss:$244 sps:$4 sm:$0xff]   ;;  %v8558_v19 = vld [vmem:[#allocation2 + $0xc4c] ss:$244 sps:$4 sm:$0xff]  }
 0x490   :  { %v5652_v17 = vpop.f32.mrf.mxu0  ;;  %v5693_v21 = vpop.f32.mrf.mxu1  ;;  %6056 = vmatprep.subr.bf16.mxu0 %v8550_v30  ;;  %6097 = vmatprep.subr.bf16.mxu1 %v8551_v11  ;;  %v8584_v57 = vld [vmem:[#allocation2 + $0xd8] ss:$244 sps:$4 sm:$0xff]   ;;  %v8585_v61 = vld [vmem:[#allocation2 + $0xe0] ss:$244 sps:$4 sm:$0xff]   ;;  %v8589_v11 = vld [vmem:[#allocation2 + $0x1208] ss:$244 sps:$4 sm:$0xff]  }
 0x491   :  { %v5653_v45 = vadd.f32 %v5652_v17, %v8819_v40  ;;  %v5694_v59 = vadd.f32 %v5693_v21, %v8831_v25  ;;  %v8557_v40 = vld [vmem:[#allocation2 + $0xe38] ss:$244 sps:$4 sm:$0xff]   ;;  %v8559_v25 = vld [vmem:[#allocation2 + $0xc54] ss:$244 sps:$4 sm:$0xff]  }
 0x492   :  { %v5654_v12 = vpop.f32.mrf.mxu0  ;;  %v5695_v41 = vpop.f32.mrf.mxu1  ;;  %v8586_v2 = vld [vmem:[#allocation2 + $0x1204] ss:$244 sps:$4 sm:$0xff]   ;;  %v8587_v8 = vld [vmem:[#allocation2 + $0x120c] ss:$244 sps:$4 sm:$0xff]  }
 0x493   :  { %v6346_v18 = vcombine.low %v5651_v44, %v5653_v45  ;;  %v6347_v22 = vcombine.low %v5692_v50, %v5694_v59  ;;  %6057 = vmatpush2.bf16.msra.mxu0 %v8552_v34  ;;  %6098 = vmatpush2.bf16.msra.mxu1 %v8553_v39  ;;  %v8588_v30 = vld [vmem:[#allocation2 + $0x1200] ss:$244 sps:$4 sm:$0xff]   ;;  %v8590_v45 = vld [vmem:[#allocation2 + $0x101c] ss:$244 sps:$4 sm:$0xff]   ;;  %v8591_v59 = vld [vmem:[#allocation2 + $0x1024] ss:$244 sps:$4 sm:$0xff]  }
 0x494   :  { %v5655_v42 = vpop.f32.mrf.mxu0  ;;  %v5696_v3 = vpop.f32.mrf.mxu1  ;;  %6108 = vmatprep.subr.bf16.mxu0 %v8554_v58  ;;  %6149 = vmatprep.subr.bf16.mxu1 %v8555_v62  ;;  %v8592_v58 = vld [vmem:[#allocation2 + $0x1018] ss:$244 sps:$4 sm:$0xff]   ;;  %v8593_v62 = vld [vmem:[#allocation2 + $0x1020] ss:$244 sps:$4 sm:$0xff]  }
 0x495   :  { %6406 = vst [vmem:[%s9165_s2 + $0x78] sm:$0xff] %v6346_v18  ;;  %6407 = vst [vmem:[%s9165_s2 + $0x80] sm:$0xff] %v6347_v22 }
 0x496   :  { %6059 = vmatmul.mubr.bf16.vlgmr.msra.gmra.mxu0 %v8671_v33  ;;  %6100 = vmatmul.mubr.bf16.vlgmr.msra.gmra.mxu1 %v8671_v33 }
 0x497   :  { %6109 = vmatpush1.bf16.msra.mxu0 %v8556_v35  ;;  %6150 = vmatpush1.bf16.msra.mxu1 %v8557_v40 }
 0x498   :  { %6110 = vmatprep.subr.bf16.mxu0 %v8558_v19  ;;  %6151 = vmatprep.subr.bf16.mxu1 %v8559_v25  ;;  %v8594_v19 = vld [vmem:[#allocation2 + $0xe44] ss:$244 sps:$4 sm:$0xff]   ;;  %v9183_v25 = vmov 0  }
 0x499   :  { %7095 = vmatprep.mubr.msk.bf16.mxu0 %vm3724_vm0, %v8673_v37  ;;  %7096 = vmatprep.mubr.msk.bf16.mxu1 %vm3724_vm0, %v8673_v37 }
 0x49b   :  { %6111 = vmatpush1.bf16.msra.mxu0 %v8560_v48  ;;  %6152 = vmatpush1.bf16.msra.mxu1 %v8561_v54  ;;  %v8599_v48 = vld [vmem:[#allocation2 + $0xc60] ss:$244 sps:$4 sm:$0xff]  }
 0x49c   :  { %6112 = vmatprep.subr.bf16.mxu0 %v8562_v43  ;;  %6153 = vmatprep.subr.bf16.mxu1 %v8563_v49  ;;  %v8600_v54 = vld [vmem:[#allocation2 + $0xa74] ss:$244 sps:$4 sm:$0xff]   ;;  %v8601_v43 = vld [vmem:[#allocation2 + $0xa70] ss:$244 sps:$4 sm:$0xff]   ;;  %v8602_v49 = vld [vmem:[#allocation2 + $0xa78] ss:$244 sps:$4 sm:$0xff]  }
 0x49f   :  { %6113 = vmatpush1.bf16.msra.mxu0 %v8564_v47  ;;  %6154 = vmatpush1.bf16.msra.mxu1 %v8565_v53  ;;  %v8603_v47 = vld [vmem:[#allocation2 + $0x88c] ss:$244 sps:$4 sm:$0xff]   ;;  %v8604_v53 = vld [vmem:[#allocation2 + $0x888] ss:$244 sps:$4 sm:$0xff]  }
 0x4a0   :  { %6114 = vmatprep.subr.bf16.mxu0 %v8566_v36  ;;  %6155 = vmatprep.subr.bf16.mxu1 %v8567_v31  ;;  %v8605_v36 = vld [vmem:[#allocation2 + $0x890] ss:$244 sps:$4 sm:$0xff]   ;;  %v8607_v31 = vld [vmem:[#allocation2 + $0x6a0] ss:$244 sps:$4 sm:$0xff]  }
 0x4a3   :  { %6115 = vmatpush1.bf16.msra.mxu0 %v8568_v32  ;;  %6156 = vmatpush1.bf16.msra.mxu1 %v8569_v27  ;;  %v8608_v32 = vld [vmem:[#allocation2 + $0x6a8] ss:$244 sps:$4 sm:$0xff]  }
 0x4a4   :  { %6116 = vmatprep.subr.bf16.mxu0 %v8570_v46  ;;  %6157 = vmatprep.subr.bf16.mxu1 %v8571_v60  ;;  %v8609_v27 = vld [vmem:[#allocation2 + $0x4bc] ss:$244 sps:$4 sm:$0xff]   ;;  %v8610_v46 = vld [vmem:[#allocation2 + $0x4b8] ss:$244 sps:$4 sm:$0xff]   ;;  %v8611_v60 = vld [vmem:[#allocation2 + $0x4c0] ss:$244 sps:$4 sm:$0xff]  }
 0x4a7   :  { %6117 = vmatpush1.bf16.msra.mxu0 %v8572_v1  ;;  %6158 = vmatpush1.bf16.msra.mxu1 %v8573_v7  ;;  %v8612_v1 = vld [vmem:[#allocation2 + $0x2d4] ss:$244 sps:$4 sm:$0xff]   ;;  %v8613_v7 = vld [vmem:[#allocation2 + $0x2d0] ss:$244 sps:$4 sm:$0xff]  }
 0x4a8   :  { %6118 = vmatprep.subr.bf16.mxu0 %v8574_v28  ;;  %6159 = vmatprep.subr.bf16.mxu1 %v8575_v55  ;;  %v8614_v28 = vld [vmem:[#allocation2 + $0x2d8] ss:$244 sps:$4 sm:$0xff]  }
 0x4a9   :  { %v8615_v55 = vld [vmem:[#allocation2 + $0xec] ss:$244 sps:$4 sm:$0xff]  }
 0x4ab   :  { %6119 = vmatpush1.bf16.msra.mxu0 %v8576_v52  ;;  %6160 = vmatpush1.bf16.msra.mxu1 %v8577_v16  ;;  %v8616_v52 = vld [vmem:[#allocation2 + $0xe8] ss:$244 sps:$4 sm:$0xff]   ;;  %v8617_v16 = vld [vmem:[#allocation2 + $0xf0] ss:$244 sps:$4 sm:$0xff]  }
 0x4ac   :  { %6120 = vmatprep.subr.bf16.mxu0 %v8578_v5  ;;  %6161 = vmatprep.subr.bf16.mxu1 %v8579_v9  ;;  %v8618_v5 = vld [vmem:[#allocation2 + $0x1214] ss:$244 sps:$4 sm:$0xff]  }
 0x4af   :  { %6121 = vmatpush1.bf16.msra.mxu0 %v8580_v0  ;;  %6162 = vmatpush1.bf16.msra.mxu1 %v8581_v15  ;;  %v8619_v15 = vld [vmem:[#allocation2 + $0x1210] ss:$244 sps:$4 sm:$0xff]  }
 0x4b0   :  { %6122 = vmatprep.subr.bf16.mxu0 %v8582_v6  ;;  %6163 = vmatprep.subr.bf16.mxu1 %v8583_v10  ;;  %v8620_v6 = vld [vmem:[#allocation2 + $0x1218] ss:$244 sps:$4 sm:$0xff]  }
 0x4b3   :  { %6123 = vmatpush1.bf16.msra.mxu0 %v8584_v57  ;;  %6164 = vmatpush1.bf16.msra.mxu1 %v8585_v61  ;;  %v8621_v61 = vld [vmem:[#allocation2 + $0x102c] ss:$244 sps:$4 sm:$0xff]  }
 0x4b4   :  { %6136 = vmatprep.subr.bf16.mxu0 %v8586_v2  ;;  %6177 = vmatprep.subr.bf16.mxu1 %v8587_v8 }
 0x4b6   :  { %v5732_v17 = vpop.f32.mrf.mxu0  ;;  %v5773_v21 = vpop.f32.mrf.mxu1 }
 0x4b7   :  { %6137 = vmatpush2.bf16.msra.mxu0 %v8588_v30  ;;  %6178 = vmatpush2.bf16.msra.mxu1 %v8589_v11  ;;  %v5733_v12 = vadd.f32 %v5732_v17, %v8829_v20  ;;  %v5774_v41 = vadd.f32 %v5773_v21, %v8841_v13  ;;  %v8595_v20 = vld [vmem:[#allocation2 + $0xe40] ss:$244 sps:$4 sm:$0xff]   ;;  %v8597_v13 = vld [vmem:[#allocation2 + $0xc5c] ss:$244 sps:$4 sm:$0xff]  }
 0x4b8   :  { %v5734_v44 = vpop.f32.mrf.mxu0  ;;  %v5775_v50 = vpop.f32.mrf.mxu1  ;;  %6138 = vmatprep.subr.bf16.mxu0 %v8590_v45  ;;  %6179 = vmatprep.subr.bf16.mxu1 %v8591_v59  ;;  %v8622_v45 = vld [vmem:[#allocation2 + $0x1028] ss:$244 sps:$4 sm:$0xff]   ;;  %v8623_v59 = vld [vmem:[#allocation2 + $0x1030] ss:$244 sps:$4 sm:$0xff]  }
 0x4b9   :  { %v5735_v18 = vadd.f32 %v5734_v44, %v8833_v26  ;;  %v5776_v22 = vadd.f32 %v5775_v50, %v8845_v23  ;;  %v8596_v26 = vld [vmem:[#allocation2 + $0xe48] ss:$244 sps:$4 sm:$0xff]   ;;  %v8598_v23 = vld [vmem:[#allocation2 + $0xc58] ss:$244 sps:$4 sm:$0xff]  }
 0x4ba   :  { %v5736_v34 = vpop.f32.mrf.mxu0  ;;  %v5777_v39 = vpop.f32.mrf.mxu1 }
 0x4bb   :  { %v6348_v42 = vcombine.low %v5733_v12, %v5735_v18  ;;  %v6349_v3 = vcombine.low %v5774_v41, %v5776_v22  ;;  %6139 = vmatpush2.bf16.msra.mxu0 %v8592_v58  ;;  %6180 = vmatpush2.bf16.msra.mxu1 %v8593_v62 }
 0x4bc   :  { %v5737_v35 = vpop.f32.mrf.mxu0  ;;  %v5778_v40 = vpop.f32.mrf.mxu1  ;;  %6190 = vmatprep.subr.bf16.mxu0 %v8594_v19  ;;  %6231 = vmatprep.subr.bf16.mxu1 %v9183_v25  ;;  %v9184_v19 = vld [vmem:[#allocation5_spill] sm:$0xff] }
 0x4bd   :  { %6408 = vst [vmem:[%s9165_s2 + $0x88] sm:$0xff] %v6348_v42  ;;  %6409 = vst [vmem:[%s9165_s2 + $0x90] sm:$0xff] %v6349_v3 }
 0x4be   :  { %6141 = vmatmul.mubr.bf16.vlgmr.msra.gmra.mxu0 %v8671_v33  ;;  %6182 = vmatmul.mubr.bf16.vlgmr.msra.gmra.mxu1 %v8671_v33 }
 0x4bf   :  { %6191 = vmatpush1.bf16.msra.mxu0 %v8595_v20  ;;  %6232 = vmatpush1.bf16.msra.mxu1 %v8596_v26  ;;  %v9186_v26 = vld [vmem:[#allocation6_spill] sm:$0xff] }
 0x4c0   :  { %6192 = vmatprep.subr.bf16.mxu0 %v8597_v13  ;;  %6233 = vmatprep.subr.bf16.mxu1 %v9183_v25 }
 0x4c1   :  { %7097 = vmatprep.mubr.msk.bf16.mxu0 %vm3724_vm0, %v8673_v37  ;;  %7098 = vmatprep.mubr.msk.bf16.mxu1 %vm3724_vm0, %v8673_v37  ;;  %v8606_v37 = vld [vmem:[#allocation2 + $0x6a4] ss:$244 sps:$4 sm:$0xff]  }
 0x4c3   :  { %6193 = vmatpush1.bf16.msra.mxu0 %v8598_v23  ;;  %6234 = vmatpush1.bf16.msra.mxu1 %v8599_v48  ;;  %v9187_v23 = vld [vmem:[#allocation9_spill] sm:$0xff] }
 0x4c4   :  { %6194 = vmatprep.subr.bf16.mxu0 %v8600_v54  ;;  %6235 = vmatprep.subr.bf16.mxu1 %v9183_v25 }
 0x4c7   :  { %6195 = vmatpush1.bf16.msra.mxu0 %v8601_v43  ;;  %6236 = vmatpush1.bf16.msra.mxu1 %v8602_v49 }
 0x4c8   :  { %6196 = vmatprep.subr.bf16.mxu0 %v8603_v47  ;;  %6237 = vmatprep.subr.bf16.mxu1 %v9183_v25 }
 0x4cb   :  { %6197 = vmatpush1.bf16.msra.mxu0 %v8604_v53  ;;  %6238 = vmatpush1.bf16.msra.mxu1 %v8605_v36 }
 0x4cc   :  { %6198 = vmatprep.subr.bf16.mxu0 %v8606_v37  ;;  %6239 = vmatprep.subr.bf16.mxu1 %v9183_v25 }
 0x4cf   :  { %6199 = vmatpush1.bf16.msra.mxu0 %v8607_v31  ;;  %6240 = vmatpush1.bf16.msra.mxu1 %v8608_v32 }
 0x4d0   :  { %6200 = vmatprep.subr.bf16.mxu0 %v8609_v27  ;;  %6241 = vmatprep.subr.bf16.mxu1 %v9183_v25 }
 0x4d3   :  { %6201 = vmatpush1.bf16.msra.mxu0 %v8610_v46  ;;  %6242 = vmatpush1.bf16.msra.mxu1 %v8611_v60  ;;  %v9188_v46 = vld [vmem:[#allocation8_spill] sm:$0xff] }
 0x4d4   :  { %6202 = vmatprep.subr.bf16.mxu0 %v8612_v1  ;;  %6243 = vmatprep.subr.bf16.mxu1 %v9183_v25  ;;  %v9189_v1 = vld [vmem:[#allocation11_spill] sm:$0xff] }
 0x4d7   :  { %6203 = vmatpush1.bf16.msra.mxu0 %v8613_v7  ;;  %6244 = vmatpush1.bf16.msra.mxu1 %v8614_v28  ;;  %v9190_v28 = vld [vmem:[#allocation10_spill] sm:$0xff] }
 0x4d8   :  { %6204 = vmatprep.subr.bf16.mxu0 %v8615_v55  ;;  %6245 = vmatprep.subr.bf16.mxu1 %v9183_v25 }
 0x4db   :  { %6205 = vmatpush1.bf16.msra.mxu0 %v8616_v52  ;;  %6246 = vmatpush1.bf16.msra.mxu1 %v8617_v16  ;;  %v9191_v52 = vld [vmem:[#allocation13_spill] sm:$0xff] }
 0x4dc   :  { %6218 = vmatprep.subr.bf16.mxu0 %v8618_v5  ;;  %6259 = vmatprep.subr.bf16.mxu1 %v9183_v25 }
 0x4de   :  { %v5814_v9 = vpop.f32.mrf.mxu0  ;;  %v5855_v0 = vpop.f32.mrf.mxu1 }
 0x4df   :  { %6219 = vmatpush2.bf16.msra.mxu0 %v8619_v15  ;;  %6260 = vmatpush2.bf16.msra.mxu1 %v8620_v6  ;;  %v5815_v2 = vadd.f32 %v5814_v9, %v8843_v14  ;;  %v5856_v8 = vadd.f32 %v5855_v0, %v8864_v56 }
 0x4e0   :  { %v5816_v10 = vpop.f32.mrf.mxu0  ;;  %v5857_v57 = vpop.f32.mrf.mxu1  ;;  %6220 = vmatprep.subr.bf16.mxu0 %v8621_v61  ;;  %6261 = vmatprep.subr.bf16.mxu1 %v9183_v25  ;;  %v9185_v25 = vld [vmem:[#allocation7_spill] sm:$0xff] }
 0x4e1   :  { %v5817_v17 = vadd.f32 %v5816_v10, %v8847_v24  ;;  %v5858_v21 = vadd.f32 %v5857_v57, %v8868_v4 }
 0x4e2   :  { %v5818_v30 = vpop.f32.mrf.mxu0  ;;  %v5859_v11 = vpop.f32.mrf.mxu1 }
 0x4e3   :  { %v6350_v44 = vcombine.low %v5815_v2, %v5817_v17  ;;  %v6351_v50 = vcombine.low %v5856_v8, %v5858_v21  ;;  %6221 = vmatpush2.bf16.msra.mxu0 %v8622_v45  ;;  %6262 = vmatpush2.bf16.msra.mxu1 %v8623_v59  ;;  %v9192_v17 = vld [vmem:[#allocation12_spill] sm:$0xff]  ;;  %v9193_v30 = vld [vmem:[#allocation15_spill] sm:$0xff]  ;;  %v9195_v45 = vld [vmem:[#allocation17_spill] sm:$0xff] }
 0x4e4   :  { %v5819_v12 = vpop.f32.mrf.mxu0  ;;  %v5860_v41 = vpop.f32.mrf.mxu1 }
 0x4e5   :  { %6410 = vst [vmem:[%s9165_s2 + $0x98] sm:$0xff] %v6350_v44  ;;  %6411 = vst [vmem:[%s9165_s2 + $0xa0] sm:$0xff] %v6351_v50  ;;  %v9194_v44 = vld [vmem:[#allocation14_spill] sm:$0xff] }
 0x4e6   :  { %6223 = vmatmul.mubr.bf16.vlgmr.msra.gmra.mxu0 %v8671_v33  ;;  %6264 = vmatmul.mubr.bf16.vlgmr.msra.gmra.mxu1 %v8671_v33 }
 0x506   :  { %v5896_v14 = vpop.f32.mrf.mxu0  ;;  %v5937_v24 = vpop.f32.mrf.mxu1 }
 0x507   :  { %v5897_v18 = vadd.f32 %v5896_v14, %v8866_v63  ;;  %v5938_v22 = vadd.f32 %v5937_v24, %v8879_v29 }
 0x508   :  { %v5898_v56 = vpop.f32.mrf.mxu0  ;;  %v5939_v4 = vpop.f32.mrf.mxu1 }
 0x509   :  { %v5899_v34 = vadd.f32 %v5898_v56, %v8870_v51  ;;  %v5940_v39 = vadd.f32 %v5939_v4, %v8883_v38 }
 0x50a   :  { %v5900_v42 = vpop.f32.mrf.mxu0  ;;  %v5941_v3 = vpop.f32.mrf.mxu1 }
 0x50b   :  { %v6352_v58 = vcombine.low %v5897_v18, %v5899_v34  ;;  %v6353_v62 = vcombine.low %v5938_v22, %v5940_v39  ;;  %v9196_v34 = vld [vmem:[#allocation19_spill] sm:$0xff] }
 0x50c   :  { %v5901_v35 = vpop.f32.mrf.mxu0  ;;  %v5942_v40 = vpop.f32.mrf.mxu1 }
 0x50d   :  { %6412 = vst [vmem:[%s9165_s2 + $0xa8] sm:$0xff] %v6352_v58  ;;  %6413 = vst [vmem:[%s9165_s2 + $0xb0] sm:$0xff] %v6353_v62  ;;  %v9197_v58 = vld [vmem:[#allocation16_spill] sm:$0xff]  ;;  %v9198_v35 = vld [vmem:[#allocation18_spill] sm:$0xff] }
 0x52e   :  { %v5978_v33 = vpop.f32.mrf.mxu0  ;;  %v6019_v63 = vpop.f32.mrf.mxu1 }
 0x52f   :  { %v5979_v38 = vadd.f32 %v5978_v33, %v9184_v19  ;;  %v6020_v20 = vadd.f32 %v6019_v63, %v9185_v25 }
 0x530   :  { %v5980_v29 = vpop.f32.mrf.mxu0  ;;  %v6021_v51 = vpop.f32.mrf.mxu1 }
 0x531   :  { %v5981_v13 = vadd.f32 %v5980_v29, %v9186_v26  ;;  %v6022_v48 = vadd.f32 %v6021_v51, %v9187_v23 }
 0x532   :  { %v5982_v54 = vpop.f32.mrf.mxu0  ;;  %v6023_v43 = vpop.f32.mrf.mxu1 }
 0x533   :  { %v6354_v49 = vcombine.low %v5979_v38, %v5981_v13  ;;  %v6355_v47 = vcombine.low %v6020_v20, %v6022_v48 }
 0x534   :  { %v5983_v53 = vpop.f32.mrf.mxu0  ;;  %v6024_v36 = vpop.f32.mrf.mxu1 }
 0x535   :  { %6414 = vst [vmem:[%s9165_s2 + $0xb8] sm:$0xff] %v6354_v49  ;;  %6415 = vst [vmem:[%s9165_s2 + $0xc0] sm:$0xff] %v6355_v47 }
 0x556   :  { %v6060_v37 = vpop.f32.mrf.mxu0  ;;  %v6101_v31 = vpop.f32.mrf.mxu1 }
 0x557   :  { %v6061_v60 = vadd.f32 %v6060_v37, %v9188_v46  ;;  %v6102_v7 = vadd.f32 %v6101_v31, %v9189_v1 }
 0x558   :  { %v6062_v32 = vpop.f32.mrf.mxu0  ;;  %v6103_v27 = vpop.f32.mrf.mxu1 }
 0x559   :  { %v6063_v55 = vadd.f32 %v6062_v32, %v9190_v28  ;;  %v6104_v16 = vadd.f32 %v6103_v27, %v9191_v52 }
 0x55a   :  { %v6064_v5 = vpop.f32.mrf.mxu0  ;;  %v6105_v9 = vpop.f32.mrf.mxu1 }
 0x55b   :  { %v6356_v0 = vcombine.low %v6061_v60, %v6063_v55  ;;  %v6357_v15 = vcombine.low %v6102_v7, %v6104_v16 }
 0x55c   :  { %v6065_v6 = vpop.f32.mrf.mxu0  ;;  %v6106_v10 = vpop.f32.mrf.mxu1 }
 0x55d   :  { %6416 = vst [vmem:[%s9165_s2 + $0xc8] sm:$0xff] %v6356_v0  ;;  %6417 = vst [vmem:[%s9165_s2 + $0xd0] sm:$0xff] %v6357_v15 }
 0x57e   :  { %v6142_v57 = vpop.f32.mrf.mxu0  ;;  %v6183_v61 = vpop.f32.mrf.mxu1 }
 0x57f   :  { %v6143_v21 = vadd.f32 %v6142_v57, %v9192_v17  ;;  %v6184_v11 = vadd.f32 %v6183_v61, %v9193_v30 }
 0x580   :  { %v6144_v2 = vpop.f32.mrf.mxu0  ;;  %v6185_v8 = vpop.f32.mrf.mxu1 }
 0x581   :  { %v6145_v50 = vadd.f32 %v6144_v2, %v9194_v44  ;;  %v6186_v59 = vadd.f32 %v6185_v8, %v9195_v45 }
 0x582   :  { %v6146_v12 = vpop.f32.mrf.mxu0  ;;  %v6187_v41 = vpop.f32.mrf.mxu1 }
 0x583   :  { %v6358_v14 = vcombine.low %v6143_v21, %v6145_v50  ;;  %v6359_v24 = vcombine.low %v6184_v11, %v6186_v59 }
 0x584   :  { %v6147_v56 = vpop.f32.mrf.mxu0  ;;  %v6188_v4 = vpop.f32.mrf.mxu1 }
 0x585   :  { %6418 = vst [vmem:[%s9165_s2 + $0xd8] sm:$0xff] %v6358_v14  ;;  %6419 = vst [vmem:[%s9165_s2 + $0xe0] sm:$0xff] %v6359_v24 }
 0x5a6   :  { %v6224_v18 = vpop.f32.mrf.mxu0  ;;  %v6265_v22 = vpop.f32.mrf.mxu1 }
 0x5a7   :  { %v6266_v39 = vadd.f32 %v6265_v22, %v9196_v34  ;;  %v6225_v62 = vadd.f32 %v6224_v18, %v9197_v58 }
 0x5a8   :  { %v6226_v42 = vpop.f32.mrf.mxu0  ;;  %v6267_v3 = vpop.f32.mrf.mxu1 }
 0x5a9   :  { %6421 = vst [vmem:[%s9165_s2 + $0xf0] sm:$0xf] %v6266_v39  ;;  %v6227_v40 = vadd.f32 %v6226_v42, %v9198_v35 }
 0x5aa   :  { %v6228_v33 = vpop.f32.mrf.mxu0  ;;  %v6268_v63 = vpop.f32.mrf.mxu1 }
 0x5ab   :  { %v6360_v29 = vcombine.low %v6225_v62, %v6227_v40 }
 0x5ac   :  { %v6229_v51 = vpop.f32.mrf.mxu0  ;;  %v6269_v19 = vpop.f32.mrf.mxu1 }
 0x5ad   :  { %6420 = vst [vmem:[%s9165_s2 + $0xe8] sm:$0xff] %v6360_v29 }
 0x5ae   :  { %6426 = vsyncpa [#allocation3], 1 }

</bundles_post_ra>
